<compile_context>
chip_gen: v5e
topology: v5e:2x2
jax: 0.10.0
libtpu: 0.0.40
codegen_flags: <defaults>
</compile_context>

<pallas_src>
import functools
import math

import jax
import jax.numpy as jnp
from jax import lax
from jax.experimental import pallas as pl
from jax.experimental.pallas import tpu as pltpu


def _silu(x):
    return x * jax.nn.sigmoid(x)


def _round_up(x, m):
    return ((x + m - 1) // m) * m


# ----------------------------------------------------------------------------
# Fused kernel: embedding_in -> n_layers x E_GCL -> graph_dec -> batch scatter
#   grid = (n_layers, num_edge_tiles); [h | coord] slab + scatter accumulators
#   live in VMEM scratch for the whole kernel.
#   (use_layer_norm=False, attention=False, normalize=False, tanh=False,
#    residual=True, coords_agg='mean'; coords updated only on the last layer.)
# ----------------------------------------------------------------------------
def _egnn_fused_kernel(hidden, mean, std,
                       h0_ref, x_ref, row_ref, col_ref, ea_ref, invdeg_ref, batch_ref,
                       embw_ref, embb_ref,
                       we1_ref, be1_ref, we2_ref, be2_ref,
                       wn1_ref, bn1_ref, wn2_ref, bn2_ref,
                       wc1_ref, bc1_ref, wc2_ref,
                       wg1_ref, bg1_ref, wg2_ref, bg2_ref,
                       coord_out_ref, pred_ref,
                       slab_ref, agg_ref, csum_ref):
    H = hidden
    l = pl.program_id(0)
    e = pl.program_id(1)
    last_layer = l == pl.num_programs(0) - 1
    last_tile = e == pl.num_programs(1) - 1

    # ---- once, at the very first grid step: embed h0, park [h | coord] in VMEM ----
    @pl.when(jnp.logical_and(l == 0, e == 0))
    def _():
        h_emb = (jnp.dot(h0_ref[...], embw_ref[...],
                         preferred_element_type=jnp.float32) + embb_ref[...])
        slab_ref[...] = jnp.concatenate([h_emb, x_ref[...]], axis=1)

    # ---- per layer, first edge tile: zero the scatter accumulators ----
    @pl.when(e == 0)
    def _():
        agg_ref[...] = jnp.zeros_like(agg_ref)
        csum_ref[...] = jnp.zeros_like(csum_ref)

    # ---- edge tile: fused gather -> edge MLP -> scatter-add ----------------------
    slab = slab_ref[...]                                   # [N_pad, H+3] = [h | coord]
    n_pad = slab.shape[0]
    t_e = row_ref.shape[0]
    node_iota = lax.broadcasted_iota(jnp.int32, (t_e, n_pad), 1)
    oh_row = (row_ref[...] == node_iota).astype(jnp.float32)        # [tE, N_pad]
    oh_col = (col_ref[...] == node_iota).astype(jnp.float32)
    # TODO(synk): bf16 one-hot / slab MXU operands would halve the [tE,N] VMEM footprint
    # and double MXU rate, but rounds h/coord; kept f32 to stay within f32 tolerances.
    # TODO(synk): for very large graphs, replace the one-hot matmul gather/scatter with
    # sorted-edge scalar-prefetch (data-dependent BlockSpecs) to avoid O(E*N) work.

    g_row = jnp.dot(oh_row, slab, preferred_element_type=jnp.float32)   # [tE, H+3]
    g_col = jnp.dot(oh_col, slab, preferred_element_type=jnp.float32)
    source, crow = g_row[:, :H], g_row[:, H:]
    target, ccol = g_col[:, :H], g_col[:, H:]
    coord_diff = crow - ccol                                             # [tE, 3]
    radial = jnp.sum(coord_diff * coord_diff, axis=1, keepdims=True)     # [tE, 1]

    # edge_mlp( cat[source, target, radial, edge_attr] ) via split matmuls
    we1 = we1_ref[...]                                    # [2H+1+Ein, H]
    pre = (jnp.dot(source, we1[:H, :], preferred_element_type=jnp.float32)
           + jnp.dot(target, we1[H:2 * H, :], preferred_element_type=jnp.float32)
           + radial * we1[2 * H:2 * H + 1, :]
           + jnp.dot(ea_ref[...], we1[2 * H + 1:, :],
                     preferred_element_type=jnp.float32)
           + be1_ref[...])
    m = _silu(pre)
    edge_feat = _silu(jnp.dot(m, we2_ref[...],
                              preferred_element_type=jnp.float32) + be2_ref[...])

    # unsorted_segment_sum(edge_feat, row):  agg += onehot_row^T @ edge_feat
    agg_ref[...] += lax.dot_general(oh_row, edge_feat, (((0,), (0,)), ((), ())),
                                    preferred_element_type=jnp.float32)

    # coord message only matters on the last layer (update_coords=True there only)
    @pl.when(last_layer)
    def _():
        c1 = _silu(jnp.dot(edge_feat, wc1_ref[...],
                           preferred_element_type=jnp.float32) + bc1_ref[...])
        phi = jnp.dot(c1, wc2_ref[...], preferred_element_type=jnp.float32)   # [tE, 1]
        csum_ref[...] += lax.dot_general(oh_row, coord_diff * phi,
                                         (((0,), (0,)), ((), ())),
                                         preferred_element_type=jnp.float32)

    # ---- per layer, last edge tile: node MLP + residual (+ coord update, decoder) ----
    @pl.when(last_tile)
    def _():
        h = slab[:, :H]
        coord = slab[:, H:]
        agg = agg_ref[...]
        wn1 = wn1_ref[...]
        n1 = _silu(jnp.dot(h, wn1[:H, :], preferred_element_type=jnp.float32)
                   + jnp.dot(agg, wn1[H:, :], preferred_element_type=jnp.float32)
                   + bn1_ref[...])
        h_new = h + (jnp.dot(n1, wn2_ref[...],
                             preferred_element_type=jnp.float32) + bn2_ref[...])
        slab_ref[...] = jnp.concatenate([h_new, coord], axis=1)   # full-slab store

        @pl.when(last_layer)
        def _():
            # segment-mean coordinate update; 1/deg precomputed in the wrapper
            coord_new = coord + csum_ref[...] * invdeg_ref[...]
            coord_out_ref[...] = coord_new
            # graph_dec + scatter_add over batch + (pred * std + mean)
            d1 = _silu(jnp.dot(h_new, wg1_ref[...],
                               preferred_element_type=jnp.float32) + bg1_ref[...])
            node_out = (jnp.dot(d1, wg2_ref[...],
                                preferred_element_type=jnp.float32) + bg2_ref[...])
            g_pad = pred_ref.shape[0]
            giota = lax.broadcasted_iota(jnp.int32, (n_pad, g_pad), 1)
            oh_b = (batch_ref[...] == giota).astype(jnp.float32)    # [N_pad, G_pad]
            pred = lax.dot_general(oh_b, node_out, (((0,), (0,)), ((), ())),
                                   preferred_element_type=jnp.float32)
            pred_ref[...] = pred * std + mean


# ----------------------------------------------------------------------------
# Full EGNN_md_last forward (md_type='predict'): one fused pallas_call
# ----------------------------------------------------------------------------
def egnn_md_last_forward(params, h, x, row, col, edge_attr, batch,
                         num_graphs, n_layers, mean, std, max_edge_tile=512):
    f32 = jnp.float32
    N, f_in = h.shape
    E = row.shape[0]
    H = params['emb_w'].shape[1]
    e_in = edge_attr.shape[1]

    n_pad = _round_up(N, 128)                       # lane-dense one-hot / gather K-dim
    # cap the edge tile so the (double-buffered) f32 one-hot pair stays ~<= 6 MiB
    te_cap = max(8, (6 * 1024 * 1024 // (2 * 4 * n_pad)) // 8 * 8)
    t_e = max(8, min(max_edge_tile, te_cap, _round_up(E, 8)))
    e_pad = _round_up(E, t_e)
    n_tiles = e_pad // t_e
    g_pad = _round_up(max(num_graphs, 1), 8)

    # ---- pad graph data; padded rows use index -1 so their one-hots are all-zero ----
    h0_p = jnp.zeros((n_pad, f_in), f32).at[:N].set(h.astype(f32))
    x_p = jnp.zeros((n_pad, 3), f32).at[:N].set(x.astype(f32))
    batch_p = jnp.full((n_pad, 1), -1, jnp.int32).at[:N, 0].set(batch.astype(jnp.int32))
    row_p = jnp.full((e_pad, 1), -1, jnp.int32).at[:E, 0].set(row.astype(jnp.int32))
    col_p = jnp.full((e_pad, 1), -1, jnp.int32).at[:E, 0].set(col.astype(jnp.int32))
    ea_p = jnp.zeros((e_pad, e_in), f32).at[:E].set(edge_attr.astype(f32))

    # node degrees (coords_agg='mean' denominator) computed once outside the kernel
    deg = jnp.zeros((n_pad,), f32).at[row].add(1.0)
    inv_deg = (1.0 / jnp.maximum(deg, 1.0))[:, None]

    # ---- stack per-layer GCL weights as [L, ...] (streamed per layer via index_map) ----
    stk = lambda k: jnp.stack([params['gcl'][i][k] for i in range(n_layers)], axis=0)
    we1s, be1s = stk('we1'), stk('be1')
    we2s, be2s = stk('we2'), stk('be2')
    wn1s, bn1s = stk('wn1'), stk('bn1')
    wn2s, bn2s = stk('wn2'), stk('bn2')
    wc1s, bc1s = stk('wc1'), stk('bc1')
    wc2s = stk('wc2')
    dec = params['dec']

    node_full = lambda arr: pl.BlockSpec(arr.shape, lambda l, e: (0,) * arr.ndim)
    edge_spec = lambda width: pl.BlockSpec((t_e, width), lambda l, e: (e, 0))
    lw_spec = lambda a, b: pl.BlockSpec((None, a, b), lambda l, e: (l, 0, 0))

    in_specs = [
        node_full(h0_p), node_full(x_p),
        edge_spec(1), edge_spec(1), edge_spec(e_in),
        node_full(inv_deg), node_full(batch_p),
        node_full(params['emb_w']), node_full(params['emb_b']),
        lw_spec(2 * H + 1 + e_in, H), lw_spec(1, H),
        lw_spec(H, H), lw_spec(1, H),
        lw_spec(2 * H, H), lw_spec(1, H),
        lw_spec(H, H), lw_spec(1, H),
        lw_spec(H, H), lw_spec(1, H),
        lw_spec(H, 1),
        node_full(dec['wg1']), node_full(dec['bg1']),
        node_full(dec['wg2']), node_full(dec['bg2']),
    ]
    out_specs = (pl.BlockSpec((n_pad, 3), lambda l, e: (0, 0)),
                 pl.BlockSpec((g_pad, 1), lambda l, e: (0, 0)))

    grid_spec = pltpu.PrefetchScalarGridSpec(
        num_scalar_prefetch=0,
        grid=(n_layers, n_tiles),          # layers outer, edge-tile reduction inner
        in_specs=in_specs,
        out_specs=out_specs,
        scratch_shapes=[pltpu.VMEM((n_pad, H + 3), f32),   # [h | coord] slab
                        pltpu.VMEM((n_pad, H), f32),       # edge-feature scatter acc
                        pltpu.VMEM((n_pad, 3), f32)])      # coord translation acc

    kernel = functools.partial(_egnn_fused_kernel, H, float(mean), float(std))
    coord_out, pred = pl.pallas_call(
        kernel,
        out_shape=(jax.ShapeDtypeStruct((n_pad, 3), f32),
                   jax.ShapeDtypeStruct((g_pad, 1), f32)),
        grid_spec=grid_spec,
        compiler_params=pltpu.CompilerParams(
            dimension_semantics=("arbitrary", "arbitrary"),
            vmem_limit_bytes=48 * 1024 * 1024),
    )(h0_p, x_p, row_p, col_p, ea_p, inv_deg, batch_p,
      params['emb_w'], params['emb_b'],
      we1s, be1s, we2s, be2s, wn1s, bn1s, wn2s, bn2s, wc1s, bc1s, wc2s,
      dec['wg1'], dec['bg1'], dec['wg2'], dec['bg2'])

    dy = coord_out[:N] - x                      # md_type='predict': dy = x__ - x_
    return pred[:num_graphs, 0], dy
    # TODO(synk): md_type='gradient' (autograd of pred wrt x) is not implemented here.


# ----------------------------------------------------------------------------
# Pure-JAX reference (mirrors the PyTorch code) for verification
# ----------------------------------------------------------------------------
def egnn_md_last_reference(params, h, x, row, col, edge_attr, batch,
                           num_graphs, n_layers, mean, std):
    N = h.shape[0]
    E = row.shape[0]
    h = h @ params['emb_w'] + params['emb_b'][0]
    coord = x
    for i in range(n_layers):
        lp = params['gcl'][i]
        update = (i == n_layers - 1)
        cd = coord[row] - coord[col]
        radial = jnp.sum(cd ** 2, axis=1, keepdims=True)
        inp = jnp.concatenate([h[row], h[col], radial, edge_attr], axis=1)
        m = jax.nn.silu(inp @ lp['we1'] + lp['be1'][0])
        ef = jax.nn.silu(m @ lp['we2'] + lp['be2'][0])
        if update:
            c1 = jax.nn.silu(ef @ lp['wc1'] + lp['bc1'][0])
            phi = c1 @ lp['wc2']
            trans = cd * phi
            sums = jnp.zeros((N, 3), jnp.float32).at[row].add(trans)
            counts = jnp.zeros((N, 1), jnp.float32).at[row].add(jnp.ones((E, 1)))
            coord = coord + sums / jnp.maximum(counts, 1.0)
        agg = jnp.zeros((N, h.shape[1]), jnp.float32).at[row].add(ef)
        n1 = jax.nn.silu(jnp.concatenate([h, agg], axis=1) @ lp['wn1'] + lp['bn1'][0])
        h = h + (n1 @ lp['wn2'] + lp['bn2'][0])
    dec = params['dec']
    d1 = jax.nn.silu(h @ dec['wg1'] + dec['bg1'][0])
    node_out = d1 @ dec['wg2'] + dec['bg2'][0]
    pred = jnp.zeros((num_graphs, 1), jnp.float32).at[batch].add(node_out)
    pred = pred * std + mean
    return pred[:, 0], coord - x


# ----------------------------------------------------------------------------
# Deterministic parameter init (PyTorch nn.Linear-style uniform bounds)
# ----------------------------------------------------------------------------
def _init_linear(key, fan_in, fan_out, bias=True, scale=None):
    kw, kb = jax.random.split(key)
    bound = (1.0 / math.sqrt(fan_in)) if scale is None else scale
    w = jax.random.uniform(kw, (fan_in, fan_out), jnp.float32, -bound, bound)
    b = (jax.random.uniform(kb, (1, fan_out), jnp.float32, -bound, bound)
         if bias else jnp.zeros((1, fan_out), jnp.float32))
    return w, b


def init_params(key, in_node_nf, hidden_nf, in_edge_nf, n_layers):
    keys = jax.random.split(key, 2 + n_layers)
    emb_w, emb_b = _init_linear(keys[0], in_node_nf, hidden_nf)
    gcl = []
    H = hidden_nf
    for i in range(n_layers):
        lk = jax.random.split(keys[2 + i], 6)
        we1, be1 = _init_linear(lk[0], 2 * H + 1 + in_edge_nf, H)
        we2, be2 = _init_linear(lk[1], H, H)
        wn1, bn1 = _init_linear(lk[2], 2 * H, H)
        wn2, bn2 = _init_linear(lk[3], H, H)
        wc1, bc1 = _init_linear(lk[4], H, H)
        # final coord layer: xavier_uniform with gain=0.001, no bias
        xav = 0.001 * math.sqrt(6.0 / (H + 1))
        wc2, _ = _init_linear(lk[5], H, 1, bias=False, scale=xav)
        gcl.append(dict(we1=we1, be1=be1, we2=we2, be2=be2,
                        wn1=wn1, bn1=bn1, wn2=wn2, bn2=bn2,
                        wc1=wc1, bc1=bc1, wc2=wc2))
    dk = jax.random.split(keys[1], 2)
    wg1, bg1 = _init_linear(dk[0], H, H)
    wg2, bg2 = _init_linear(dk[1], H, 1)
    # TODO(synk): node_dec params exist in the PyTorch module but are never used in forward.
    dec = dict(wg1=wg1, bg1=bg1, wg2=wg2, bg2=bg2)
    return dict(emb_w=emb_w, emb_b=emb_b, gcl=gcl, dec=dec)


if __name__ == "__main__":
    # Small synthetic molecular graph: 2 graphs x 4 nodes, fully connected intra-graph.
    in_node_nf, hidden_nf, in_edge_nf, n_layers = 6, 32, 2, 3
    nodes_per_graph, num_graphs = 4, 2
    N = nodes_per_graph * num_graphs
    mean, std = 0.5, 2.0

    rows, cols, batch_list = [], [], []
    for g in range(num_graphs):
        off = g * nodes_per_graph
        for i in range(nodes_per_graph):
            batch_list.append(g)
            for j in range(nodes_per_graph):
                if i != j:
                    rows.append(off + i)
                    cols.append(off + j)
    row = jnp.array(rows, dtype=jnp.int32)
    col = jnp.array(cols, dtype=jnp.int32)
    batch = jnp.array(batch_list, dtype=jnp.int32)
    E = row.shape[0]

    key = jax.random.PRNGKey(0)
    k_h, k_x, k_e, k_p = jax.random.split(key, 4)
    h0 = jax.random.normal(k_h, (N, in_node_nf), jnp.float32)
    x0 = jax.random.normal(k_x, (N, 3), jnp.float32)
    edge_attr = jax.random.normal(k_e, (E, in_edge_nf), jnp.float32)
    params = init_params(k_p, in_node_nf, hidden_nf, in_edge_nf, n_layers)

    pred, dy = egnn_md_last_forward(params, h0, x0, row, col, edge_attr, batch,
                                    num_graphs, n_layers, mean, std)
    pred = jax.block_until_ready(pred)
    dy = jax.block_until_ready(dy)

    pred_ref, dy_ref = egnn_md_last_reference(params, h0, x0, row, col, edge_attr,
                                              batch, num_graphs, n_layers, mean, std)
    assert pred.shape == (num_graphs,) and dy.shape == (N, 3)
    assert jnp.allclose(pred, pred_ref, rtol=1e-3, atol=1e-3), (pred, pred_ref)
    assert jnp.allclose(dy, dy_ref, rtol=1e-3, atol=1e-3)
    print("KERNEL_OK")
</pallas_src>

<mosaic_0001>
module attributes {stable_mosaic.version = 11 : i64} {
  func.func @_egnn_fused_kernel(%arg0: i32, %arg1: i32, %arg2: memref<128x6xf32, #tpu.memory_space<vmem>>, %arg3: memref<128x3xf32, #tpu.memory_space<vmem>>, %arg4: memref<24x1xi32, #tpu.memory_space<vmem>>, %arg5: memref<24x1xi32, #tpu.memory_space<vmem>>, %arg6: memref<24x2xf32, #tpu.memory_space<vmem>>, %arg7: memref<128x1xf32, #tpu.memory_space<vmem>>, %arg8: memref<128x1xi32, #tpu.memory_space<vmem>>, %arg9: memref<6x32xf32, #tpu.memory_space<vmem>>, %arg10: memref<1x32xf32, #tpu.memory_space<vmem>>, %arg11: memref<1x67x32xf32, #tpu.memory_space<vmem>>, %arg12: memref<1x1x32xf32, #tpu.memory_space<vmem>>, %arg13: memref<1x32x32xf32, #tpu.memory_space<vmem>>, %arg14: memref<1x1x32xf32, #tpu.memory_space<vmem>>, %arg15: memref<1x64x32xf32, #tpu.memory_space<vmem>>, %arg16: memref<1x1x32xf32, #tpu.memory_space<vmem>>, %arg17: memref<1x32x32xf32, #tpu.memory_space<vmem>>, %arg18: memref<1x1x32xf32, #tpu.memory_space<vmem>>, %arg19: memref<1x32x32xf32, #tpu.memory_space<vmem>>, %arg20: memref<1x1x32xf32, #tpu.memory_space<vmem>>, %arg21: memref<1x32x1xf32, #tpu.memory_space<vmem>>, %arg22: memref<32x32xf32, #tpu.memory_space<vmem>>, %arg23: memref<1x32xf32, #tpu.memory_space<vmem>>, %arg24: memref<32x1xf32, #tpu.memory_space<vmem>>, %arg25: memref<1x1xf32, #tpu.memory_space<vmem>>, %arg26: memref<128x3xf32, #tpu.memory_space<vmem>>, %arg27: memref<8x1xf32, #tpu.memory_space<vmem>>, %arg28: memref<128x35xf32, #tpu.memory_space<vmem>>, %arg29: memref<128x32xf32, #tpu.memory_space<vmem>>, %arg30: memref<128x3xf32, #tpu.memory_space<vmem>>) attributes {dimension_semantics = [#tpu.dimension_semantics<arbitrary>, #tpu.dimension_semantics<arbitrary>], iteration_bounds = array<i64: 3, 1>, scalar_prefetch = 0 : i64, scratch_operands = 3 : i64, tpu.core_type = #tpu.core_type<tc>, window_params = [{pipeline_mode = #tpu.pipeline_mode<synchronous>, transform_indices = @transform_0, window_bounds = array<i64: 128, 6>}, {pipeline_mode = #tpu.pipeline_mode<synchronous>, transform_indices = @transform_1, window_bounds = array<i64: 128, 3>}, {transform_indices = @transform_2, window_bounds = array<i64: 24, 1>}, {transform_indices = @transform_3, window_bounds = array<i64: 24, 1>}, {transform_indices = @transform_4, window_bounds = array<i64: 24, 2>}, {pipeline_mode = #tpu.pipeline_mode<synchronous>, transform_indices = @transform_5, window_bounds = array<i64: 128, 1>}, {pipeline_mode = #tpu.pipeline_mode<synchronous>, transform_indices = @transform_6, window_bounds = array<i64: 128, 1>}, {pipeline_mode = #tpu.pipeline_mode<synchronous>, transform_indices = @transform_7, window_bounds = array<i64: 6, 32>}, {pipeline_mode = #tpu.pipeline_mode<synchronous>, transform_indices = @transform_8, window_bounds = array<i64: 1, 32>}, {transform_indices = @transform_9, window_bounds = array<i64: 1, 67, 32>}, {transform_indices = @transform_10, window_bounds = array<i64: 1, 1, 32>}, {transform_indices = @transform_11, window_bounds = array<i64: 1, 32, 32>}, {transform_indices = @transform_12, window_bounds = array<i64: 1, 1, 32>}, {transform_indices = @transform_13, window_bounds = array<i64: 1, 64, 32>}, {transform_indices = @transform_14, window_bounds = array<i64: 1, 1, 32>}, {transform_indices = @transform_15, window_bounds = array<i64: 1, 32, 32>}, {transform_indices = @transform_16, window_bounds = array<i64: 1, 1, 32>}, {transform_indices = @transform_17, window_bounds = array<i64: 1, 32, 32>}, {transform_indices = @transform_18, window_bounds = array<i64: 1, 1, 32>}, {transform_indices = @transform_19, window_bounds = array<i64: 1, 32, 1>}, {pipeline_mode = #tpu.pipeline_mode<synchronous>, transform_indices = @transform_20, window_bounds = array<i64: 32, 32>}, {pipeline_mode = #tpu.pipeline_mode<synchronous>, transform_indices = @transform_21, window_bounds = array<i64: 1, 32>}, {pipeline_mode = #tpu.pipeline_mode<synchronous>, transform_indices = @transform_22, window_bounds = array<i64: 32, 1>}, {pipeline_mode = #tpu.pipeline_mode<synchronous>, transform_indices = @transform_23, window_bounds = array<i64: 1, 1>}, {pipeline_mode = #tpu.pipeline_mode<synchronous>, transform_indices = @transform_24, window_bounds = array<i64: 128, 3>}, {pipeline_mode = #tpu.pipeline_mode<synchronous>, transform_indices = @transform_25, window_bounds = array<i64: 8, 1>}]} {
    %c2_i32 = arith.constant 2 : i32
    %0 = arith.cmpi eq, %arg0, %c2_i32 : i32
    %c0_i32 = arith.constant 0 : i32
    %1 = arith.cmpi eq, %arg1, %c0_i32 : i32
    %c0_i32_0 = arith.constant 0 : i32
    %2 = arith.cmpi eq, %arg0, %c0_i32_0 : i32
    %c0_i32_1 = arith.constant 0 : i32
    %3 = arith.cmpi eq, %arg1, %c0_i32_1 : i32
    %4 = arith.andi %2, %3 : i1
    %5 = arith.extui %4 : i1 to i32
    %c0_i32_2 = arith.constant 0 : i32
    %6 = arith.cmpi ne, %5, %c0_i32_2 : i32
    scf.if %6 {
      %c0_39 = arith.constant 0 : index
      %c0_40 = arith.constant 0 : index
      %79 = vector.load %arg2[%c0_39, %c0_40] : memref<128x6xf32, #tpu.memory_space<vmem>>, vector<128x6xf32>
      %c0_41 = arith.constant 0 : index
      %c0_42 = arith.constant 0 : index
      %80 = vector.load %arg9[%c0_41, %c0_42] : memref<6x32xf32, #tpu.memory_space<vmem>>, vector<6x32xf32>
      %cst_43 = arith.constant dense<0.000000e+00> : vector<128x32xf32>
      %81 = tpu.matmul %79, %80, %cst_43 {dimension_numbers = #tpu.dot_dimension_numbers<[1], [0], [0], [1], [0, 0, 1, 1], [], []>} : vector<128x6xf32>, vector<6x32xf32>, vector<128x32xf32> -> vector<128x32xf32>
      %c0_44 = arith.constant 0 : index
      %c0_45 = arith.constant 0 : index
      %82 = vector.load %arg10[%c0_44, %c0_45] : memref<1x32xf32, #tpu.memory_space<vmem>>, vector<1x32xf32>
      %83 = vector.broadcast %82 : vector<1x32xf32> to vector<128x32xf32>
      %84 = arith.addf %81, %83 : vector<128x32xf32>
      %c0_46 = arith.constant 0 : index
      %c0_47 = arith.constant 0 : index
      %85 = vector.load %arg3[%c0_46, %c0_47] : memref<128x3xf32, #tpu.memory_space<vmem>>, vector<128x3xf32>
      %86 = tpu.concatenate %84, %85 in 1 : vector<128x32xf32>, vector<128x3xf32> -> vector<128x35xf32>
      %c0_48 = arith.constant 0 : index
      %c0_49 = arith.constant 0 : index
      %87 = vector.load %arg28[%c0_48, %c0_49] : memref<128x35xf32, #tpu.memory_space<vmem>>, vector<128x35xf32>
      tpu.vector_store %arg28[%c0_48, %c0_49], %86 {strides = array<i32>} : memref<128x35xf32, #tpu.memory_space<vmem>>, vector<128x35xf32>,
    } else {
    }
    %c0_i32_3 = arith.constant 0 : i32
    %7 = arith.cmpi eq, %arg1, %c0_i32_3 : i32
    %8 = arith.extui %7 : i1 to i32
    %c0_i32_4 = arith.constant 0 : i32
    %9 = arith.cmpi ne, %8, %c0_i32_4 : i32
    scf.if %9 {
      %cst_39 = arith.constant 0.000000e+00 : f32
      %79 = vector.broadcast %cst_39 : f32 to vector<128x32xf32>
      %c0_40 = arith.constant 0 : index
      %c0_41 = arith.constant 0 : index
      %80 = vector.load %arg29[%c0_40, %c0_41] : memref<128x32xf32, #tpu.memory_space<vmem>>, vector<128x32xf32>
      tpu.vector_store %arg29[%c0_40, %c0_41], %79 {strides = array<i32>} : memref<128x32xf32, #tpu.memory_space<vmem>>, vector<128x32xf32>,
      %cst_42 = arith.constant 0.000000e+00 : f32
      %81 = vector.broadcast %cst_42 : f32 to vector<128x3xf32>
      %c0_43 = arith.constant 0 : index
      %c0_44 = arith.constant 0 : index
      %82 = vector.load %arg30[%c0_43, %c0_44] : memref<128x3xf32, #tpu.memory_space<vmem>>, vector<128x3xf32>
      tpu.vector_store %arg30[%c0_43, %c0_44], %81 {strides = array<i32>} : memref<128x3xf32, #tpu.memory_space<vmem>>, vector<128x3xf32>,
    } else {
    }
    %c0 = arith.constant 0 : index
    %c0_5 = arith.constant 0 : index
    %10 = vector.load %arg28[%c0, %c0_5] : memref<128x35xf32, #tpu.memory_space<vmem>>, vector<128x35xf32>
    %11 = tpu.iota {dimensions = array<i32: 1>} : vector<24x128xi32>
    %c0_6 = arith.constant 0 : index
    %c0_7 = arith.constant 0 : index
    %12 = vector.load %arg4[%c0_6, %c0_7] : memref<24x1xi32, #tpu.memory_space<vmem>>, vector<24x1xi32>
    %13 = vector.broadcast %12 : vector<24x1xi32> to vector<24x128xi32>
    %14 = arith.cmpi eq, %13, %11 : vector<24x128xi32>
    %15 = arith.extui %14 : vector<24x128xi1> to vector<24x128xi32>
    %16 = arith.sitofp %15 : vector<24x128xi32> to vector<24x128xf32>
    %c0_8 = arith.constant 0 : index
    %c0_9 = arith.constant 0 : index
    %17 = vector.load %arg5[%c0_8, %c0_9] : memref<24x1xi32, #tpu.memory_space<vmem>>, vector<24x1xi32>
    %18 = vector.broadcast %17 : vector<24x1xi32> to vector<24x128xi32>
    %19 = arith.cmpi eq, %18, %11 : vector<24x128xi32>
    %20 = arith.extui %19 : vector<24x128xi1> to vector<24x128xi32>
    %21 = arith.sitofp %20 : vector<24x128xi32> to vector<24x128xf32>
    %cst = arith.constant dense<0.000000e+00> : vector<24x35xf32>
    %22 = tpu.matmul %16, %10, %cst {dimension_numbers = #tpu.dot_dimension_numbers<[1], [0], [0], [1], [0, 0, 1, 1], [], []>} : vector<24x128xf32>, vector<128x35xf32>, vector<24x35xf32> -> vector<24x35xf32>
    %cst_10 = arith.constant dense<0.000000e+00> : vector<24x35xf32>
    %23 = tpu.matmul %21, %10, %cst_10 {dimension_numbers = #tpu.dot_dimension_numbers<[1], [0], [0], [1], [0, 0, 1, 1], [], []>} : vector<24x128xf32>, vector<128x35xf32>, vector<24x35xf32> -> vector<24x35xf32>
    %24 = vector.extract_strided_slice %22 {offsets = [0, 0], sizes = [24, 32], strides = [1, 1]} : vector<24x35xf32> to vector<24x32xf32>
    %25 = vector.extract_strided_slice %22 {offsets = [0, 32], sizes = [24, 3], strides = [1, 1]} : vector<24x35xf32> to vector<24x3xf32>
    %26 = vector.extract_strided_slice %23 {offsets = [0, 0], sizes = [24, 32], strides = [1, 1]} : vector<24x35xf32> to vector<24x32xf32>
    %27 = vector.extract_strided_slice %23 {offsets = [0, 32], sizes = [24, 3], strides = [1, 1]} : vector<24x35xf32> to vector<24x3xf32>
    %28 = arith.subf %25, %27 : vector<24x3xf32>
    %29 = arith.mulf %28, %28 : vector<24x3xf32>
    %cst_11 = arith.constant dense<0.000000e+00> : vector<24xf32>
    %30 = vector.multi_reduction <add>, %29, %cst_11 [1] : vector<24x3xf32> to vector<24xf32>
    %31 = vector.shape_cast %30 : vector<24xf32> to vector<24x1xf32>
    %c0_12 = arith.constant 0 : index
    %c0_13 = arith.constant 0 : index
    %c0_14 = arith.constant 0 : index
    %32 = vector.load %arg11[%c0_12, %c0_13, %c0_14] : memref<1x67x32xf32, #tpu.memory_space<vmem>>, vector<1x67x32xf32>
    %33 = vector.shape_cast %32 : vector<1x67x32xf32> to vector<67x32xf32>
    %34 = vector.extract_strided_slice %33 {offsets = [0, 0], sizes = [32, 32], strides = [1, 1]} : vector<67x32xf32> to vector<32x32xf32>
    %cst_15 = arith.constant dense<0.000000e+00> : vector<24x32xf32>
    %35 = tpu.matmul %24, %34, %cst_15 {dimension_numbers = #tpu.dot_dimension_numbers<[1], [0], [0], [1], [0, 0, 1, 1], [], []>} : vector<24x32xf32>, vector<32x32xf32>, vector<24x32xf32> -> vector<24x32xf32>
    %36 = vector.extract_strided_slice %33 {offsets = [32, 0], sizes = [32, 32], strides = [1, 1]} : vector<67x32xf32> to vector<32x32xf32>
    %cst_16 = arith.constant dense<0.000000e+00> : vector<24x32xf32>
    %37 = tpu.matmul %26, %36, %cst_16 {dimension_numbers = #tpu.dot_dimension_numbers<[1], [0], [0], [1], [0, 0, 1, 1], [], []>} : vector<24x32xf32>, vector<32x32xf32>, vector<24x32xf32> -> vector<24x32xf32>
    %38 = arith.addf %35, %37 : vector<24x32xf32>
    %39 = vector.extract_strided_slice %33 {offsets = [64, 0], sizes = [1, 32], strides = [1, 1]} : vector<67x32xf32> to vector<1x32xf32>
    %40 = vector.broadcast %31 : vector<24x1xf32> to vector<24x32xf32>
    %41 = vector.broadcast %39 : vector<1x32xf32> to vector<24x32xf32>
    %42 = arith.mulf %40, %41 : vector<24x32xf32>
    %43 = arith.addf %38, %42 : vector<24x32xf32>
    %c0_17 = arith.constant 0 : index
    %c0_18 = arith.constant 0 : index
    %44 = vector.load %arg6[%c0_17, %c0_18] : memref<24x2xf32, #tpu.memory_space<vmem>>, vector<24x2xf32>
    %45 = vector.extract_strided_slice %33 {offsets = [65, 0], sizes = [2, 32], strides = [1, 1]} : vector<67x32xf32> to vector<2x32xf32>
    %cst_19 = arith.constant dense<0.000000e+00> : vector<24x32xf32>
    %46 = tpu.matmul %44, %45, %cst_19 {dimension_numbers = #tpu.dot_dimension_numbers<[1], [0], [0], [1], [0, 0, 1, 1], [], []>} : vector<24x2xf32>, vector<2x32xf32>, vector<24x32xf32> -> vector<24x32xf32>
    %47 = arith.addf %43, %46 : vector<24x32xf32>
    %c0_20 = arith.constant 0 : index
    %c0_21 = arith.constant 0 : index
    %c0_22 = arith.constant 0 : index
    %48 = vector.load %arg12[%c0_20, %c0_21, %c0_22] : memref<1x1x32xf32, #tpu.memory_space<vmem>>, vector<1x1x32xf32>
    %49 = vector.shape_cast %48 : vector<1x1x32xf32> to vector<1x32xf32>
    %50 = vector.broadcast %49 : vector<1x32xf32> to vector<24x32xf32>
    %51 = arith.addf %47, %50 : vector<24x32xf32>
    %52 = arith.negf %51 : vector<24x32xf32>
    %53 = math.exp %52 : vector<24x32xf32>
    %cst_23 = arith.constant 1.000000e+00 : f32
    %54 = vector.broadcast %cst_23 : f32 to vector<24x32xf32>
    %55 = arith.addf %54, %53 : vector<24x32xf32>
    %56 = arith.divf %54, %55 : vector<24x32xf32>
    %57 = arith.mulf %51, %56 : vector<24x32xf32>
    %c0_24 = arith.constant 0 : index
    %c0_25 = arith.constant 0 : index
    %c0_26 = arith.constant 0 : index
    %58 = vector.load %arg13[%c0_24, %c0_25, %c0_26] : memref<1x32x32xf32, #tpu.memory_space<vmem>>, vector<1x32x32xf32>
    %59 = vector.shape_cast %58 : vector<1x32x32xf32> to vector<32x32xf32>
    %cst_27 = arith.constant dense<0.000000e+00> : vector<24x32xf32>
    %60 = tpu.matmul %57, %59, %cst_27 {dimension_numbers = #tpu.dot_dimension_numbers<[1], [0], [0], [1], [0, 0, 1, 1], [], []>} : vector<24x32xf32>, vector<32x32xf32>, vector<24x32xf32> -> vector<24x32xf32>
    %c0_28 = arith.constant 0 : index
    %c0_29 = arith.constant 0 : index
    %c0_30 = arith.constant 0 : index
    %61 = vector.load %arg14[%c0_28, %c0_29, %c0_30] : memref<1x1x32xf32, #tpu.memory_space<vmem>>, vector<1x1x32xf32>
    %62 = vector.shape_cast %61 : vector<1x1x32xf32> to vector<1x32xf32>
    %63 = vector.broadcast %62 : vector<1x32xf32> to vector<24x32xf32>
    %64 = arith.addf %60, %63 : vector<24x32xf32>
    %65 = arith.negf %64 : vector<24x32xf32>
    %66 = math.exp %65 : vector<24x32xf32>
    %cst_31 = arith.constant 1.000000e+00 : f32
    %67 = vector.broadcast %cst_31 : f32 to vector<24x32xf32>
    %68 = arith.addf %67, %66 : vector<24x32xf32>
    %69 = arith.divf %67, %68 : vector<24x32xf32>
    %70 = arith.mulf %64, %69 : vector<24x32xf32>
    %c0_32 = arith.constant 0 : index
    %c0_33 = arith.constant 0 : index
    %71 = vector.load %arg29[%c0_32, %c0_33] : memref<128x32xf32, #tpu.memory_space<vmem>>, vector<128x32xf32>
    %cst_34 = arith.constant dense<0.000000e+00> : vector<128x32xf32>
    %72 = tpu.matmul %16, %70, %cst_34 {dimension_numbers = #tpu.dot_dimension_numbers<[0], [0], [1], [1], [0, 1, 1, 1], [], []>} : vector<24x128xf32>, vector<24x32xf32>, vector<128x32xf32> -> vector<128x32xf32>
    %73 = arith.addf %71, %72 : vector<128x32xf32>
    %c0_35 = arith.constant 0 : index
    %c0_36 = arith.constant 0 : index
    %74 = vector.load %arg29[%c0_35, %c0_36] : memref<128x32xf32, #tpu.memory_space<vmem>>, vector<128x32xf32>
    tpu.vector_store %arg29[%c0_35, %c0_36], %73 {strides = array<i32>} : memref<128x32xf32, #tpu.memory_space<vmem>>, vector<128x32xf32>,
    %75 = arith.extui %0 : i1 to i32
    %c0_i32_37 = arith.constant 0 : i32
    %76 = arith.cmpi ne, %75, %c0_i32_37 : i32
    scf.if %76 {
      %c0_39 = arith.constant 0 : index
      %c0_40 = arith.constant 0 : index
      %c0_41 = arith.constant 0 : index
      %79 = vector.load %arg19[%c0_39, %c0_40, %c0_41] : memref<1x32x32xf32, #tpu.memory_space<vmem>>, vector<1x32x32xf32>
      %80 = vector.shape_cast %79 : vector<1x32x32xf32> to vector<32x32xf32>
      %cst_42 = arith.constant dense<0.000000e+00> : vector<24x32xf32>
      %81 = tpu.matmul %70, %80, %cst_42 {dimension_numbers = #tpu.dot_dimension_numbers<[1], [0], [0], [1], [0, 0, 1, 1], [], []>} : vector<24x32xf32>, vector<32x32xf32>, vector<24x32xf32> -> vector<24x32xf32>
      %c0_43 = arith.constant 0 : index
      %c0_44 = arith.constant 0 : index
      %c0_45 = arith.constant 0 : index
      %82 = vector.load %arg20[%c0_43, %c0_44, %c0_45] : memref<1x1x32xf32, #tpu.memory_space<vmem>>, vector<1x1x32xf32>
      %83 = vector.shape_cast %82 : vector<1x1x32xf32> to vector<1x32xf32>
      %84 = vector.broadcast %83 : vector<1x32xf32> to vector<24x32xf32>
      %85 = arith.addf %81, %84 : vector<24x32xf32>
      %86 = arith.negf %85 : vector<24x32xf32>
      %87 = math.exp %86 : vector<24x32xf32>
      %cst_46 = arith.constant 1.000000e+00 : f32
      %88 = vector.broadcast %cst_46 : f32 to vector<24x32xf32>
      %89 = arith.addf %88, %87 : vector<24x32xf32>
      %90 = arith.divf %88, %89 : vector<24x32xf32>
      %91 = arith.mulf %85, %90 : vector<24x32xf32>
      %c0_47 = arith.constant 0 : index
      %c0_48 = arith.constant 0 : index
      %c0_49 = arith.constant 0 : index
      %92 = vector.load %arg21[%c0_47, %c0_48, %c0_49] : memref<1x32x1xf32, #tpu.memory_space<vmem>>, vector<1x32x1xf32>
      %93 = vector.shape_cast %92 : vector<1x32x1xf32> to vector<32x1xf32>
      %cst_50 = arith.constant dense<0.000000e+00> : vector<24x1xf32>
      %94 = tpu.matmul %91, %93, %cst_50 {dimension_numbers = #tpu.dot_dimension_numbers<[1], [0], [0], [1], [0, 0, 1, 1], [], []>} : vector<24x32xf32>, vector<32x1xf32>, vector<24x1xf32> -> vector<24x1xf32>
      %c0_51 = arith.constant 0 : index
      %c0_52 = arith.constant 0 : index
      %95 = vector.load %arg30[%c0_51, %c0_52] : memref<128x3xf32, #tpu.memory_space<vmem>>, vector<128x3xf32>
      %96 = vector.broadcast %94 : vector<24x1xf32> to vector<24x3xf32>
      %97 = arith.mulf %28, %96 : vector<24x3xf32>
      %cst_53 = arith.constant dense<0.000000e+00> : vector<128x3xf32>
      %98 = tpu.matmul %16, %97, %cst_53 {dimension_numbers = #tpu.dot_dimension_numbers<[0], [0], [1], [1], [0, 1, 1, 1], [], []>} : vector<24x128xf32>, vector<24x3xf32>, vector<128x3xf32> -> vector<128x3xf32>
      %99 = arith.addf %95, %98 : vector<128x3xf32>
      %c0_54 = arith.constant 0 : index
      %c0_55 = arith.constant 0 : index
      %100 = vector.load %arg30[%c0_54, %c0_55] : memref<128x3xf32, #tpu.memory_space<vmem>>, vector<128x3xf32>
      tpu.vector_store %arg30[%c0_54, %c0_55], %99 {strides = array<i32>} : memref<128x3xf32, #tpu.memory_space<vmem>>, vector<128x3xf32>,
    } else {
    }
    %77 = arith.extui %1 : i1 to i32
    %c0_i32_38 = arith.constant 0 : i32
    %78 = arith.cmpi ne, %77, %c0_i32_38 : i32
    scf.if %78 {
      %79 = vector.extract_strided_slice %10 {offsets = [0, 0], sizes = [128, 32], strides = [1, 1]} : vector<128x35xf32> to vector<128x32xf32>
      %80 = vector.extract_strided_slice %10 {offsets = [0, 32], sizes = [128, 3], strides = [1, 1]} : vector<128x35xf32> to vector<128x3xf32>
      %c0_39 = arith.constant 0 : index
      %c0_40 = arith.constant 0 : index
      %81 = vector.load %arg29[%c0_39, %c0_40] : memref<128x32xf32, #tpu.memory_space<vmem>>, vector<128x32xf32>
      %c0_41 = arith.constant 0 : index
      %c0_42 = arith.constant 0 : index
      %c0_43 = arith.constant 0 : index
      %82 = vector.load %arg15[%c0_41, %c0_42, %c0_43] : memref<1x64x32xf32, #tpu.memory_space<vmem>>, vector<1x64x32xf32>
      %83 = vector.shape_cast %82 : vector<1x64x32xf32> to vector<64x32xf32>
      %84 = vector.extract_strided_slice %83 {offsets = [0, 0], sizes = [32, 32], strides = [1, 1]} : vector<64x32xf32> to vector<32x32xf32>
      %cst_44 = arith.constant dense<0.000000e+00> : vector<128x32xf32>
      %85 = tpu.matmul %79, %84, %cst_44 {dimension_numbers = #tpu.dot_dimension_numbers<[1], [0], [0], [1], [0, 0, 1, 1], [], []>} : vector<128x32xf32>, vector<32x32xf32>, vector<128x32xf32> -> vector<128x32xf32>
      %86 = vector.extract_strided_slice %83 {offsets = [32, 0], sizes = [32, 32], strides = [1, 1]} : vector<64x32xf32> to vector<32x32xf32>
      %cst_45 = arith.constant dense<0.000000e+00> : vector<128x32xf32>
      %87 = tpu.matmul %81, %86, %cst_45 {dimension_numbers = #tpu.dot_dimension_numbers<[1], [0], [0], [1], [0, 0, 1, 1], [], []>} : vector<128x32xf32>, vector<32x32xf32>, vector<128x32xf32> -> vector<128x32xf32>
      %88 = arith.addf %85, %87 : vector<128x32xf32>
      %c0_46 = arith.constant 0 : index
      %c0_47 = arith.constant 0 : index
      %c0_48 = arith.constant 0 : index
      %89 = vector.load %arg16[%c0_46, %c0_47, %c0_48] : memref<1x1x32xf32, #tpu.memory_space<vmem>>, vector<1x1x32xf32>
      %90 = vector.shape_cast %89 : vector<1x1x32xf32> to vector<1x32xf32>
      %91 = vector.broadcast %90 : vector<1x32xf32> to vector<128x32xf32>
      %92 = arith.addf %88, %91 : vector<128x32xf32>
      %93 = arith.negf %92 : vector<128x32xf32>
      %94 = math.exp %93 : vector<128x32xf32>
      %cst_49 = arith.constant 1.000000e+00 : f32
      %95 = vector.broadcast %cst_49 : f32 to vector<128x32xf32>
      %96 = arith.addf %95, %94 : vector<128x32xf32>
      %97 = arith.divf %95, %96 : vector<128x32xf32>
      %98 = arith.mulf %92, %97 : vector<128x32xf32>
      %c0_50 = arith.constant 0 : index
      %c0_51 = arith.constant 0 : index
      %c0_52 = arith.constant 0 : index
      %99 = vector.load %arg17[%c0_50, %c0_51, %c0_52] : memref<1x32x32xf32, #tpu.memory_space<vmem>>, vector<1x32x32xf32>
      %100 = vector.shape_cast %99 : vector<1x32x32xf32> to vector<32x32xf32>
      %cst_53 = arith.constant dense<0.000000e+00> : vector<128x32xf32>
      %101 = tpu.matmul %98, %100, %cst_53 {dimension_numbers = #tpu.dot_dimension_numbers<[1], [0], [0], [1], [0, 0, 1, 1], [], []>} : vector<128x32xf32>, vector<32x32xf32>, vector<128x32xf32> -> vector<128x32xf32>
      %c0_54 = arith.constant 0 : index
      %c0_55 = arith.constant 0 : index
      %c0_56 = arith.constant 0 : index
      %102 = vector.load %arg18[%c0_54, %c0_55, %c0_56] : memref<1x1x32xf32, #tpu.memory_space<vmem>>, vector<1x1x32xf32>
      %103 = vector.shape_cast %102 : vector<1x1x32xf32> to vector<1x32xf32>
      %104 = vector.broadcast %103 : vector<1x32xf32> to vector<128x32xf32>
      %105 = arith.addf %101, %104 : vector<128x32xf32>
      %106 = arith.addf %79, %105 : vector<128x32xf32>
      %107 = tpu.concatenate %106, %80 in 1 : vector<128x32xf32>, vector<128x3xf32> -> vector<128x35xf32>
      %c0_57 = arith.constant 0 : index
      %c0_58 = arith.constant 0 : index
      %108 = vector.load %arg28[%c0_57, %c0_58] : memref<128x35xf32, #tpu.memory_space<vmem>>, vector<128x35xf32>
      tpu.vector_store %arg28[%c0_57, %c0_58], %107 {strides = array<i32>} : memref<128x35xf32, #tpu.memory_space<vmem>>, vector<128x35xf32>,
      %109 = arith.extui %0 : i1 to i32
      %c0_i32_59 = arith.constant 0 : i32
      %110 = arith.cmpi ne, %109, %c0_i32_59 : i32
      scf.if %110 {
        %c0_60 = arith.constant 0 : index
        %c0_61 = arith.constant 0 : index
        %111 = vector.load %arg30[%c0_60, %c0_61] : memref<128x3xf32, #tpu.memory_space<vmem>>, vector<128x3xf32>
        %c0_62 = arith.constant 0 : index
        %c0_63 = arith.constant 0 : index
        %112 = vector.load %arg7[%c0_62, %c0_63] : memref<128x1xf32, #tpu.memory_space<vmem>>, vector<128x1xf32>
        %113 = vector.broadcast %112 : vector<128x1xf32> to vector<128x3xf32>
        %114 = arith.mulf %111, %113 : vector<128x3xf32>
        %115 = arith.addf %80, %114 : vector<128x3xf32>
        %c0_64 = arith.constant 0 : index
        %c0_65 = arith.constant 0 : index
        %116 = vector.load %arg26[%c0_64, %c0_65] : memref<128x3xf32, #tpu.memory_space<vmem>>, vector<128x3xf32>
        tpu.vector_store %arg26[%c0_64, %c0_65], %115 {strides = array<i32>} : memref<128x3xf32, #tpu.memory_space<vmem>>, vector<128x3xf32>,
        %c0_66 = arith.constant 0 : index
        %c0_67 = arith.constant 0 : index
        %117 = vector.load %arg22[%c0_66, %c0_67] : memref<32x32xf32, #tpu.memory_space<vmem>>, vector<32x32xf32>
        %cst_68 = arith.constant dense<0.000000e+00> : vector<128x32xf32>
        %118 = tpu.matmul %106, %117, %cst_68 {dimension_numbers = #tpu.dot_dimension_numbers<[1], [0], [0], [1], [0, 0, 1, 1], [], []>} : vector<128x32xf32>, vector<32x32xf32>, vector<128x32xf32> -> vector<128x32xf32>
        %c0_69 = arith.constant 0 : index
        %c0_70 = arith.constant 0 : index
        %119 = vector.load %arg23[%c0_69, %c0_70] : memref<1x32xf32, #tpu.memory_space<vmem>>, vector<1x32xf32>
        %120 = vector.broadcast %119 : vector<1x32xf32> to vector<128x32xf32>
        %121 = arith.addf %118, %120 : vector<128x32xf32>
        %122 = arith.negf %121 : vector<128x32xf32>
        %123 = math.exp %122 : vector<128x32xf32>
        %cst_71 = arith.constant 1.000000e+00 : f32
        %124 = vector.broadcast %cst_71 : f32 to vector<128x32xf32>
        %125 = arith.addf %124, %123 : vector<128x32xf32>
        %126 = arith.divf %124, %125 : vector<128x32xf32>
        %127 = arith.mulf %121, %126 : vector<128x32xf32>
        %c0_72 = arith.constant 0 : index
        %c0_73 = arith.constant 0 : index
        %128 = vector.load %arg24[%c0_72, %c0_73] : memref<32x1xf32, #tpu.memory_space<vmem>>, vector<32x1xf32>
        %cst_74 = arith.constant dense<0.000000e+00> : vector<128x1xf32>
        %129 = tpu.matmul %127, %128, %cst_74 {dimension_numbers = #tpu.dot_dimension_numbers<[1], [0], [0], [1], [0, 0, 1, 1], [], []>} : vector<128x32xf32>, vector<32x1xf32>, vector<128x1xf32> -> vector<128x1xf32>
        %c0_75 = arith.constant 0 : index
        %c0_76 = arith.constant 0 : index
        %130 = vector.load %arg25[%c0_75, %c0_76] : memref<1x1xf32, #tpu.memory_space<vmem>>, vector<1x1xf32>
        %131 = vector.broadcast %130 : vector<1x1xf32> to vector<128x1xf32>
        %132 = arith.addf %129, %131 : vector<128x1xf32>
        %133 = tpu.iota {dimensions = array<i32: 1>} : vector<128x8xi32>
        %c0_77 = arith.constant 0 : index
        %c0_78 = arith.constant 0 : index
        %134 = vector.load %arg8[%c0_77, %c0_78] : memref<128x1xi32, #tpu.memory_space<vmem>>, vector<128x1xi32>
        %135 = vector.broadcast %134 : vector<128x1xi32> to vector<128x8xi32>
        %136 = arith.cmpi eq, %135, %133 : vector<128x8xi32>
        %137 = arith.extui %136 : vector<128x8xi1> to vector<128x8xi32>
        %138 = arith.sitofp %137 : vector<128x8xi32> to vector<128x8xf32>
        %cst_79 = arith.constant dense<0.000000e+00> : vector<8x1xf32>
        %139 = tpu.matmul %138, %132, %cst_79 {dimension_numbers = #tpu.dot_dimension_numbers<[0], [0], [1], [1], [0, 1, 1, 1], [], []>} : vector<128x8xf32>, vector<128x1xf32>, vector<8x1xf32> -> vector<8x1xf32>
        %cst_80 = arith.constant 2.000000e+00 : f32
        %140 = vector.broadcast %cst_80 : f32 to vector<8x1xf32>
        %141 = arith.mulf %139, %140 : vector<8x1xf32>
        %cst_81 = arith.constant 5.000000e-01 : f32
        %142 = vector.broadcast %cst_81 : f32 to vector<8x1xf32>
        %143 = arith.addf %141, %142 : vector<8x1xf32>
        %c0_82 = arith.constant 0 : index
        %c0_83 = arith.constant 0 : index
        %144 = vector.load %arg27[%c0_82, %c0_83] : memref<8x1xf32, #tpu.memory_space<vmem>>, vector<8x1xf32>
        tpu.vector_store %arg27[%c0_82, %c0_83], %143 {strides = array<i32>} : memref<8x1xf32, #tpu.memory_space<vmem>>, vector<8x1xf32>,
      } else {
      }
    } else {
    }
    return
  }
  func.func @transform_0(%arg0: i32, %arg1: i32) -> (i32, i32) {
    %c0_i32 = arith.constant 0 : i32
    %c0_i32_0 = arith.constant 0 : i32
    %c0_i32_1 = arith.constant 0 : i32
    return %c0_i32, %c0_i32_0 : i32, i32
  }
  func.func @transform_1(%arg0: i32, %arg1: i32) -> (i32, i32) {
    %c0_i32 = arith.constant 0 : i32
    %c0_i32_0 = arith.constant 0 : i32
    %c0_i32_1 = arith.constant 0 : i32
    return %c0_i32, %c0_i32_0 : i32, i32
  }
  func.func @transform_2(%arg0: i32, %arg1: i32) -> (i32, i32) {
    %c0_i32 = arith.constant 0 : i32
    %c0_i32_0 = arith.constant 0 : i32
    return %arg1, %c0_i32 : i32, i32
  }
  func.func @transform_3(%arg0: i32, %arg1: i32) -> (i32, i32) {
    %c0_i32 = arith.constant 0 : i32
    %c0_i32_0 = arith.constant 0 : i32
    return %arg1, %c0_i32 : i32, i32
  }
  func.func @transform_4(%arg0: i32, %arg1: i32) -> (i32, i32) {
    %c0_i32 = arith.constant 0 : i32
    %c0_i32_0 = arith.constant 0 : i32
    return %arg1, %c0_i32 : i32, i32
  }
  func.func @transform_5(%arg0: i32, %arg1: i32) -> (i32, i32) {
    %c0_i32 = arith.constant 0 : i32
    %c0_i32_0 = arith.constant 0 : i32
    %c0_i32_1 = arith.constant 0 : i32
    return %c0_i32, %c0_i32_0 : i32, i32
  }
  func.func @transform_6(%arg0: i32, %arg1: i32) -> (i32, i32) {
    %c0_i32 = arith.constant 0 : i32
    %c0_i32_0 = arith.constant 0 : i32
    %c0_i32_1 = arith.constant 0 : i32
    return %c0_i32, %c0_i32_0 : i32, i32
  }
  func.func @transform_7(%arg0: i32, %arg1: i32) -> (i32, i32) {
    %c0_i32 = arith.constant 0 : i32
    %c0_i32_0 = arith.constant 0 : i32
    %c0_i32_1 = arith.constant 0 : i32
    return %c0_i32, %c0_i32_0 : i32, i32
  }
  func.func @transform_8(%arg0: i32, %arg1: i32) -> (i32, i32) {
    %c0_i32 = arith.constant 0 : i32
    %c0_i32_0 = arith.constant 0 : i32
    %c0_i32_1 = arith.constant 0 : i32
    return %c0_i32, %c0_i32_0 : i32, i32
  }
  func.func @transform_9(%arg0: i32, %arg1: i32) -> (i32, i32, i32) {
    %c0_i32 = arith.constant 0 : i32
    %c0_i32_0 = arith.constant 0 : i32
    %c0_i32_1 = arith.constant 0 : i32
    return %arg0, %c0_i32, %c0_i32_0 : i32, i32, i32
  }
  func.func @transform_10(%arg0: i32, %arg1: i32) -> (i32, i32, i32) {
    %c0_i32 = arith.constant 0 : i32
    %c0_i32_0 = arith.constant 0 : i32
    %c0_i32_1 = arith.constant 0 : i32
    return %arg0, %c0_i32, %c0_i32_0 : i32, i32, i32
  }
  func.func @transform_11(%arg0: i32, %arg1: i32) -> (i32, i32, i32) {
    %c0_i32 = arith.constant 0 : i32
    %c0_i32_0 = arith.constant 0 : i32
    %c0_i32_1 = arith.constant 0 : i32
    return %arg0, %c0_i32, %c0_i32_0 : i32, i32, i32
  }
  func.func @transform_12(%arg0: i32, %arg1: i32) -> (i32, i32, i32) {
    %c0_i32 = arith.constant 0 : i32
    %c0_i32_0 = arith.constant 0 : i32
    %c0_i32_1 = arith.constant 0 : i32
    return %arg0, %c0_i32, %c0_i32_0 : i32, i32, i32
  }
  func.func @transform_13(%arg0: i32, %arg1: i32) -> (i32, i32, i32) {
    %c0_i32 = arith.constant 0 : i32
    %c0_i32_0 = arith.constant 0 : i32
    %c0_i32_1 = arith.constant 0 : i32
    return %arg0, %c0_i32, %c0_i32_0 : i32, i32, i32
  }
  func.func @transform_14(%arg0: i32, %arg1: i32) -> (i32, i32, i32) {
    %c0_i32 = arith.constant 0 : i32
    %c0_i32_0 = arith.constant 0 : i32
    %c0_i32_1 = arith.constant 0 : i32
    return %arg0, %c0_i32, %c0_i32_0 : i32, i32, i32
  }
  func.func @transform_15(%arg0: i32, %arg1: i32) -> (i32, i32, i32) {
    %c0_i32 = arith.constant 0 : i32
    %c0_i32_0 = arith.constant 0 : i32
    %c0_i32_1 = arith.constant 0 : i32
    return %arg0, %c0_i32, %c0_i32_0 : i32, i32, i32
  }
  func.func @transform_16(%arg0: i32, %arg1: i32) -> (i32, i32, i32) {
    %c0_i32 = arith.constant 0 : i32
    %c0_i32_0 = arith.constant 0 : i32
    %c0_i32_1 = arith.constant 0 : i32
    return %arg0, %c0_i32, %c0_i32_0 : i32, i32, i32
  }
  func.func @transform_17(%arg0: i32, %arg1: i32) -> (i32, i32, i32) {
    %c0_i32 = arith.constant 0 : i32
    %c0_i32_0 = arith.constant 0 : i32
    %c0_i32_1 = arith.constant 0 : i32
    return %arg0, %c0_i32, %c0_i32_0 : i32, i32, i32
  }
  func.func @transform_18(%arg0: i32, %arg1: i32) -> (i32, i32, i32) {
    %c0_i32 = arith.constant 0 : i32
    %c0_i32_0 = arith.constant 0 : i32
    %c0_i32_1 = arith.constant 0 : i32
    return %arg0, %c0_i32, %c0_i32_0 : i32, i32, i32
  }
  func.func @transform_19(%arg0: i32, %arg1: i32) -> (i32, i32, i32) {
    %c0_i32 = arith.constant 0 : i32
    %c0_i32_0 = arith.constant 0 : i32
    %c0_i32_1 = arith.constant 0 : i32
    return %arg0, %c0_i32, %c0_i32_0 : i32, i32, i32
  }
  func.func @transform_20(%arg0: i32, %arg1: i32) -> (i32, i32) {
    %c0_i32 = arith.constant 0 : i32
    %c0_i32_0 = arith.constant 0 : i32
    %c0_i32_1 = arith.constant 0 : i32
    return %c0_i32, %c0_i32_0 : i32, i32
  }
  func.func @transform_21(%arg0: i32, %arg1: i32) -> (i32, i32) {
    %c0_i32 = arith.constant 0 : i32
    %c0_i32_0 = arith.constant 0 : i32
    %c0_i32_1 = arith.constant 0 : i32
    return %c0_i32, %c0_i32_0 : i32, i32
  }
  func.func @transform_22(%arg0: i32, %arg1: i32) -> (i32, i32) {
    %c0_i32 = arith.constant 0 : i32
    %c0_i32_0 = arith.constant 0 : i32
    %c0_i32_1 = arith.constant 0 : i32
    return %c0_i32, %c0_i32_0 : i32, i32
  }
  func.func @transform_23(%arg0: i32, %arg1: i32) -> (i32, i32) {
    %c0_i32 = arith.constant 0 : i32
    %c0_i32_0 = arith.constant 0 : i32
    %c0_i32_1 = arith.constant 0 : i32
    return %c0_i32, %c0_i32_0 : i32, i32
  }
  func.func @transform_24(%arg0: i32, %arg1: i32) -> (i32, i32) {
    %c0_i32 = arith.constant 0 : i32
    %c0_i32_0 = arith.constant 0 : i32
    %c0_i32_1 = arith.constant 0 : i32
    return %c0_i32, %c0_i32_0 : i32, i32
  }
  func.func @transform_25(%arg0: i32, %arg1: i32) -> (i32, i32) {
    %c0_i32 = arith.constant 0 : i32
    %c0_i32_0 = arith.constant 0 : i32
    %c0_i32_1 = arith.constant 0 : i32
    return %c0_i32, %c0_i32_0 : i32, i32
  }
}

</mosaic_0001>

<bundles_post_ra>
// kernel: tpu_custom_call.1
= control target key start
LH: loop header
LB: loop body
LE: loop exit
PB: predicated region body
PF: predicated region fallthrough
CT: control target
= control target key end

     0   :  { %s4874_s30 = smov 0   ;;  %s6774_s0 = inlined_call_operand.vmem [shape: f32[128,6], index: 0, kind: input, shape index: {}]   ;;  %s6775_s1 = inlined_call_operand.vmem [shape: f32[128,3], index: 1, kind: input, shape index: {}]   ;;  %s6776_s2 = inlined_call_operand.vmem [shape: s32[24,1], index: 2, kind: input, shape index: {}]   ;;  %s6777_s3 = inlined_call_operand.vmem [shape: s32[24,1], index: 3, kind: input, shape index: {}]   ;;  %s6778_s4 = inlined_call_operand.vmem [shape: f32[24,2], index: 4, kind: input, shape index: {}]   ;;  %s6779_s5 = inlined_call_operand.vmem [shape: f32[128,1], index: 5, kind: input, shape index: {}]   ;;  %s6780_s6 = inlined_call_operand.vmem [shape: s32[128,1], index: 6, kind: input, shape index: {}]   ;;  %s6781_s7 = inlined_call_operand.vmem [shape: f32[6,32], index: 7, kind: input, shape index: {}]   ;;  %s6782_s8 = inlined_call_operand.vmem [shape: f32[1,32], index: 8, kind: input, shape index: {}]   ;;  %s6783_s9 = inlined_call_operand.vmem [shape: f32[3,67,32], index: 9, kind: input, shape index: {}]   ;;  %s6784_s10 = inlined_call_operand.vmem [shape: f32[3,1,32], index: 10, kind: input, shape index: {}]   ;;  %s6785_s11 = inlined_call_operand.vmem [shape: f32[3,32,32], index: 11, kind: input, shape index: {}]   ;;  %s6786_s12 = inlined_call_operand.vmem [shape: f32[3,1,32], index: 12, kind: input, shape index: {}]   ;;  %s6787_s13 = inlined_call_operand.vmem [shape: f32[3,64,32], index: 13, kind: input, shape index: {}]   ;;  %s6788_s14 = inlined_call_operand.vmem [shape: f32[3,1,32], index: 14, kind: input, shape index: {}]   ;;  %s6789_s15 = inlined_call_operand.vmem [shape: f32[3,32,32], index: 15, kind: input, shape index: {}]   ;;  %s6790_s16 = inlined_call_operand.vmem [shape: f32[3,1,32], index: 16, kind: input, shape index: {}]   ;;  %s6791_s17 = inlined_call_operand.vmem [shape: f32[3,32,32], index: 17, kind: input, shape index: {}]   ;;  %s6792_s18 = inlined_call_operand.vmem [shape: f32[3,1,32], index: 18, kind: input, shape index: {}]   ;;  %s6793_s19 = inlined_call_operand.vmem [shape: f32[3,32,1], index: 19, kind: input, shape index: {}]   ;;  %s6794_s20 = inlined_call_operand.vmem [shape: f32[32,32], index: 20, kind: input, shape index: {}]   ;;  %s6795_s21 = inlined_call_operand.vmem [shape: f32[1,32], index: 21, kind: input, shape index: {}]   ;;  %s6796_s22 = inlined_call_operand.vmem [shape: f32[32,1], index: 22, kind: input, shape index: {}]   ;;  %s6797_s23 = inlined_call_operand.<no memory space> [shape: f32[1,1], index: 23, kind: input, shape index: {}]   ;;  %s6798_s24 = inlined_call_operand.vmem [shape: f32[128,3], index: 24, kind: output, shape index: {0}]   ;;  %s6799_s25 = inlined_call_operand.vmem [shape: f32[8,1], index: 25, kind: output, shape index: {1}]  }
   0x1   :  { %6811 = sst [smem:[#allocation9_spill]] %s6774_s0  ;;  %v31_v0 = vstv %s6797_s23 }
   0x2   :  { %6812 = sst [smem:[#allocation10_spill]] %s6775_s1  ;;  %32 = vst [vmem:[#allocation5] sm:$0x1] %v31_v0 }
   0x3   :  { %6813 = sst [smem:[#allocation11_spill]] %s6776_s2 }
   0x4   :  { %6814 = sst [smem:[#allocation12_spill]] %s6777_s3 }
   0x5   :  { %6815 = sst [smem:[#allocation13_spill]] %s6778_s4 }
   0x6   :  { %6816 = sst [smem:[#allocation14_spill]] %s6779_s5 }
   0x7   :  { %6817 = sst [smem:[#allocation15_spill]] %s6780_s6  ;;  %s4872_s6 = smov 0  }
   0x8   :  { %6818 = sst [smem:[#allocation16_spill]] %s6781_s7  ;;  %s4876_s7 = smov 0  }
   0x9   :  { %6819 = sst [smem:[#allocation17_spill]] %s6782_s8 }
   0xa   :  { %6820 = sst [smem:[#allocation18_spill]] %s6783_s9 }
   0xb   :  { %6821 = sst [smem:[#allocation19_spill]] %s6785_s11 }
   0xc   :  { %6822 = sst [smem:[#allocation20_spill]] %s6795_s21 }
   0xd   :  { %6823 = sst [smem:[#allocation21_spill]] %s6796_s22 }
   0xe   :  { %6824 = sst [smem:[#allocation22_spill]] %s6798_s24 }
   0xf   :  { %6825 = sst [smem:[#allocation23_spill]] %s6799_s25 }
  0x10 LB: > { %6826 = sst [smem:[#allocation6_spill]] %s4722_s30  ;;  %s50_s23 = sadd.s32 1, %s4722_s30  ;;  %s4726_s7 = sphi %s4876_s7, %s38_s7   ;;  %s4722_s30 = sphi %s4874_s30, %s6883_s30   ;;  %s4718_s6 = sphi %s4872_s6, %s6882_s6  }
  0x11   : > { %6827 = sst [smem:[#allocation7_spill]] %s4726_s7  ;;  %p4204_p0 = scmp.ge.s32.totalorder %s4726_s7, 1 }
  0x12   : > { %p52_p1 = scmp.ge.s32.totalorder %s50_s23, 3  ;;  %p817_p2 = scmp.lt.s32.totalorder %s4726_s7, 4 }
  0x14   : > { %s6885_s23 = smov (%p52_p1, %s50_s23), 0  ;;  %p818_p3 = pnand %p4204_p0, %p817_p2 }
  0x15   : > { %6828 = sst [smem:[#allocation8_spill]] %s6885_s23  ;;  %p953_p4 = scmp.lt.s32.totalorder (!%p818_p3), %s4718_s6, 2 }
  0x16   : > { %821 = sbr.rel (%p818_p3) target bundleno = 2796 (0xaec), region = 116  ;;  %p1000_p5 = scmp.eq.s32.totalorder (!%p818_p3), %s4718_s6, 0 }
  0x17   : > { %s6829_s2 = sld [smem:[#allocation18_spill]] (!%p818_p3) }
  0x18   : > { %s6830_s11 = sld [smem:[#allocation19_spill]] (!%p818_p3) }
  0x1b   : > { %s4895_s3 = scalar_select %p953_p4, %s4718_s6, 2  ;;  %vm1075_vm0 = vcmask (%p1000_p5), 1045504   ;;  %vm1026_vm1 = vcmask (%p1000_p5), 48128   ;;  %vm1224_vm2 = vcmask (%p1000_p5), 261120   ;;  %vm1241_vm3 = vcmask (%p1000_p5), 285696  }
  0x1c   : > { %s6831_s0 = sld [smem:[#allocation10_spill]] (%p1000_p5)  ;;  %s4728_s22 = smov (%p1000_p5), 32  }
  0x1d   : > { %s4483_s26 = smul.u32 72, %s4895_s3  ;;  %s4438_s4 = sshll.u32 %s4895_s3, 5 }
  0x1e   : > { %s4915_s25 = scalar_lea.vmem %s6830_s11, %s4438_s4  ;;  %s4439_s24 = sshll.u32 %s4895_s3, 6 }
  0x1f   : > { %s4910_s23 = scalar_lea.vmem %s6829_s2, %s4483_s26  ;;  %s4925_s28 = scalar_lea.vmem %s6787_s13, %s4439_s24 }
  0x20   : > { %s4930_s26 = scalar_lea.vmem %s6789_s15, %s4438_s4  ;;  %s4939_s11 = scalar_lea.vmem %s6791_s17, %s4438_s4 }
  0x21   : > { %s4948_s1 = scalar_lea.vmem %s6793_s19, %s4438_s4  ;;  %1004 = sbr.rel (!%p1000_p5) target bundleno = 205 (0xcd), region = 120 }
  0x22   : > { %v1146_v1 = vld [vmem:[%s6831_s0 + $0x10] sm:$0xff] (%p1000_p5)  ;;  %v1144_v2 = vld [vmem:[%s6831_s0] sm:$0xff] (%p1000_p5)  ;;  %s6832_s21 = sld [smem:[#allocation16_spill]] (%p1000_p5)  ;;  %v1147_v8 = vld [vmem:[%s6831_s0 + $0x18] sm:$0xff] (%p1000_p5) }
  0x23   : > { %1180 = vrot.lane.b32.xlu1 (%p1000_p5), %v1146_v1, %s4728_s22  ;;  %1176 = vrot.lane.b32.xlu0 (%p1000_p5), %v1144_v2, %s4728_s22  ;;  %s6833_s8 = sld [smem:[#allocation9_spill]] (%p1000_p5)  ;;  %v1145_v9 = vld [vmem:[%s6831_s0 + $0x8] sm:$0xff] (%p1000_p5)  ;;  %v1148_v10 = vld [vmem:[%s6831_s0 + $0x20] sm:$0xff] (%p1000_p5) }
  0x24   : > { %1184 = vrot.lane.b32.xlu2 (%p1000_p5), %v1148_v10, %s4728_s22  ;;  %v1151_v15 = vld [vmem:[%s6831_s0 + $0x38] sm:$0xff] (%p1000_p5)  ;;  %v1150_v16 = vld [vmem:[%s6831_s0 + $0x30] sm:$0xff] (%p1000_p5)  ;;  %v1149_v17 = vld [vmem:[%s6831_s0 + $0x28] sm:$0xff] (%p1000_p5)  ;;  %s6834_s27 = sld [smem:[#allocation17_spill]] (%p1000_p5) }
  0x25   : > { %v1154_v22 = vld [vmem:[%s6831_s0 + $0x50] sm:$0xff] (%p1000_p5)  ;;  %v1153_v23 = vld [vmem:[%s6831_s0 + $0x48] sm:$0xff] (%p1000_p5)  ;;  %v1152_v24 = vld [vmem:[%s6831_s0 + $0x40] sm:$0xff] (%p1000_p5) }
  0x26   : > { %v1157_v29 = vld [vmem:[%s6831_s0 + $0x68] sm:$0xff]  ;;  %v1156_v30 = vld [vmem:[%s6831_s0 + $0x60] sm:$0xff]  ;;  %v1155_v31 = vld [vmem:[%s6831_s0 + $0x58] sm:$0xff] }
  0x27   : > { %v1159_v32 = vld [vmem:[%s6831_s0 + $0x78] sm:$0xff]  ;;  %v1158_v33 = vld [vmem:[%s6831_s0 + $0x70] sm:$0xff] }
  0x28   : > { %v1021_v3 = vld [vmem:[%s6832_s21] sm:$0x3f] }
  0x29   : > { %v1005_v4 = vld [vmem:[%s6833_s8] sm:$0xff]  ;;  %4217 = vmatpush.msk.msra.mxu0 %vm1075_vm0, %v1021_v3  ;;  %4444 = vmatpush.msk.msra.mxu1 %vm1075_vm0, %v1021_v3  ;;  %v1006_v11 = vld [vmem:[%s6833_s8 + $0x8] sm:$0xff]  ;;  %v1007_v18 = vld [vmem:[%s6833_s8 + $0x10] sm:$0xff] }
  0x2a   : > { %v1009_v5 = vld [vmem:[%s6833_s8 + $0x20] sm:$0xff]  ;;  %4445 = vmatpush.msk.msra.mxu2 %vm1075_vm0, %v1021_v3  ;;  %4446 = vmatpush.msk.msra.mxu3 %vm1075_vm0, %v1021_v3  ;;  %v1010_v12 = vld [vmem:[%s6833_s8 + $0x28] sm:$0xff]  ;;  %v1011_v19 = vld [vmem:[%s6833_s8 + $0x30] sm:$0xff] }
  0x2b   : > { %v1013_v6 = vld [vmem:[%s6833_s8 + $0x40] sm:$0xff]  ;;  %4218 = vmatmul.msk.f32.vlgmr.msra.gmra.mxu0 %vm1026_vm1, %v1005_v4  ;;  %4222 = vmatmul.msk.f32.vlgmr.msra.gmra.mxu1 %vm1026_vm1, %v1009_v5  ;;  %v1014_v13 = vld [vmem:[%s6833_s8 + $0x48] sm:$0xff]  ;;  %v1015_v20 = vld [vmem:[%s6833_s8 + $0x50] sm:$0xff] }
  0x2c   : > { %v1017_v7 = vld [vmem:[%s6833_s8 + $0x60] sm:$0xff]  ;;  %4226 = vmatmul.msk.f32.vlgmr.msra.gmra.mxu2 %vm1026_vm1, %v1013_v6  ;;  %1182 = vrot.lane.b32.xlu1 %v1147_v8, %s4728_s22  ;;  %v1018_v14 = vld [vmem:[%s6833_s8 + $0x68] sm:$0xff]  ;;  %v1019_v21 = vld [vmem:[%s6833_s8 + $0x70] sm:$0xff] }
  0x2d   : > { %4230 = vmatmul.msk.f32.vlgmr.msra.gmra.mxu3 %vm1026_vm1, %v1017_v7  ;;  %1178 = vrot.lane.b32.xlu0 %v1145_v9, %s4728_s22  ;;  %v1008_v25 = vld [vmem:[%s6833_s8 + $0x18] sm:$0xff]  ;;  %v5088_v40 = vld [vmem:[%s6834_s27] ss:$0 sm:$0xff] }
  0x2e   : > { %1186 = vrot.lane.b32.xlu2 %v1149_v17, %s4728_s22  ;;  %v1012_v26 = vld [vmem:[%s6833_s8 + $0x38] sm:$0xff] }
  0x2f   : > { %v1016_v27 = vld [vmem:[%s6833_s8 + $0x58] sm:$0xff] }
  0x30   : > { %v1020_v28 = vld [vmem:[%s6833_s8 + $0x78] sm:$0xff] }
  0x33   : > { %4219 = vmatmul.msk.f32.gmra.mxu0 %vm1026_vm1, %v1006_v11  ;;  %4223 = vmatmul.msk.f32.gmra.mxu1 %vm1026_vm1, %v1010_v12 }
  0x34   : > { %4227 = vmatmul.msk.f32.gmra.mxu2 %vm1026_vm1, %v1014_v13  ;;  %1190 = vrot.lane.b32.xlu1 %v1151_v15, %s4728_s22 }
  0x35   : > { %4231 = vmatmul.msk.f32.gmra.mxu3 %vm1026_vm1, %v1018_v14  ;;  %1188 = vrot.lane.b32.xlu0 %v1150_v16, %s4728_s22 }
  0x36   : > { %1192 = vrot.lane.b32.xlu2 %v1152_v24, %s4728_s22 }
  0x3b   : > { %4220 = vmatmul.msk.f32.gmra.mxu0 %vm1026_vm1, %v1007_v18  ;;  %4224 = vmatmul.msk.f32.gmra.mxu1 %vm1026_vm1, %v1011_v19 }
  0x3c   : > { %4228 = vmatmul.msk.f32.gmra.mxu2 %vm1026_vm1, %v1015_v20  ;;  %1196 = vrot.lane.b32.xlu1 %v1154_v22, %s4728_s22 }
  0x3d   : > { %4232 = vmatmul.msk.f32.gmra.mxu3 %vm1026_vm1, %v1019_v21  ;;  %1194 = vrot.lane.b32.xlu0 %v1153_v23, %s4728_s22 }
  0x3e   : > { %1198 = vrot.lane.b32.xlu2 %v1155_v31, %s4728_s22 }
  0x43   : > { %4221 = vmatmul.msk.f32.gmra.mxu0 %vm1026_vm1, %v1008_v25  ;;  %4225 = vmatmul.msk.f32.gmra.mxu1 %vm1026_vm1, %v1012_v26 }
  0x44   : > { %4229 = vmatmul.msk.f32.gmra.mxu2 %vm1026_vm1, %v1016_v27  ;;  %1202 = vrot.lane.b32.xlu1 %v1157_v29, %s4728_s22 }
  0x45   : > { %4233 = vmatmul.msk.f32.gmra.mxu3 %vm1026_vm1, %v1020_v28  ;;  %1200 = vrot.lane.b32.xlu0 %v1156_v30, %s4728_s22 }
  0x46   : > { %1204 = vrot.lane.b32.xlu2 %v1158_v33, %s4728_s22 }
  0x4d   : > { %1206 = vrot.lane.b32.xlu0 %v1159_v32, %s4728_s22 }
  0x7e   : > { %v1185_v34 = vpop.permute.xlu2 %1184 }
  0x88   : > { %v1187_v37 = vpop.permute.xlu2 %1186 }
  0x90   : > { %v1193_v45 = vpop.permute.xlu2 %1192 }
  0x95   : > { %v1181_v35 = vpop.permute.xlu1 %1180  ;;  %v1177_v36 = vpop.permute.xlu0 %1176 }
  0x98   : > { %v1199_v62 = vpop.permute.xlu2 %1198 }
  0x9e   : > { %v5083_v38 = vpop.permute.xlu1 %1182 }
  0x9f   : > { %v1179_v39 = vpop.permute.xlu0 %1178 }
  0xa0   : > { %v1205_v15 = vpop.permute.xlu2 %1204 }
  0xa6   : > { %v1191_v46 = vpop.permute.xlu1 %1190 }
  0xa7   : > { %v1189_v47 = vpop.permute.xlu0 %1188 }
  0xa8   : > { %v1096_v41 = vpop.f32.mrf.mxu0  ;;  %v1108_v42 = vpop.f32.mrf.mxu1 }
  0xa9   : > { %v1097_v43 = vadd.f32 %v5088_v40, %v1096_v41  ;;  %v1109_v44 = vadd.f32 %v5088_v40, %v1108_v42 }
  0xab   : > { %v1225_v48 = vsel %vm1224_vm2, %v1097_v43, %v1177_v36  ;;  %v1229_v49 = vsel %vm1224_vm2, %v1109_v44, %v1185_v34 }
  0xac   : > { %1242 = vst.msk [vmem:[#allocation2] sm:$0xff] %vm1241_vm3, %v1225_v48 }
  0xad   : > { %1246 = vst.msk [vmem:[#allocation2 + $0x20] sm:$0xff] %vm1241_vm3, %v1229_v49 }
  0xae   : > { %v1197_v58 = vpop.permute.xlu1 %1196 }
  0xaf   : > { %v1120_v50 = vpop.f32.mrf.mxu2  ;;  %v1195_v59 = vpop.permute.xlu0 %1194 }
  0xb0   : > { %v1132_v51 = vpop.f32.mrf.mxu3  ;;  %v1121_v52 = vadd.f32 %v5088_v40, %v1120_v50  ;;  %v1099_v53 = vpop.f32.mrf.mxu0 }
  0xb1   : > { %v1111_v54 = vpop.f32.mrf.mxu1  ;;  %v1100_v55 = vadd.f32 %v5088_v40, %v1099_v53  ;;  %v1133_v7 = vadd.f32 %v5088_v40, %v1132_v51 }
  0xb2   : > { %v1112_v56 = vadd.f32 %v5088_v40, %v1111_v54  ;;  %v1233_v57 = vsel %vm1224_vm2, %v1121_v52, %v1193_v45 }
  0xb3   : > { %1250 = vst.msk [vmem:[#allocation2 + $0x40] sm:$0xff] %vm1241_vm3, %v1233_v57  ;;  %v1226_v60 = vsel %vm1224_vm2, %v1100_v55, %v1179_v39 }
  0xb4   : > { %v1230_v61 = vsel %vm1224_vm2, %v1112_v56, %v1187_v37  ;;  %1243 = vst.msk [vmem:[#allocation2 + $0x8] sm:$0xff] %vm1241_vm3, %v1226_v60 }
  0xb5   : > { %1247 = vst.msk [vmem:[#allocation2 + $0x28] sm:$0xff] %vm1241_vm3, %v1230_v61 }
  0xb6   : > { %v1203_v9 = vpop.permute.xlu1 %1202 }
  0xb7   : > { %v1123_v63 = vpop.f32.mrf.mxu2  ;;  %v1201_v10 = vpop.permute.xlu0 %1200 }
  0xb8   : > { %v1135_v0 = vpop.f32.mrf.mxu3  ;;  %v1124_v1 = vadd.f32 %v5088_v40, %v1123_v63  ;;  %v1102_v2 = vpop.f32.mrf.mxu0  ;;  %v1237_v14 = vsel %vm1224_vm2, %v1133_v7, %v1201_v10 }
  0xb9   : > { %v1114_v3 = vpop.f32.mrf.mxu1  ;;  %v1136_v4 = vadd.f32 %v5088_v40, %v1135_v0  ;;  %v1103_v5 = vadd.f32 %v5088_v40, %v1102_v2  ;;  %1254 = vst.msk [vmem:[#allocation2 + $0x60] sm:$0xff] %vm1241_vm3, %v1237_v14 }
  0xba   : > { %v1115_v6 = vadd.f32 %v5088_v40, %v1114_v3  ;;  %v1234_v8 = vsel %vm1224_vm2, %v1124_v1, %v1195_v59 }
  0xbb   : > { %1251 = vst.msk [vmem:[#allocation2 + $0x48] sm:$0xff] %vm1241_vm3, %v1234_v8  ;;  %v1227_v11 = vsel %vm1224_vm2, %v1103_v5, %v1181_v35  ;;  %v1238_v13 = vsel %vm1224_vm2, %v1136_v4, %v1203_v9 }
  0xbc   : > { %v1231_v12 = vsel %vm1224_vm2, %v1115_v6, %v1189_v47  ;;  %1244 = vst.msk [vmem:[#allocation2 + $0x10] sm:$0xff] %vm1241_vm3, %v1227_v11 }
  0xbd   : > { %1248 = vst.msk [vmem:[#allocation2 + $0x30] sm:$0xff] %vm1241_vm3, %v1231_v12 }
  0xbe   : > { %1255 = vst.msk [vmem:[#allocation2 + $0x68] sm:$0xff] %vm1241_vm3, %v1238_v13 }
  0xbf   : > { %v1126_v16 = vpop.f32.mrf.mxu2  ;;  %v1207_v28 = vpop.permute.xlu0 %1206 }
  0xc0   : > { %v1138_v17 = vpop.f32.mrf.mxu3  ;;  %v1127_v18 = vadd.f32 %v5088_v40, %v1126_v16  ;;  %v1105_v20 = vpop.f32.mrf.mxu0 }
  0xc1   : > { %v1139_v19 = vadd.f32 %v5088_v40, %v1138_v17  ;;  %v1117_v21 = vpop.f32.mrf.mxu1  ;;  %v1106_v22 = vadd.f32 %v5088_v40, %v1105_v20 }
  0xc2   : > { %v1118_v23 = vadd.f32 %v5088_v40, %v1117_v21  ;;  %v1235_v24 = vsel %vm1224_vm2, %v1127_v18, %v1197_v58 }
  0xc3   : > { %v1239_v25 = vsel %vm1224_vm2, %v1139_v19, %v1205_v15  ;;  %1252 = vst.msk [vmem:[#allocation2 + $0x50] sm:$0xff] %vm1241_vm3, %v1235_v24  ;;  %v1228_v26 = vsel %vm1224_vm2, %v1106_v22, %v5083_v38 }
  0xc4   : > { %v1232_v27 = vsel %vm1224_vm2, %v1118_v23, %v1191_v46  ;;  %1256 = vst.msk [vmem:[#allocation2 + $0x70] sm:$0xff] %vm1241_vm3, %v1239_v25 }
  0xc5   : > { %1245 = vst.msk [vmem:[#allocation2 + $0x18] sm:$0xff] %vm1241_vm3, %v1228_v26 }
  0xc6   : > { %1249 = vst.msk [vmem:[#allocation2 + $0x38] sm:$0xff] %vm1241_vm3, %v1232_v27 }
  0xc7   : > { %v1129_v29 = vpop.f32.mrf.mxu2 }
  0xc8   : > { %v1141_v30 = vpop.f32.mrf.mxu3  ;;  %v1130_v31 = vadd.f32 %v5088_v40, %v1129_v29 }
  0xc9   : > { %v1142_v32 = vadd.f32 %v5088_v40, %v1141_v30 }
  0xca   : > { %v1236_v33 = vsel %vm1224_vm2, %v1130_v31, %v1199_v62 }
  0xcb   : > { %v1240_v34 = vsel %vm1224_vm2, %v1142_v32, %v1207_v28  ;;  %1253 = vst.msk [vmem:[#allocation2 + $0x58] sm:$0xff] %vm1241_vm3, %v1236_v33 }
  0xcc   : > { %1257 = vst.msk [vmem:[#allocation2 + $0x78] sm:$0xff] %vm1241_vm3, %v1240_v34 }
  0xcd PF: > { %s6835_s29 = sld [smem:[#allocation11_spill]]  ;;  %v4729_v37 = vmov 0   ;;  %v5150_v40 = vld [vmem:[#allocation2 + $0x70] sm:$0xff]  ;;  %v5153_v41 = vld [vmem:[#allocation2 + $0x68] sm:$0xff]  ;;  %v5159_v43 = vld [vmem:[#allocation2 + $0x60] sm:$0xff]  ;;  %v1311_v58 = vlaneseq  ;;  %v4730_v61 = vmov 1.0   ;;  %s6839_s21 = scalar_lea.vmem %s6786_s12, %s4895_s3 }
  0xce   : > { %4520 = vset.pattern.permute.xlu0 %v4729_v37  ;;  %4521 = vset.pattern.permute.xlu1 %v4729_v37  ;;  %s6836_s4 = sld [smem:[#allocation12_spill]]  ;;  %v5171_v47 = vld [vmem:[#allocation2 + $0x50] sm:$0xff]  ;;  %v5174_v48 = vld [vmem:[#allocation2 + $0x48] sm:$0xff]  ;;  %v5177_v49 = vld [vmem:[#allocation2 + $0x40] sm:$0xff]  ;;  %vm1261_vm10 = vcmask 261120   ;;  %v4731_v7 = vmov 0.0  }
  0xcf   : > { %4522 = vset.pattern.permute.xlu2 %v4729_v37  ;;  %v5180_v50 = vld [vmem:[#allocation2 + $0x38] sm:$0xff]  ;;  %v5183_v51 = vld [vmem:[#allocation2 + $0x30] sm:$0xff]  ;;  %v5186_v52 = vld [vmem:[#allocation2 + $0x28] sm:$0xff]  ;;  %v5221_v59 = vand.u32 127, %v1311_v58  ;;  %1262 = vst.msk [vmem:[#allocation3] sm:$0xff] %vm1261_vm10, %v4731_v7  ;;  %s4732_s7 = smov 96  }
  0xd0   : > { %v5189_v53 = vld [vmem:[#allocation2 + $0x20] sm:$0xff]  ;;  %v5192_v54 = vld [vmem:[#allocation2 + $0x18] sm:$0xff]  ;;  %v5195_v55 = vld [vmem:[#allocation2 + $0x10] sm:$0xff]  ;;  %1263 = vst.msk [vmem:[#allocation3 + $0x8] sm:$0xff] %vm1261_vm10, %v4731_v7  ;;  %vm1537_vm11 = vcmask 1041408   ;;  %s6837_s24 = sld [smem:[#allocation13_spill]] }
  0xd1   : > { %v5198_v56 = vld [vmem:[#allocation2 + $0x8] sm:$0xff]  ;;  %v5201_v57 = vld [vmem:[#allocation2] sm:$0xff]  ;;  %v1442_v3 = vld [vmem:[%s4910_s23 + $0x38] sm:$0xff]  ;;  %1264 = vst.msk [vmem:[#allocation3 + $0x10] sm:$0xff] %vm1261_vm10, %v4731_v7  ;;  %vm1527_vm12 = vcmask 15360   ;;  %vm1278_vm13 = vcmask 23552  }
  0xd2   : > { %v5165_v45 = vld [vmem:[#allocation2 + $0x58] sm:$0xff]  ;;  %v1441_v4 = vld [vmem:[%s4910_s23 + $0x30] sm:$0xff]  ;;  %1466 = vmatpush.msra.mxu3 %v1442_v3  ;;  %v1440_v5 = vld [vmem:[%s4910_s23 + $0x28] sm:$0xff]  ;;  %1265 = vst.msk [vmem:[#allocation3 + $0x18] sm:$0xff] %vm1261_vm10, %v4731_v7  ;;  %p4281_p6 = scmp.ne.s32.totalorder %s4718_s6, 2 }
  0xd3   : > { %v1313_v35 = vld [vmem:[%s6835_s29] sm:$0xff]  ;;  %v1315_v36 = vld [vmem:[%s6835_s29 + $0x10] sm:$0xff]  ;;  %v5148_v39 = vld [vmem:[#allocation2 + $0x78] sm:$0xff]  ;;  %1266 = vst.msk [vmem:[#allocation3 + $0x20] sm:$0xff] %vm1261_vm10, %v4731_v7 }
  0xd4   : > { %v1335_v38 = vld [vmem:[%s6836_s4 + $0x8] sm:$0xff]  ;;  %1317 = vperm.xlu0 %4520, %v1313_v35   ;;  %1323 = vperm.xlu1 %4521, %v1315_v36   ;;  %v1334_v44 = vld [vmem:[%s6836_s4] sm:$0xff]  ;;  %v1336_v46 = vld [vmem:[%s6836_s4 + $0x10] sm:$0xff]  ;;  %1267 = vst.msk [vmem:[#allocation3 + $0x28] sm:$0xff] %vm1261_vm10, %v4731_v7 }
  0xd5   : > { %1355 = vmatpush.msra.mxu1 %v5148_v39  ;;  %1341 = vperm.xlu2 %4522, %v1335_v38   ;;  %v1314_v42 = vld [vmem:[%s6835_s29 + $0x8] sm:$0xff]  ;;  %v1439_v6 = vld [vmem:[%s4910_s23 + $0x20] sm:$0xff]  ;;  %1268 = vst.msk [vmem:[#allocation3 + $0x30] sm:$0xff] %vm1261_vm10, %v4731_v7  ;;  %v1438_v10 = vld [vmem:[%s4910_s23 + $0x18] sm:$0xff] }
  0xd6   : > { %1467 = vmatpush.msra.mxu3 %v1441_v4  ;;  %1269 = vst.msk [vmem:[#allocation3 + $0x38] sm:$0xff] %vm1261_vm10, %v4731_v7  ;;  %v1437_v11 = vld [vmem:[%s4910_s23 + $0x10] sm:$0xff]  ;;  %v1436_v12 = vld [vmem:[%s4910_s23 + $0x8] sm:$0xff]  ;;  %v1435_v13 = vld [vmem:[%s4910_s23] sm:$0xff] }
  0xd7   : > { %1356 = vmatpush.msra.mxu1 %v5150_v40  ;;  %1270 = vst.msk [vmem:[#allocation3 + $0x40] sm:$0xff] %vm1261_vm10, %v4731_v7  ;;  %v1443_v20 = vld [vmem:[%s4910_s23 + $0x40] sm:$0x7]  ;;  %v1523_v26 = vld [vmem:[%s6837_s24 + $0x8] sm:$0xff]  ;;  %v1524_v28 = vld [vmem:[%s6837_s24 + $0x10] sm:$0xff] }
  0xd8   : > { %1468 = vmatpush.msra.mxu3 %v1440_v5  ;;  %1271 = vst.msk [vmem:[#allocation3 + $0x48] sm:$0xff] %vm1261_vm10, %v4731_v7  ;;  %v1526_v21 = vrot.slane %v1443_v20, 1  ;;  %v1522_v22 = vld [vmem:[%s6837_s24] sm:$0xff] }
  0xd9   : > { %1357 = vmatpush.msra.mxu1 %v5153_v41  ;;  %1272 = vst.msk [vmem:[#allocation3 + $0x50] sm:$0xff] %vm1261_vm10, %v4731_v7 }
  0xda   : > { %1469 = vmatpush.msra.mxu3 %v1439_v6  ;;  %1273 = vst.msk [vmem:[#allocation3 + $0x58] sm:$0xff] %vm1261_vm10, %v4731_v7  ;;  %4252 = vmatpush.msk.msra.mxu2 %vm1537_vm11, %v1526_v21 }
  0xdb   : > { %1358 = vmatpush.msra.mxu1 %v5159_v43  ;;  %1274 = vst.msk [vmem:[#allocation3 + $0x60] sm:$0xff] %vm1261_vm10, %v4731_v7  ;;  %4253 = vmatmul.msk.f32.vlgmr.msra.gmra.mxu2 %vm1527_vm12, %v1522_v22 }
  0xdc   : > { %1320 = vperm.xlu0 %4520, %v1314_v42   ;;  %1338 = vperm.xlu1 %4521, %v1334_v44   ;;  %1275 = vst.msk [vmem:[#allocation3 + $0x68] sm:$0xff] %vm1261_vm10, %v4731_v7 }
  0xdd   : > { %1359 = vmatpush.msra.mxu1 %v5165_v45  ;;  %1344 = vperm.xlu2 %4522, %v1336_v46   ;;  %1276 = vst.msk [vmem:[#allocation3 + $0x70] sm:$0xff] %vm1261_vm10, %v4731_v7 }
  0xde   : > { %1277 = vst.msk [vmem:[#allocation3 + $0x78] sm:$0xff] %vm1261_vm10, %v4731_v7  ;;  %1501 = vmatpush.msrb.mxu3 %v1438_v10 }
  0xdf   : > { %1360 = vmatpush.msra.mxu1 %v5171_v47  ;;  %1279 = vst.msk [vmem:[#allocation4] sm:$0xff] %vm1278_vm13, %v4731_v7 }
  0xe0   : > { %1502 = vmatpush.msrb.mxu3 %v1437_v11  ;;  %1280 = vst.msk [vmem:[#allocation4 + $0x8] sm:$0xff] %vm1278_vm13, %v4731_v7 }
  0xe1   : > { %1361 = vmatpush.msra.mxu1 %v5174_v48  ;;  %1281 = vst.msk [vmem:[#allocation4 + $0x10] sm:$0xff] %vm1278_vm13, %v4731_v7 }
  0xe2   : > { %1503 = vmatpush.msrb.mxu3 %v1436_v12  ;;  %1282 = vst.msk [vmem:[#allocation4 + $0x18] sm:$0xff] %vm1278_vm13, %v4731_v7  ;;  %v1638_v12 = vld [vmem:[%s4915_s25 + $0x10] sm:$0xff] }
  0xe3   : > { %1362 = vmatpush.msra.mxu1 %v5177_v49  ;;  %4254 = vmatmul.msk.f32.gmra.mxu2 %vm1527_vm12, %v1523_v26  ;;  %1283 = vst.msk [vmem:[#allocation4 + $0x20] sm:$0xff] %vm1278_vm13, %v4731_v7 }
  0xe4   : > { %1504 = vmatpush.msrb.mxu3 %v1435_v13  ;;  %1284 = vst.msk [vmem:[#allocation4 + $0x28] sm:$0xff] %vm1278_vm13, %v4731_v7 }
  0xe5   : > { %1363 = vmatpush.msra.mxu1 %v5180_v50  ;;  %1285 = vst.msk [vmem:[#allocation4 + $0x30] sm:$0xff] %vm1278_vm13, %v4731_v7 }
  0xe6   : > { %1286 = vst.msk [vmem:[#allocation4 + $0x38] sm:$0xff] %vm1278_vm13, %v4731_v7 }
  0xe7   : > { %1364 = vmatpush.msra.mxu1 %v5183_v51  ;;  %1287 = vst.msk [vmem:[#allocation4 + $0x40] sm:$0xff] %vm1278_vm13, %v4731_v7 }
  0xe8   : > { %1288 = vst.msk [vmem:[#allocation4 + $0x48] sm:$0xff] %vm1278_vm13, %v4731_v7 }
  0xe9   : > { %1365 = vmatpush.msra.mxu1 %v5186_v52  ;;  %1289 = vst.msk [vmem:[#allocation4 + $0x50] sm:$0xff] %vm1278_vm13, %v4731_v7 }
  0xea   : > { %1290 = vst.msk [vmem:[#allocation4 + $0x58] sm:$0xff] %vm1278_vm13, %v4731_v7 }
  0xeb   : > { %1366 = vmatpush.msra.mxu1 %v5189_v53  ;;  %4255 = vmatmul.msk.f32.gmra.mxu2 %vm1527_vm12, %v1524_v28  ;;  %1291 = vst.msk [vmem:[#allocation4 + $0x60] sm:$0xff] %vm1278_vm13, %v4731_v7 }
  0xec   : > { %1292 = vst.msk [vmem:[#allocation4 + $0x68] sm:$0xff] %vm1278_vm13, %v4731_v7 }
  0xed   : > { %1367 = vmatpush.msra.mxu1 %v5192_v54  ;;  %1293 = vst.msk [vmem:[#allocation4 + $0x70] sm:$0xff] %vm1278_vm13, %v4731_v7 }
  0xee   : > { %1294 = vst.msk [vmem:[#allocation4 + $0x78] sm:$0xff] %vm1278_vm13, %v4731_v7 }
  0xef   : > { %1368 = vmatpush.msra.mxu1 %v5195_v55 }
  0xf1   : > { %1369 = vmatpush.msra.mxu1 %v5198_v56 }
  0xf3   : > { %1370 = vmatpush.msra.mxu1 %v5201_v57 }
  0xf5   : > { %1381 = vmatpush.msrb.mxu1 %v5148_v39 }
  0xf7   : > { %1382 = vmatpush.msrb.mxu1 %v5150_v40 }
  0xf9   : > { %1383 = vmatpush.msrb.mxu1 %v5153_v41 }
  0xfb   : > { %1384 = vmatpush.msrb.mxu1 %v5159_v43 }
  0xfd   : > { %1385 = vmatpush.msrb.mxu1 %v5165_v45 }
  0xff   : > { %1386 = vmatpush.msrb.mxu1 %v5171_v47 }
 0x101   : > { %1387 = vmatpush.msrb.mxu1 %v5174_v48 }
 0x103   : > { %1388 = vmatpush.msrb.mxu1 %v5177_v49 }
 0x105   : > { %1389 = vmatpush.msrb.mxu1 %v5180_v50 }
 0x107   : > { %1390 = vmatpush.msrb.mxu1 %v5183_v51 }
 0x109   : > { %1391 = vmatpush.msrb.mxu1 %v5186_v52 }
 0x10b   : > { %1392 = vmatpush.msrb.mxu1 %v5189_v53 }
 0x10d   : > { %1393 = vmatpush.msrb.mxu1 %v5192_v54 }
 0x10f   : > { %1394 = vmatpush.msrb.mxu1 %v5195_v55 }
 0x111   : > { %1395 = vmatpush.msrb.mxu1 %v5198_v56 }
 0x113   : > { %1396 = vmatpush.msrb.mxu1 %v5201_v57 }
 0x12f   : > { %v1342_v1 = vpop.permute.xlu2 %1341 }
 0x130   : > { %vm1347_vm8 = vcmp.eq.s32.totalorder %v1342_v1, %v5221_v59 }
 0x137   : > { %v1345_v2 = vpop.permute.xlu2 %1344 }
 0x138   : > { %vm1348_vm9 = vcmp.eq.s32.totalorder %v1345_v2, %v5221_v59 }
 0x146   : > { %v5223_v60 = vpop.permute.xlu0 %1317  ;;  %v5237_v63 = vpop.permute.xlu1 %1323 }
 0x147   : > { %vm1325_vm4 = vcmp.eq.s32.totalorder %v5223_v60, %v5221_v59  ;;  %vm1327_vm6 = vcmp.eq.s32.totalorder %v5237_v63, %v5221_v59 }
 0x148   : > { %4240 = vmatmul.msk.f32.vlgmr.msra.gmra.mxu1 %vm1325_vm4, %v4730_v61  ;;  %v4234_v35 = vsel %vm1325_vm4, 1.0, %v4731_v7  ;;  %v4236_v37 = vsel %vm1327_vm6, 1.0, %v4731_v7 }
 0x14e   : > { %v5230_v62 = vpop.permute.xlu0 %1320  ;;  %v1339_v0 = vpop.permute.xlu1 %1338 }
 0x14f   : > { %vm1326_vm5 = vcmp.eq.s32.totalorder %v5230_v62, %v5221_v59  ;;  %vm1346_vm7 = vcmp.eq.s32.totalorder %v1339_v0, %v5221_v59  ;;  %v1515_v0 = vperm.slane %v1443_v20, 0 }
 0x150   : > { %4241 = vmatmul.msk.f32.gmra.mxu1 %vm1326_vm5, %v4730_v61  ;;  %v4235_v36 = vsel %vm1326_vm5, 1.0, %v4731_v7  ;;  %v1639_v7 = vld [vmem:[%s4915_s25 + $0x18] sm:$0xff] }
 0x158   : > { %4242 = vmatmul.msk.f32.gmra.mxu1 %vm1327_vm6, %v4730_v61 }
 0x15e   : > { %v1557_v58 = vpop.f32.mrf.mxu2 }
 0x160   : > { %4243 = vmatmul.msk.f32.vlgmr.msrb.gmra.mxu1 %vm1346_vm7, %v4730_v61 }
 0x168   : > { %4244 = vmatmul.msk.f32.gmra.mxu1 %vm1347_vm8, %v4730_v61 }
 0x170   : > { %4245 = vmatmul.msk.f32.gmra.mxu1 %vm1348_vm9, %v4730_v61  ;;  %v1560_v61 = vpop.f32.mrf.mxu2 }
 0x178   : > { %v1563_v4 = vpop.f32.mrf.mxu2 }
 0x1c5   : > { %v1372_v8 = vpop.f32.mrf.mxu1 }
 0x1cd   : > { %v1375_v9 = vpop.f32.mrf.mxu1 }
 0x1d5   : > { %v1378_v14 = vpop.f32.mrf.mxu1 }
 0x1dd   : > { %v1398_v15 = vpop.f32.mrf.mxu1 }
 0x1de   : > { %v5287_v16 = vsub.f32 %v1372_v8, %v1398_v15  ;;  %4246 = vmatmul.msk.f32.vlgmr.msra.gmra.mxu3 %vm1261_vm10, %v1398_v15 }
 0x1df   : > { %1665 = vmatpush.msra.mxu3 %v1639_v7 }
 0x1e0   : > { %v1410_v17 = vmul.f32 %v5287_v16, %v5287_v16 }
 0x1e1   : > { %1666 = vmatpush.msra.mxu3 %v1638_v12 }
 0x1e2   : > { %1416 = vrot.lane.b32.xlu0 %v1410_v17, %s4732_s7 }
 0x1e5   : > { %v1401_v18 = vpop.f32.mrf.mxu1 }
 0x1e6   : > { %v5292_v19 = vsub.f32 %v1375_v9, %v1401_v18  ;;  %4247 = vmatmul.msk.f32.gmra.mxu3 %vm1261_vm10, %v1401_v18  ;;  %v1636_v18 = vld [vmem:[%s4915_s25] sm:$0xff] }
 0x1e8   : > { %v1411_v23 = vmul.f32 %v5292_v19, %v5292_v19 }
 0x1ea   : > { %1418 = vrot.lane.b32.xlu1 %v1411_v23, %s4732_s7 }
 0x1ed   : > { %v1404_v24 = vpop.f32.mrf.mxu1 }
 0x1ee   : > { %v5301_v25 = vsub.f32 %v1378_v14, %v1404_v24  ;;  %4248 = vmatmul.msk.f32.gmra.mxu3 %vm1261_vm10, %v1404_v24 }
 0x1f0   : > { %v1412_v27 = vmul.f32 %v5301_v25, %v5301_v25 }
 0x1f2   : > { %1420 = vrot.lane.b32.xlu2 %v1412_v27, %s4732_s7  ;;  %s6838_s7 = scalar_lea.vmem %s6784_s10, %s4895_s3 }
 0x1f3   : > { %v4523_v6 = vld [vmem:[%s6838_s7] ss:$0 sm:$0xff] }
 0x1f6   : > { %4249 = vmatmul.msk.f32.vlgmr.msrb.gmra.mxu3 %vm1261_vm10, %v1372_v8 }
 0x1fe   : > { %4250 = vmatmul.msk.f32.gmra.mxu3 %vm1261_vm10, %v1375_v9 }
 0x206   : > { %4251 = vmatmul.msk.f32.gmra.mxu3 %vm1261_vm10, %v1378_v14  ;;  %v1637_v14 = vld [vmem:[%s4915_s25 + $0x8] sm:$0xff] }
 0x207   : > { %1667 = vmatpush.msra.mxu3 %v1637_v14 }
 0x209   : > { %1668 = vmatpush.msra.mxu3 %v1636_v18 }
 0x24c   : > { %v1421_v29 = vpop.permute.xlu2 %1420 }
 0x24d   : > { %v1432_v30 = vsel %vm1278_vm13, %v1421_v29, 0.0 }
 0x24e   : > { %1433 = vadd.xlane.f32.xlu2 %v1432_v30 }
 0x254   : > { %v1417_v31 = vpop.permute.xlu0 %1416 }
 0x255   : > { %v1426_v32 = vsel %vm1278_vm13, %v1417_v31, 0.0 }
 0x256   : > { %1427 = vadd.xlane.f32.xlu0 %v1426_v32 }
 0x25c   : > { %v1419_v33 = vpop.permute.xlu1 %1418 }
 0x25d   : > { %v1429_v34 = vsel %vm1278_vm13, %v1419_v33, 0.0 }
 0x25e   : > { %1430 = vadd.xlane.f32.xlu1 %v1429_v34 }
 0x261   : > { %v1471_v38 = vpop.f32.mrf.mxu3 }
 0x269   : > { %v1474_v42 = vpop.f32.mrf.mxu3 }
 0x271   : > { %v1477_v44 = vpop.f32.mrf.mxu3 }
 0x277   : > { %1755 = vxpose.xlu2.b32.start [1/3] (short) %v4234_v35, 128 }
 0x279   : > { %v1506_v46 = vpop.f32.mrf.mxu3 }
 0x27a   : > { %v1507_v9 = vadd.f32 %v1506_v46, %v1471_v38 }
 0x27f   : > { %1756 = vxpose.xlu2.b32.cont [2/3] (short) %v4235_v36, 128 }
 0x281   : > { %v1509_v60 = vpop.f32.mrf.mxu3 }
 0x282   : > { %v1510_v22 = vadd.f32 %v1509_v60, %v1474_v42 }
 0x287   : > { %1757 = vxpose.xlu2.b32.end [3/3] (short) %v4236_v37, 128 }
 0x289   : > { %v1512_v62 = vpop.f32.mrf.mxu3 }
 0x28a   : > { %v1513_v2 = vadd.f32 %v1512_v62, %v1477_v44 }
 0x2c1   : > { %v1434_v1 = vpop.xlane.xlu2 %1433 }
 0x2c2   : > { %v1518_v3 = vmul.f32 %v1515_v0, %v1434_v1 }
 0x2c4   : > { %v1521_v63 = vadd.f32 %v1518_v3, %v1513_v2 }
 0x2c6   : > { %v1568_v5 = vadd.f32 %v1563_v4, %v1521_v63 }
 0x2c8   : > { %v5368_v10 = vadd.f32 %v4523_v6, %v1568_v5 }
 0x2c9   : > { %v1428_v8 = vpop.xlane.xlu0 %1427 }
 0x2ca   : > { %v1516_v11 = vmul.f32 %v1515_v0, %v1428_v8  ;;  %v4258_v15 = vmul.f32 -1.442695, %v5368_v10 }
 0x2cc   : > { %v1519_v13 = vadd.f32 %v1516_v11, %v1507_v9  ;;  %4525 = vpow2.f32 %v4258_v15 }
 0x2ce   : > { %v1566_v17 = vadd.f32 %v1557_v58, %v1519_v13 }
 0x2d0   : > { %v1573_v20 = vadd.f32 %v4523_v6, %v1566_v17 }
 0x2d1   : > { %v1431_v21 = vpop.xlane.xlu1 %1430 }
 0x2d2   : > { %v4256_v23 = vmul.f32 -1.442695, %v1573_v20  ;;  %v1517_v24 = vmul.f32 %v1515_v0, %v1431_v21  ;;  %v4526_v28 = vpop.eup %4525 }
 0x2d3   : > { %v1587_v32 = vadd.f32 1.0, %v4526_v28 }
 0x2d4   : > { %4527 = vpow2.f32 %v4256_v23  ;;  %v1520_v26 = vadd.f32 %v1517_v24, %v1510_v22 }
 0x2d5   : > { %v1629_v17 = vand.u32 2147483648, %v1587_v32  ;;  %vm1623_vm7 = vweird.f32 %v1587_v32 }
 0x2d6   : > { %v1567_v27 = vadd.f32 %v1560_v61, %v1520_v26 }
 0x2d7   : > { %v1630_v22 = vor.u32 1.1754944e-38, %v1629_v17 }
 0x2d8   : > { %v1574_v29 = vadd.f32 %v4523_v6, %v1567_v27 }
 0x2da   : > { %v4528_v30 = vpop.eup %4527  ;;  %v4257_v31 = vmul.f32 -1.442695, %v1574_v29 }
 0x2db   : > { %v1585_v33 = vadd.f32 1.0, %v4528_v30  ;;  %v4524_v30 = vld [vmem:[%s6839_s21] ss:$0 sm:$0xff] }
 0x2dc   : > { %4529 = vpow2.f32 %v4257_v31 }
 0x2dd   : > { %4531 = vrcp.f32 %v1585_v33  ;;  %v1599_v44 = vand.u32 2147483648, %v1585_v33  ;;  %v1597_v58 = vand.u32 2147483647, %v1585_v33  ;;  %vm1593_vm15 = vweird.f32 %v1585_v33 }
 0x2de   : > { %4533 = vrcp.f32 %v1587_v32 }
 0x2df   : > { %v1600_v62 = vor.u32 1.1754944e-38, %v1599_v44  ;;  %vm1598_vm1 = vcmp.eq.f32.partialorder %v1597_v58, 8.507059e+37 }
 0x2e2   : > { %v4530_v34 = vpop.eup %4529 }
 0x2e3   : > { %v4532_v35 = vpop.eup %4531  ;;  %v1586_v36 = vadd.f32 1.0, %v4530_v34 }
 0x2e4   : > { %v1589_v37 = vmul.f32 %v4532_v35, %v1585_v33  ;;  %v4534_v38 = vpop.eup %4533  ;;  %vm1594_vm14 = vweird.f32 %v4532_v35 }
 0x2e5   : > { %4535 = vrcp.f32 %v1586_v36  ;;  %v1619_v60 = vmul.f32 %v4534_v38, %v1587_v32  ;;  %vm1595_vm0 = vmor %vm1593_vm15, %vm1594_vm14  ;;  %v1614_v6 = vand.u32 2147483648, %v1586_v36  ;;  %v1612_v8 = vand.u32 2147483647, %v1586_v36 }
 0x2e6   : > { %v1590_v42 = vsub.f32 1.0, %v1589_v37  ;;  %vm1608_vm3 = vweird.f32 %v1586_v36  ;;  %vm1624_vm6 = vweird.f32 %v4534_v38 }
 0x2e7   : > { %v1620_v3 = vsub.f32 1.0, %v1619_v60  ;;  %v1615_v12 = vor.u32 1.1754944e-38, %v1614_v6  ;;  %vm1613_vm5 = vcmp.eq.f32.partialorder %v1612_v8, 8.507059e+37  ;;  %vm1625_vm8 = vmor %vm1623_vm7, %vm1624_vm6 }
 0x2e8   : > { %v1591_v46 = vmul.f32 %v4532_v35, %v1590_v42 }
 0x2e9   : > { %v1621_v9 = vmul.f32 %v4534_v38, %v1620_v3 }
 0x2ea   : > { %v1592_v61 = vadd.f32 %v4532_v35, %v1591_v46 }
 0x2eb   : > { %v4536_v0 = vpop.eup %4535  ;;  %v1622_v14 = vadd.f32 %v4534_v38, %v1621_v9 }
 0x2ec   : > { %v1596_v1 = vsel %vm1595_vm0, %v4532_v35, %v1592_v61  ;;  %v1604_v2 = vmul.f32 %v4536_v0, %v1586_v36  ;;  %vm1609_vm2 = vweird.f32 %v4536_v0 }
 0x2ed   : > { %v1601_v4 = vsel %vm1598_vm1, %v1600_v62, %v1596_v1  ;;  %vm1610_vm4 = vmor %vm1608_vm3, %vm1609_vm2  ;;  %v1626_v21 = vsel %vm1625_vm8, %v4534_v38, %v1622_v14  ;;  %vm1787_vm8 = vcmask 195584  }
 0x2ee   : > { %v1633_v63 = vmul.f32 %v1601_v4, %v1573_v20  ;;  %v1605_v5 = vsub.f32 1.0, %v1604_v2  ;;  %v1627_v20 = vand.u32 2147483647, %v1587_v32 }
 0x2f0   : > { %4259 = vmatmul.msk.f32.vlgmr.msra.gmra.mxu3 %vm1261_vm10, %v1633_v63  ;;  %v1606_v7 = vmul.f32 %v4536_v0, %v1605_v5  ;;  %vm1628_vm9 = vcmp.eq.f32.partialorder %v1627_v20, 8.507059e+37 }
 0x2f1   : > { %v1631_v23 = vsel %vm1628_vm9, %v1630_v22, %v1626_v21 }
 0x2f2   : > { %v1607_v11 = vadd.f32 %v4536_v0, %v1606_v7  ;;  %v1635_v24 = vmul.f32 %v1631_v23, %v5368_v10 }
 0x2f4   : > { %v1611_v13 = vsel %vm1610_vm4, %v4536_v0, %v1607_v11 }
 0x2f5   : > { %v1616_v15 = vsel %vm1613_vm5, %v1615_v12, %v1611_v13 }
 0x2f6   : > { %v1634_v18 = vmul.f32 %v1616_v15, %v1574_v29 }
 0x2f8   : > { %4260 = vmatmul.msk.f32.gmra.mxu3 %vm1261_vm10, %v1634_v18 }
 0x300   : > { %4261 = vmatmul.msk.f32.gmra.mxu3 %vm1261_vm10, %v1635_v24 }
 0x310   : > { %v5378_v26 = vpop.trf.xlu2 }
 0x318   : > { %v5380_v27 = vpop.trf.xlu2 }
 0x320   : > { %v5382_v28 = vpop.trf.xlu2 }
 0x328   : > { %v5384_v29 = vpop.trf.xlu2 }
 0x330   : > { %v5391_v32 = vpop.trf.xlu2 }
 0x338   : > { %v5396_v35 = vpop.trf.xlu2 }
 0x340   : > { %v5401_v46 = vpop.trf.xlu2 }
 0x348   : > { %v5403_v62 = vpop.trf.xlu2 }
 0x350   : > { %v5405_v7 = vpop.trf.xlu2 }
 0x358   : > { %v5407_v21 = vpop.trf.xlu2 }
 0x373   : > { %v1670_v31 = vpop.f32.mrf.mxu3 }
 0x374   : > { %v5393_v33 = vadd.f32 %v4524_v30, %v1670_v31 }
 0x376   : > { %v4262_v10 = vmul.f32 -1.442695, %v5393_v33 }
 0x378   : > { %4537 = vpow2.f32 %v4262_v10 }
 0x37b   : > { %v1673_v34 = vpop.f32.mrf.mxu3 }
 0x37c   : > { %v5398_v36 = vadd.f32 %v4524_v30, %v1673_v34 }
 0x37e   : > { %v4263_v37 = vmul.f32 -1.442695, %v5398_v36  ;;  %v4538_v38 = vpop.eup %4537 }
 0x37f   : > { %v1688_v42 = vadd.f32 1.0, %v4538_v38 }
 0x380   : > { %4539 = vpow2.f32 %v4263_v37 }
 0x381   : > { %4541 = vrcp.f32 %v1688_v42  ;;  %vm1696_vm1 = vweird.f32 %v1688_v42  ;;  %v1702_v31 = vand.u32 2147483648, %v1688_v42  ;;  %v1700_v37 = vand.u32 2147483647, %v1688_v42 }
 0x383   : > { %v1676_v44 = vpop.f32.mrf.mxu3  ;;  %vm1701_vm7 = vcmp.eq.f32.partialorder %v1700_v37, 8.507059e+37  ;;  %v1742_v37 = vld [vmem:[#allocation3 + $0x18] sm:$0xff] }
 0x384   : > { %v1677_v58 = vadd.f32 %v4524_v30, %v1676_v44 }
 0x386   : > { %v4540_v60 = vpop.eup %4539  ;;  %v4264_v61 = vmul.f32 -1.442695, %v1677_v58 }
 0x387   : > { %v1689_v0 = vadd.f32 1.0, %v4540_v60  ;;  %v4542_v1 = vpop.eup %4541 }
 0x388   : > { %4543 = vpow2.f32 %v4264_v61  ;;  %v1692_v5 = vmul.f32 %v4542_v1, %v1688_v42  ;;  %vm1697_vm12 = vweird.f32 %v4542_v1 }
 0x389   : > { %4545 = vrcp.f32 %v1689_v0  ;;  %vm1711_vm14 = vweird.f32 %v1689_v0  ;;  %v1715_v18 = vand.u32 2147483647, %v1689_v0  ;;  %v1717_v20 = vand.u32 2147483648, %v1689_v0  ;;  %vm1698_vm3 = vmor %vm1696_vm1, %vm1697_vm12 }
 0x38a   : > { %v1693_v8 = vsub.f32 1.0, %v1692_v5 }
 0x38b   : > { %v1718_v44 = vor.u32 1.1754944e-38, %v1717_v20  ;;  %vm1716_vm6 = vcmp.eq.f32.partialorder %v1715_v18, 8.507059e+37 }
 0x38c   : > { %v1694_v13 = vmul.f32 %v4542_v1, %v1693_v8 }
 0x38e   : > { %v4544_v2 = vpop.eup %4543  ;;  %v1695_v24 = vadd.f32 %v4542_v1, %v1694_v13  ;;  %v1749_v13 = vld [vmem:[#allocation3 + $0x50] sm:$0xff] }
 0x38f   : > { %v4546_v3 = vpop.eup %4545  ;;  %v1690_v4 = vadd.f32 1.0, %v4544_v2 }
 0x390   : > { %v1707_v63 = vmul.f32 %v4546_v3, %v1689_v0  ;;  %vm1712_vm11 = vweird.f32 %v4546_v3  ;;  %v1699_v61 = vsel %vm1698_vm3, %v4542_v1, %v1695_v24 }
 0x391   : > { %4547 = vrcp.f32 %v1690_v4  ;;  %v1732_v17 = vand.u32 2147483648, %v1690_v4  ;;  %v1730_v23 = vand.u32 2147483647, %v1690_v4  ;;  %vm5409_vm0 = vmor %vm1711_vm14, %vm1712_vm11  ;;  %vm1726_vm2 = vweird.f32 %v1690_v4 }
 0x392   : > { %v1708_v6 = vsub.f32 1.0, %v1707_v63  ;;  %v1703_v63 = vor.u32 1.1754944e-38, %v1702_v31 }
 0x393   : > { %v1733_v38 = vor.u32 1.1754944e-38, %v1732_v17  ;;  %vm1731_vm5 = vcmp.eq.f32.partialorder %v1730_v23, 8.507059e+37  ;;  %v1741_v23 = vld [vmem:[#allocation3 + $0x10] sm:$0xff] }
 0x394   : > { %v1709_v9 = vmul.f32 %v4546_v3, %v1708_v6  ;;  %v5418_v6 = vpop.trf.xlu2 }
 0x396   : > { %v1710_v15 = vadd.f32 %v4546_v3, %v1709_v9  ;;  %v1739_v9 = vld [vmem:[#allocation3] sm:$0xff] }
 0x397   : > { %v4548_v11 = vpop.eup %4547 }
 0x398   : > { %v1722_v12 = vmul.f32 %v4548_v11, %v1690_v4  ;;  %vm1727_vm15 = vweird.f32 %v4548_v11  ;;  %v1714_v34 = vsel %vm5409_vm0, %v4546_v3, %v1710_v15  ;;  %v1704_v4 = vsel %vm1701_vm7, %v1703_v63, %v1699_v61 }
 0x399   : > { %vm1728_vm4 = vmor %vm1726_vm2, %vm1727_vm15  ;;  %v1719_v2 = vsel %vm1716_vm6, %v1718_v44, %v1714_v34  ;;  %v5428_v1 = vmul.f32 %v1704_v4, %v5393_v33  ;;  %v1751_v34 = vld [vmem:[#allocation3 + $0x60] sm:$0xff] }
 0x39a   : > { %v1723_v14 = vsub.f32 1.0, %v1722_v12  ;;  %v5423_v42 = vmul.f32 %v1719_v2, %v5398_v36  ;;  %v1743_v2 = vld [vmem:[#allocation3 + $0x20] sm:$0xff] }
 0x39c   : > { %v1724_v22 = vmul.f32 %v4548_v11, %v1723_v14  ;;  %v5436_v36 = vpop.trf.xlu2  ;;  %v1740_v14 = vld [vmem:[#allocation3 + $0x8] sm:$0xff] }
 0x39e   : > { %v1725_v10 = vadd.f32 %v4548_v11, %v1724_v22  ;;  %v1750_v22 = vld [vmem:[#allocation3 + $0x58] sm:$0xff] }
 0x3a0   : > { %v1729_v60 = vsel %vm1728_vm4, %v4548_v11, %v1725_v10 }
 0x3a1   : > { %v1734_v0 = vsel %vm1731_vm5, %v1733_v38, %v1729_v60 }
 0x3a2   : > { %v5416_v5 = vmul.f32 %v1734_v0, %v1677_v58  ;;  %v1752_v0 = vld [vmem:[#allocation3 + $0x68] sm:$0xff] }
 0x3a4   : > { %1849 = vmatpush.msra.mxu0 %v5416_v5  ;;  %4447 = vmatpush.msrb.mxu2 %v5416_v5  ;;  %v5442_v33 = vpop.trf.xlu2 }
 0x3a6   : > { %1850 = vmatpush.msra.mxu0 %v5423_v42  ;;  %4448 = vmatpush.msrb.mxu2 %v5423_v42 }
 0x3a8   : > { %1851 = vmatpush.msra.mxu0 %v5428_v1  ;;  %4449 = vmatpush.msrb.mxu2 %v5428_v1 }
 0x3a9   : > { %4265 = vmatmul.msk.f32.vlgmr.msra.gmra.mxu0 %vm1787_vm8, %v5378_v26  ;;  %4275 = vmatmul.msk.f32.vlgmr.msrb.gmra.mxu2 %vm1787_vm8, %v5418_v6 }
 0x3ac   : > { %v5448_v58 = vpop.trf.xlu2 }
 0x3b1   : > { %4266 = vmatmul.msk.f32.gmra.mxu0 %vm1787_vm8, %v5380_v27  ;;  %4276 = vmatmul.msk.f32.gmra.mxu2 %vm1787_vm8, %v5436_v36 }
 0x3b4   : > { %v5454_v3 = vpop.trf.xlu2 }
 0x3b9   : > { %4267 = vmatmul.msk.f32.gmra.mxu0 %vm1787_vm8, %v5382_v28  ;;  %4277 = vmatmul.msk.f32.gmra.mxu2 %vm1787_vm8, %v5442_v33 }
 0x3bc   : > { %v5460_v8 = vpop.trf.xlu2 }
 0x3c1   : > { %4268 = vmatmul.msk.f32.gmra.mxu0 %vm1787_vm8, %v5384_v29  ;;  %4278 = vmatmul.msk.f32.gmra.mxu2 %vm1787_vm8, %v5448_v58 }
 0x3c9   : > { %4269 = vmatmul.msk.f32.gmra.mxu0 %vm1787_vm8, %v5391_v32  ;;  %4279 = vmatmul.msk.f32.gmra.mxu2 %vm1787_vm8, %v5454_v3 }
 0x3d1   : > { %4270 = vmatmul.msk.f32.gmra.mxu0 %vm1787_vm8, %v5396_v35  ;;  %4280 = vmatmul.msk.f32.gmra.mxu2 %vm1787_vm8, %v5460_v8 }
 0x3d9   : > { %4271 = vmatmul.msk.f32.gmra.mxu0 %vm1787_vm8, %v5401_v46 }
 0x3e1   : > { %4272 = vmatmul.msk.f32.gmra.mxu0 %vm1787_vm8, %v5403_v62 }
 0x3e9   : > { %4273 = vmatmul.msk.f32.gmra.mxu0 %vm1787_vm8, %v5405_v7 }
 0x3f1   : > { %4274 = vmatmul.msk.f32.gmra.mxu0 %vm1787_vm8, %v5407_v21 }
 0x426   : > { %v1853_v11 = vpop.f32.mrf.mxu0 }
 0x427   : > { %v1901_v12 = vadd.f32 %v1853_v11, %v1739_v9 }
 0x429   : > { %1917 = vst.msk [vmem:[#allocation3] sm:$0xff] %vm1261_vm10, %v1901_v12  ;;  %v1753_v12 = vld [vmem:[#allocation3 + $0x70] sm:$0xff] }
 0x42c   : > { %v1883_v15 = vpop.f32.mrf.mxu2 }
 0x42d   : > { %v1911_v17 = vadd.f32 %v1883_v15, %v1749_v13  ;;  %v1744_v13 = vld [vmem:[#allocation3 + $0x28] sm:$0xff] }
 0x42e   : > { %v1856_v18 = vpop.f32.mrf.mxu0 }
 0x42f   : > { %v1902_v20 = vadd.f32 %v1856_v18, %v1740_v14  ;;  %1927 = vst.msk [vmem:[#allocation3 + $0x50] sm:$0xff] %vm1261_vm10, %v1911_v17 }
 0x431   : > { %1918 = vst.msk [vmem:[#allocation3 + $0x8] sm:$0xff] %vm1261_vm10, %v1902_v20  ;;  %v1754_v20 = vld [vmem:[#allocation3 + $0x78] sm:$0xff] }
 0x434   : > { %v1886_v24 = vpop.f32.mrf.mxu2 }
 0x435   : > { %v1912_v30 = vadd.f32 %v1886_v24, %v1750_v22  ;;  %v1745_v22 = vld [vmem:[#allocation3 + $0x30] sm:$0xff] }
 0x436   : > { %v1859_v31 = vpop.f32.mrf.mxu0 }
 0x437   : > { %v1903_v10 = vadd.f32 %v1859_v31, %v1741_v23  ;;  %1928 = vst.msk [vmem:[#allocation3 + $0x58] sm:$0xff] %vm1261_vm10, %v1912_v30 }
 0x439   : > { %1919 = vst.msk [vmem:[#allocation3 + $0x10] sm:$0xff] %vm1261_vm10, %v1903_v10  ;;  %v1746_v10 = vld [vmem:[#allocation3 + $0x38] sm:$0xff] }
 0x43c   : > { %v1889_v38 = vpop.f32.mrf.mxu2 }
 0x43d   : > { %v1913_v44 = vadd.f32 %v1889_v38, %v1751_v34  ;;  %v1747_v38 = vld [vmem:[#allocation3 + $0x40] sm:$0xff] }
 0x43e   : > { %v1862_v60 = vpop.f32.mrf.mxu0 }
 0x43f   : > { %v1904_v61 = vadd.f32 %v1862_v60, %v1742_v37  ;;  %1929 = vst.msk [vmem:[#allocation3 + $0x60] sm:$0xff] %vm1261_vm10, %v1913_v44 }
 0x441   : > { %1920 = vst.msk [vmem:[#allocation3 + $0x18] sm:$0xff] %vm1261_vm10, %v1904_v61  ;;  %v1748_v61 = vld [vmem:[#allocation3 + $0x48] sm:$0xff] }
 0x444   : > { %v1892_v63 = vpop.f32.mrf.mxu2 }
 0x445   : > { %v1914_v4 = vadd.f32 %v1892_v63, %v1752_v0 }
 0x446   : > { %v1865_v9 = vpop.f32.mrf.mxu0 }
 0x447   : > { %v1905_v11 = vadd.f32 %v1865_v9, %v1743_v2  ;;  %1930 = vst.msk [vmem:[#allocation3 + $0x68] sm:$0xff] %vm1261_vm10, %v1914_v4 }
 0x449   : > { %1921 = vst.msk [vmem:[#allocation3 + $0x20] sm:$0xff] %vm1261_vm10, %v1905_v11 }
 0x44c   : > { %v1895_v14 = vpop.f32.mrf.mxu2 }
 0x44d   : > { %v1915_v15 = vadd.f32 %v1895_v14, %v1753_v12 }
 0x44e   : > { %v1868_v17 = vpop.f32.mrf.mxu0 }
 0x44f   : > { %v1906_v18 = vadd.f32 %v1868_v17, %v1744_v13  ;;  %1931 = vst.msk [vmem:[#allocation3 + $0x70] sm:$0xff] %vm1261_vm10, %v1915_v15 }
 0x451   : > { %1922 = vst.msk [vmem:[#allocation3 + $0x28] sm:$0xff] %vm1261_vm10, %v1906_v18 }
 0x454   : > { %v1898_v23 = vpop.f32.mrf.mxu2 }
 0x455   : > { %v1916_v24 = vadd.f32 %v1898_v23, %v1754_v20 }
 0x456   : > { %v1871_v30 = vpop.f32.mrf.mxu0 }
 0x457   : > { %v1907_v31 = vadd.f32 %v1871_v30, %v1745_v22  ;;  %1932 = vst.msk [vmem:[#allocation3 + $0x78] sm:$0xff] %vm1261_vm10, %v1916_v24 }
 0x459   : > { %1923 = vst.msk [vmem:[#allocation3 + $0x30] sm:$0xff] %vm1261_vm10, %v1907_v31 }
 0x45e   : > { %v1874_v34 = vpop.f32.mrf.mxu0 }
 0x45f   : > { %v1908_v37 = vadd.f32 %v1874_v34, %v1746_v10 }
 0x461   : > { %1924 = vst.msk [vmem:[#allocation3 + $0x38] sm:$0xff] %vm1261_vm10, %v1908_v37 }
 0x466   : > { %v1877_v44 = vpop.f32.mrf.mxu0 }
 0x467   : > { %v1909_v60 = vadd.f32 %v1877_v44, %v1747_v38 }
 0x469   : > { %1925 = vst.msk [vmem:[#allocation3 + $0x40] sm:$0xff] %vm1261_vm10, %v1909_v60 }
 0x46d   : > { %1935 = sbr.rel (%p4281_p6) target bundleno = 1871 (0x74f), region = 128 }
 0x46e   : > { %v1880_v0 = vpop.f32.mrf.mxu0 }
 0x46f   : > { %v1910_v2 = vadd.f32 %v1880_v0, %v1748_v61 }
 0x471   : > { %1926 = vst.msk [vmem:[#allocation3 + $0x48] sm:$0xff] %vm1261_vm10, %v1910_v2 }
 0x472   : > { %v1939_v63 = vld [vmem:[%s4939_s11 + $0x18] sm:$0xff]  ;;  %v1938_v4 = vld [vmem:[%s4939_s11 + $0x10] sm:$0xff]  ;;  %v1937_v9 = vld [vmem:[%s4939_s11 + $0x8] sm:$0xff]  ;;  %v4733_v38 = vmov 0  }
 0x473   : > { %1965 = vmatpush.msra.mxu0 %v1939_v63  ;;  %4450 = vmatpush.msra.mxu1 %v1939_v63  ;;  %v1936_v11 = vld [vmem:[%s4939_s11] sm:$0xff]  ;;  %v2042_v12 = vld [vmem:[%s4948_s1 + $0x18] sm:$0xff]  ;;  %v2041_v13 = vld [vmem:[%s4948_s1 + $0x10] sm:$0xff]  ;;  %s6842_s11 = scalar_lea.vmem %s6792_s18, %s4895_s3 }
 0x474   : > { %v4556_v14 = vld [vmem:[%s6842_s11] ss:$0 sm:$0xff]  ;;  %v2040_v15 = vld [vmem:[%s4948_s1 + $0x8] sm:$0xff]  ;;  %4550 = vset.pattern.permute.xlu1 %v4733_v38  ;;  %4549 = vset.pattern.permute.xlu0 %v4733_v38 }
 0x475   : > { %1966 = vmatpush.msra.mxu0 %v1938_v4  ;;  %4451 = vmatpush.msra.mxu1 %v1938_v4  ;;  %v2039_v17 = vld [vmem:[%s4948_s1] sm:$0xff]  ;;  %s4734_s1 = smov 96  }
 0x477   : > { %1967 = vmatpush.msra.mxu0 %v1937_v9  ;;  %4452 = vmatpush.msra.mxu1 %v1937_v9 }
 0x479   : > { %1968 = vmatpush.msra.mxu0 %v1936_v11  ;;  %4453 = vmatpush.msra.mxu1 %v1936_v11 }
 0x47a   : > { %4282 = vmatmul.msk.f32.vlgmr.msra.gmra.mxu0 %vm1261_vm10, %v5428_v1  ;;  %4283 = vmatmul.msk.f32.vlgmr.msra.gmra.mxu1 %vm1261_vm10, %v5423_v42 }
 0x47b   : > { %2064 = vmatpush.msrb.mxu1 %v2042_v12 }
 0x47d   : > { %2065 = vmatpush.msrb.mxu1 %v2041_v13 }
 0x47f   : > { %2066 = vmatpush.msrb.mxu1 %v2040_v15 }
 0x481   : > { %2067 = vmatpush.msrb.mxu1 %v2039_v17 }
 0x482   : > { %4284 = vmatmul.msk.f32.gmra.mxu1 %vm1261_vm10, %v5416_v5 }
 0x4f7   : > { %v1970_v18 = vpop.f32.mrf.mxu0  ;;  %v1973_v1 = vpop.f32.mrf.mxu1 }
 0x4f8   : > { %v1971_v20 = vadd.f32 %v4556_v14, %v1970_v18  ;;  %v1974_v22 = vadd.f32 %v4556_v14, %v1973_v1 }
 0x4fa   : > { %v4285_v42 = vmul.f32 -1.442695, %v1971_v20  ;;  %v4286_v23 = vmul.f32 -1.442695, %v1974_v22 }
 0x4fc   : > { %4557 = vpow2.f32 %v4285_v42 }
 0x4fd   : > { %4559 = vpow2.f32 %v4286_v23 }
 0x4ff   : > { %v1976_v5 = vpop.f32.mrf.mxu1 }
 0x500   : > { %v1977_v24 = vadd.f32 %v4556_v14, %v1976_v5 }
 0x502   : > { %v4558_v30 = vpop.eup %4557  ;;  %v4287_v31 = vmul.f32 -1.442695, %v1977_v24 }
 0x503   : > { %v4560_v10 = vpop.eup %4559  ;;  %v1988_v34 = vadd.f32 1.0, %v4558_v30 }
 0x504   : > { %v1989_v37 = vadd.f32 1.0, %v4560_v10  ;;  %4561 = vpow2.f32 %v4287_v31 }
 0x505   : > { %4563 = vrcp.f32 %v1988_v34  ;;  %v2000_v9 = vand.u32 2147483647, %v1988_v34  ;;  %v2002_v11 = vand.u32 2147483648, %v1988_v34  ;;  %vm1996_vm11 = vweird.f32 %v1988_v34 }
 0x506   : > { %4565 = vrcp.f32 %v1989_v37  ;;  %vm2011_vm15 = vweird.f32 %v1989_v37  ;;  %v2017_v30 = vand.u32 2147483648, %v1989_v37  ;;  %v2015_v10 = vand.u32 2147483647, %v1989_v37 }
 0x507   : > { %vm2001_vm14 = vcmp.eq.f32.partialorder %v2000_v9, 8.507059e+37  ;;  %v2003_v18 = vor.u32 1.1754944e-38, %v2002_v11 }
 0x508   : > { %vm2016_vm2 = vcmp.eq.f32.partialorder %v2015_v10, 8.507059e+37 }
 0x50a   : > { %v4562_v44 = vpop.eup %4561 }
 0x50b   : > { %v4564_v60 = vpop.eup %4563  ;;  %v1990_v61 = vadd.f32 1.0, %v4562_v44 }
 0x50c   : > { %v4566_v0 = vpop.eup %4565  ;;  %v1992_v2 = vmul.f32 %v4564_v60, %v1988_v34  ;;  %vm1997_vm9 = vweird.f32 %v4564_v60  ;;  %v2018_v34 = vor.u32 1.1754944e-38, %v2017_v30 }
 0x50d   : > { %4567 = vrcp.f32 %v1990_v61  ;;  %v2007_v63 = vmul.f32 %v4566_v0, %v1989_v37  ;;  %vm1998_vm12 = vmor %vm1996_vm11, %vm1997_vm9  ;;  %vm2012_vm0 = vweird.f32 %v4566_v0  ;;  %vm2026_vm3 = vweird.f32 %v1990_v61 }
 0x50e   : > { %v1993_v4 = vsub.f32 1.0, %v1992_v2  ;;  %vm2013_vm1 = vmor %vm2011_vm15, %vm2012_vm0  ;;  %v2030_v11 = vand.u32 2147483647, %v1990_v61 }
 0x50f   : > { %v2008_v12 = vsub.f32 1.0, %v2007_v63 }
 0x510   : > { %v1994_v13 = vmul.f32 %v4564_v60, %v1993_v4  ;;  %vm2031_vm6 = vcmp.eq.f32.partialorder %v2030_v11, 8.507059e+37 }
 0x511   : > { %v2009_v14 = vmul.f32 %v4566_v0, %v2008_v12 }
 0x512   : > { %v1995_v15 = vadd.f32 %v4564_v60, %v1994_v13 }
 0x513   : > { %v4568_v17 = vpop.eup %4567  ;;  %v2010_v42 = vadd.f32 %v4566_v0, %v2009_v14 }
 0x514   : > { %v1999_v1 = vsel %vm1998_vm12, %v4564_v60, %v1995_v15  ;;  %v2022_v23 = vmul.f32 %v4568_v17, %v1990_v61  ;;  %vm2027_vm4 = vweird.f32 %v4568_v17  ;;  %v2032_v60 = vand.u32 2147483648, %v1990_v61 }
 0x515   : > { %v2004_v5 = vsel %vm2001_vm14, %v2003_v18, %v1999_v1  ;;  %v2014_v44 = vsel %vm2013_vm1, %v4566_v0, %v2010_v42  ;;  %vm2028_vm5 = vmor %vm2026_vm3, %vm2027_vm4 }
 0x516   : > { %v2036_v31 = vmul.f32 %v2004_v5, %v1971_v20  ;;  %v2023_v38 = vsub.f32 1.0, %v2022_v23  ;;  %v2019_v63 = vsel %vm2016_vm2, %v2018_v34, %v2014_v44  ;;  %v2033_v37 = vor.u32 1.1754944e-38, %v2032_v60  ;;  %v2084_v44 = vld [vmem:[#allocation4 + $0x30] sm:$0xff]  ;;  %v2081_v60 = vld [vmem:[#allocation4 + $0x18] sm:$0xff] }
 0x517   : > { %v2037_v9 = vmul.f32 %v2019_v63, %v1974_v22 }
 0x518   : > { %4288 = vmatmul.msk.f32.vlgmr.msrb.gmra.mxu1 %vm1261_vm10, %v2036_v31  ;;  %v2024_v2 = vmul.f32 %v4568_v17, %v2023_v38 }
 0x51a   : > { %v2025_v4 = vadd.f32 %v4568_v17, %v2024_v2  ;;  %v2090_v2 = vld [vmem:[#allocation4 + $0x60] sm:$0xff] }
 0x51c   : > { %v2029_v20 = vsel %vm2028_vm5, %v4568_v17, %v2025_v4 }
 0x51d   : > { %v2034_v12 = vsel %vm2031_vm6, %v2033_v37, %v2029_v20  ;;  %v2085_v37 = vld [vmem:[#allocation4 + $0x38] sm:$0xff] }
 0x51e   : > { %v2038_v13 = vmul.f32 %v2034_v12, %v1977_v24  ;;  %v2091_v12 = vld [vmem:[#allocation4 + $0x68] sm:$0xff] }
 0x520   : > { %4289 = vmatmul.msk.f32.gmra.mxu1 %vm1261_vm10, %v2037_v9 }
 0x528   : > { %4290 = vmatmul.msk.f32.gmra.mxu1 %vm1261_vm10, %v2038_v13 }
 0x595   : > { %v2069_v0 = vpop.f32.mrf.mxu1 }
 0x596   : > { %2096 = vperm.xlu1 %4550, %v2069_v0  }
 0x59d   : > { %v2072_v14 = vpop.f32.mrf.mxu1 }
 0x5a5   : > { %v2075_v15 = vpop.f32.mrf.mxu1 }
 0x5a6   : > { %2106 = vperm.xlu0 %4549, %v2075_v15  }
 0x5ae   : > { %2101 = vperm.xlu0 %4549, %v2072_v14  }
 0x608   : > { %v2097_v18 = vpop.permute.xlu1 %2096 }
 0x609   : > { %v2109_v22 = vmul.f32 %v2097_v18, %v5287_v16  ;;  %v2078_v16 = vld [vmem:[#allocation4] sm:$0xff] }
 0x60a   : > { %v2086_v18 = vld [vmem:[#allocation4 + $0x40] sm:$0xff] }
 0x60b   : > { %2115 = vrot.lane.b32.xlu2 %v2109_v22, %s4734_s1  ;;  %v2092_v22 = vld [vmem:[#allocation4 + $0x70] sm:$0xff] }
 0x618   : > { %v2107_v61 = vpop.permute.xlu0 %2106 }
 0x619   : > { %v2111_v17 = vmul.f32 %v2107_v61, %v5301_v25 }
 0x620   : > { %v2102_v1 = vpop.permute.xlu0 %2101 }
 0x621   : > { %v2110_v42 = vmul.f32 %v2102_v1, %v5292_v19 }
 0x623   : > { %v4551_v24 = vpack.i.bf16 %v2110_v42, %v2111_v17 }
 0x625   : > { %4552 = vrot.lane.b32.xlu1 %v4551_v24, %s4734_s1  ;;  %v2087_v24 = vld [vmem:[#allocation4 + $0x48] sm:$0xff] }
 0x665   : > { %v2116_v31 = vpop.permute.xlu2 %2115 }
 0x697   : > { %v4553_v23 = vpop.permute.xlu1 %4552 }
 0x698   : > { %v4554_v5 = vunpack.i.l.bf16 %v4553_v23  ;;  %v4555_v30 = vunpack.i.h.bf16 %v4553_v23  ;;  %v2093_v23 = vld [vmem:[#allocation4 + $0x78] sm:$0xff] }
 0x69a   : > { %2137 = vmatpush.msrb.mxu0 %v4554_v5  ;;  %4454 = vmatpush.msra.mxu2 %v4554_v5 }
 0x69b   : > { %4455 = vmatpush.msra.mxu3 %v4554_v5 }
 0x69c   : > { %2138 = vmatpush.msrb.mxu0 %v4555_v30  ;;  %4456 = vmatpush.msra.mxu2 %v4555_v30 }
 0x69d   : > { %4457 = vmatpush.msra.mxu3 %v4555_v30 }
 0x69e   : > { %2139 = vmatpush.msrb.mxu0 %v2116_v31  ;;  %4458 = vmatpush.msra.mxu2 %v2116_v31 }
 0x69f   : > { %4459 = vmatpush.msra.mxu3 %v2116_v31  ;;  %4295 = vmatmul.msk.f32.vlgmr.msra.gmra.mxu2 %vm1787_vm8, %v5391_v32 }
 0x6a0   : > { %4301 = vmatmul.msk.f32.vlgmr.msra.gmra.mxu3 %vm1787_vm8, %v5418_v6  ;;  %4291 = vmatmul.msk.f32.vlgmr.msrb.gmra.mxu0 %vm1787_vm8, %v5378_v26  ;;  %v2082_v26 = vld [vmem:[#allocation4 + $0x20] sm:$0xff]  ;;  %v2089_v6 = vld [vmem:[#allocation4 + $0x58] sm:$0xff] }
 0x6a7   : > { %4296 = vmatmul.msk.f32.gmra.mxu2 %vm1787_vm8, %v5396_v35  ;;  %v2079_v35 = vld [vmem:[#allocation4 + $0x8] sm:$0xff] }
 0x6a8   : > { %4302 = vmatmul.msk.f32.gmra.mxu3 %vm1787_vm8, %v5436_v36  ;;  %4292 = vmatmul.msk.f32.gmra.mxu0 %vm1787_vm8, %v5380_v27  ;;  %v2088_v27 = vld [vmem:[#allocation4 + $0x50] sm:$0xff] }
 0x6af   : > { %4297 = vmatmul.msk.f32.gmra.mxu2 %vm1787_vm8, %v5401_v46 }
 0x6b0   : > { %4303 = vmatmul.msk.f32.gmra.mxu3 %vm1787_vm8, %v5442_v33  ;;  %4293 = vmatmul.msk.f32.gmra.mxu0 %vm1787_vm8, %v5382_v28 }
 0x6b7   : > { %4298 = vmatmul.msk.f32.gmra.mxu2 %vm1787_vm8, %v5403_v62 }
 0x6b8   : > { %4304 = vmatmul.msk.f32.gmra.mxu3 %vm1787_vm8, %v5448_v58  ;;  %4294 = vmatmul.msk.f32.gmra.mxu0 %vm1787_vm8, %v5384_v29 }
 0x6bf   : > { %4299 = vmatmul.msk.f32.gmra.mxu2 %vm1787_vm8, %v5405_v7 }
 0x6c0   : > { %4305 = vmatmul.msk.f32.gmra.mxu3 %vm1787_vm8, %v5454_v3  ;;  %v2080_v3 = vld [vmem:[#allocation4 + $0x10] sm:$0xff] }
 0x6c7   : > { %4300 = vmatmul.msk.f32.gmra.mxu2 %vm1787_vm8, %v5407_v21  ;;  %v2083_v21 = vld [vmem:[#allocation4 + $0x28] sm:$0xff] }
 0x6c8   : > { %4306 = vmatmul.msk.f32.gmra.mxu3 %vm1787_vm8, %v5460_v8 }
 0x71d   : > { %v2141_v19 = vpop.f32.mrf.mxu0 }
 0x71e   : > { %v2189_v25 = vadd.f32 %v2141_v19, %v2078_v16 }
 0x720   : > { %2205 = vst.msk [vmem:[#allocation4] sm:$0xff] %vm1278_vm13, %v2189_v25 }
 0x722   : > { %v2153_v28 = vpop.f32.mrf.mxu2 }
 0x723   : > { %v2193_v29 = vadd.f32 %v2153_v28, %v2082_v26  ;;  %v2171_v32 = vpop.f32.mrf.mxu3 }
 0x724   : > { %v2199_v46 = vadd.f32 %v2171_v32, %v2088_v27 }
 0x725   : > { %2209 = vst.msk [vmem:[#allocation4 + $0x20] sm:$0xff] %vm1278_vm13, %v2193_v29  ;;  %v2144_v62 = vpop.f32.mrf.mxu0 }
 0x726   : > { %2215 = vst.msk [vmem:[#allocation4 + $0x50] sm:$0xff] %vm1278_vm13, %v2199_v46  ;;  %v2190_v7 = vadd.f32 %v2144_v62, %v2079_v35 }
 0x728   : > { %2206 = vst.msk [vmem:[#allocation4 + $0x8] sm:$0xff] %vm1278_vm13, %v2190_v7 }
 0x72a   : > { %v2156_v36 = vpop.f32.mrf.mxu2 }
 0x72b   : > { %v2194_v33 = vadd.f32 %v2156_v36, %v2083_v21  ;;  %v2174_v58 = vpop.f32.mrf.mxu3 }
 0x72c   : > { %v2200_v8 = vadd.f32 %v2174_v58, %v2089_v6 }
 0x72d   : > { %2210 = vst.msk [vmem:[#allocation4 + $0x28] sm:$0xff] %vm1278_vm13, %v2194_v33  ;;  %v2147_v10 = vpop.f32.mrf.mxu0 }
 0x72e   : > { %2216 = vst.msk [vmem:[#allocation4 + $0x58] sm:$0xff] %vm1278_vm13, %v2200_v8  ;;  %v2191_v38 = vadd.f32 %v2147_v10, %v2080_v3 }
 0x730   : > { %2207 = vst.msk [vmem:[#allocation4 + $0x10] sm:$0xff] %vm1278_vm13, %v2191_v38 }
 0x732   : > { %v2159_v34 = vpop.f32.mrf.mxu2 }
 0x733   : > { %v2195_v63 = vadd.f32 %v2159_v34, %v2084_v44  ;;  %v2177_v4 = vpop.f32.mrf.mxu3 }
 0x734   : > { %v2201_v9 = vadd.f32 %v2177_v4, %v2090_v2 }
 0x735   : > { %2211 = vst.msk [vmem:[#allocation4 + $0x30] sm:$0xff] %vm1278_vm13, %v2195_v63  ;;  %v2150_v11 = vpop.f32.mrf.mxu0 }
 0x736   : > { %2217 = vst.msk [vmem:[#allocation4 + $0x60] sm:$0xff] %vm1278_vm13, %v2201_v9  ;;  %v2192_v20 = vadd.f32 %v2150_v11, %v2081_v60 }
 0x738   : > { %2208 = vst.msk [vmem:[#allocation4 + $0x18] sm:$0xff] %vm1278_vm13, %v2192_v20 }
 0x73a   : > { %v2162_v13 = vpop.f32.mrf.mxu2 }
 0x73b   : > { %v2196_v0 = vadd.f32 %v2162_v13, %v2085_v37  ;;  %v2180_v14 = vpop.f32.mrf.mxu3 }
 0x73c   : > { %v2202_v15 = vadd.f32 %v2180_v14, %v2091_v12 }
 0x73d   : > { %2212 = vst.msk [vmem:[#allocation4 + $0x38] sm:$0xff] %vm1278_vm13, %v2196_v0 }
 0x73e   : > { %2218 = vst.msk [vmem:[#allocation4 + $0x68] sm:$0xff] %vm1278_vm13, %v2202_v15 }
 0x742   : > { %v2165_v61 = vpop.f32.mrf.mxu2 }
 0x743   : > { %v2197_v1 = vadd.f32 %v2165_v61, %v2086_v18  ;;  %v2183_v17 = vpop.f32.mrf.mxu3 }
 0x744   : > { %v2203_v42 = vadd.f32 %v2183_v17, %v2092_v22 }
 0x745   : > { %2213 = vst.msk [vmem:[#allocation4 + $0x40] sm:$0xff] %vm1278_vm13, %v2197_v1 }
 0x746   : > { %2219 = vst.msk [vmem:[#allocation4 + $0x70] sm:$0xff] %vm1278_vm13, %v2203_v42 }
 0x74a   : > { %v2168_v5 = vpop.f32.mrf.mxu2 }
 0x74b   : > { %v2198_v30 = vadd.f32 %v2168_v5, %v2087_v24  ;;  %v2186_v31 = vpop.f32.mrf.mxu3 }
 0x74c   : > { %v2204_v16 = vadd.f32 %v2186_v31, %v2093_v23 }
 0x74d   : > { %2214 = vst.msk [vmem:[#allocation4 + $0x48] sm:$0xff] %vm1278_vm13, %v2198_v30 }
 0x74e   : > { %2220 = vst.msk [vmem:[#allocation4 + $0x78] sm:$0xff] %vm1278_vm13, %v2204_v16 }
 0x74f PF: > { %v2247_v19 = vld [vmem:[%s4925_s28 + $0x38] sm:$0xff]  ;;  %v2246_v26 = vld [vmem:[%s4925_s28 + $0x30] sm:$0xff]  ;;  %v2245_v28 = vld [vmem:[%s4925_s28 + $0x28] sm:$0xff]  ;;  %s6843_s22 = scalar_lea.vmem %s6788_s14, %s4895_s3  ;;  %s6860_s30 = scalar_lea.vmem %s6790_s16, %s4895_s3 }
 0x750   : > { %v2243_v25 = vld [vmem:[%s4925_s28 + $0x18] sm:$0xff]  ;;  %2308 = vmatpush.msra.mxu0 %v2247_v19  ;;  %4460 = vmatpush.msra.mxu3 %v2247_v19  ;;  %v2242_v27 = vld [vmem:[%s4925_s28 + $0x10] sm:$0xff]  ;;  %v2241_v29 = vld [vmem:[%s4925_s28 + $0x8] sm:$0xff]  ;;  %s6861_s21 = sld [smem:[#allocation14_spill]] (!%p4281_p6)  ;;  %s4736_s3 = smov (!%p4281_p6), 32  }
 0x751   : > { %2421 = vmatpush.msra.mxu1 %v2243_v25  ;;  %v2244_v32 = vld [vmem:[%s4925_s28 + $0x20] sm:$0xff]  ;;  %v2225_v7 = vld [vmem:[#allocation3 + $0x8] sm:$0xff]  ;;  %v2226_v6 = vld [vmem:[#allocation3 + $0x10] sm:$0xff]  ;;  %s6863_s2 = sld [smem:[#allocation21_spill]] (!%p4281_p6) }
 0x752   : > { %2309 = vmatpush.msra.mxu0 %v2246_v26  ;;  %4461 = vmatpush.msra.mxu3 %v2246_v26  ;;  %v2240_v35 = vld [vmem:[%s4925_s28] sm:$0xff]  ;;  %v2237_v21 = vld [vmem:[#allocation3 + $0x68] sm:$0xff]  ;;  %v2238_v36 = vld [vmem:[#allocation3 + $0x70] sm:$0xff]  ;;  %s6864_s11 = sld [smem:[#allocation20_spill]] (!%p4281_p6) }
 0x753   : > { %2422 = vmatpush.msra.mxu1 %v2242_v27  ;;  %v2224_v46 = vld [vmem:[#allocation3] sm:$0xff]  ;;  %v2227_v33 = vld [vmem:[#allocation3 + $0x18] sm:$0xff]  ;;  %v2229_v8 = vld [vmem:[#allocation3 + $0x28] sm:$0xff]  ;;  %s6879_s25 = sld [smem:[#allocation22_spill]] (!%p4281_p6) }
 0x754   : > { %2310 = vmatpush.msra.mxu0 %v2245_v28  ;;  %4462 = vmatpush.msra.mxu3 %v2245_v28  ;;  %v2236_v62 = vld [vmem:[#allocation3 + $0x60] sm:$0xff]  ;;  %v2239_v58 = vld [vmem:[#allocation3 + $0x78] sm:$0xff]  ;;  %v2230_v10 = vld [vmem:[#allocation3 + $0x30] sm:$0xff]  ;;  %s6880_s9 = sld [smem:[#allocation23_spill]] (!%p4281_p6) }
 0x755   : > { %2423 = vmatpush.msra.mxu1 %v2241_v29  ;;  %v2228_v3 = vld [vmem:[#allocation3 + $0x20] sm:$0xff]  ;;  %v2231_v38 = vld [vmem:[#allocation3 + $0x38] sm:$0xff]  ;;  %v2233_v2 = vld [vmem:[#allocation3 + $0x48] sm:$0xff] }
 0x756   : > { %2311 = vmatpush.msra.mxu0 %v2244_v32  ;;  %4463 = vmatpush.msra.mxu3 %v2244_v32  ;;  %v2232_v44 = vld [vmem:[#allocation3 + $0x40] sm:$0xff]  ;;  %v2234_v34 = vld [vmem:[#allocation3 + $0x50] sm:$0xff]  ;;  %v2235_v63 = vld [vmem:[#allocation3 + $0x58] sm:$0xff] }
 0x757   : > { %2424 = vmatpush.msra.mxu1 %v2240_v35  ;;  %4307 = vmatmul.msk.f32.vlgmr.msra.gmra.mxu0 %vm1261_vm10, %v2224_v46  ;;  %v2817_v4 = vld [vmem:[%s4930_s26 + $0x18] sm:$0xff]  ;;  %v2816_v60 = vld [vmem:[%s4930_s26 + $0x10] sm:$0xff]  ;;  %v5629_v11 = vld [vmem:[%s6843_s22] ss:$0 sm:$0xff] }
 0x758   : > { %4319 = vmatmul.msk.f32.vlgmr.msra.gmra.mxu3 %vm1261_vm10, %v2236_v62  ;;  %4323 = vmatmul.msk.f32.vlgmr.msra.gmra.mxu1 %vm1261_vm10, %v5201_v57  ;;  %v2815_v20 = vld [vmem:[%s4930_s26 + $0x8] sm:$0xff]  ;;  %v2814_v13 = vld [vmem:[%s4930_s26] sm:$0xff]  ;;  %s6862_s26 = sld [smem:[#allocation15_spill]] (!%p4281_p6) }
 0x759   : > { %4464 = vmatpush.msrb.mxu3 %v2243_v25  ;;  %2882 = vmatpush.msra.mxu2 %v2817_v4 }
 0x75b   : > { %4465 = vmatpush.msrb.mxu3 %v2242_v27  ;;  %2883 = vmatpush.msra.mxu2 %v2816_v60 }
 0x75d   : > { %4466 = vmatpush.msrb.mxu3 %v2241_v29  ;;  %2884 = vmatpush.msra.mxu2 %v2815_v20 }
 0x75f   : > { %4308 = vmatmul.msk.f32.gmra.mxu0 %vm1261_vm10, %v2225_v7  ;;  %4467 = vmatpush.msrb.mxu3 %v2240_v35 }
 0x760   : > { %4320 = vmatmul.msk.f32.gmra.mxu3 %vm1261_vm10, %v2237_v21  ;;  %4324 = vmatmul.msk.f32.gmra.mxu1 %vm1261_vm10, %v5198_v56 }
 0x761   : > { %4468 = vmatpush.msra.mxu3 %v2817_v4  ;;  %2885 = vmatpush.msra.mxu2 %v2814_v13 }
 0x763   : > { %4469 = vmatpush.msra.mxu3 %v2816_v60 }
 0x765   : > { %4470 = vmatpush.msra.mxu3 %v2815_v20 }
 0x767   : > { %4309 = vmatmul.msk.f32.gmra.mxu0 %vm1261_vm10, %v2226_v6  ;;  %4471 = vmatpush.msra.mxu3 %v2814_v13 }
 0x768   : > { %4321 = vmatmul.msk.f32.gmra.mxu3 %vm1261_vm10, %v2238_v36  ;;  %4325 = vmatmul.msk.f32.gmra.mxu1 %vm1261_vm10, %v5195_v55 }
 0x76f   : > { %4310 = vmatmul.msk.f32.gmra.mxu0 %vm1261_vm10, %v2227_v33 }
 0x770   : > { %4322 = vmatmul.msk.f32.gmra.mxu3 %vm1261_vm10, %v2239_v58  ;;  %4326 = vmatmul.msk.f32.gmra.mxu1 %vm1261_vm10, %v5192_v54 }
 0x777   : > { %4311 = vmatmul.msk.f32.gmra.mxu0 %vm1261_vm10, %v2228_v3 }
 0x778   : > { %4327 = vmatmul.msk.f32.gmra.mxu1 %vm1261_vm10, %v5189_v53  ;;  %4335 = vmatmul.msk.f32.vlgmr.msrb.gmra.mxu3 %vm1261_vm10, %v5159_v43 }
 0x77f   : > { %4312 = vmatmul.msk.f32.gmra.mxu0 %vm1261_vm10, %v2229_v8 }
 0x780   : > { %4328 = vmatmul.msk.f32.gmra.mxu1 %vm1261_vm10, %v5186_v52  ;;  %4336 = vmatmul.msk.f32.gmra.mxu3 %vm1261_vm10, %v5153_v41 }
 0x787   : > { %4313 = vmatmul.msk.f32.gmra.mxu0 %vm1261_vm10, %v2230_v10 }
 0x788   : > { %4329 = vmatmul.msk.f32.gmra.mxu1 %vm1261_vm10, %v5183_v51  ;;  %4337 = vmatmul.msk.f32.gmra.mxu3 %vm1261_vm10, %v5150_v40 }
 0x78f   : > { %4314 = vmatmul.msk.f32.gmra.mxu0 %vm1261_vm10, %v2231_v38 }
 0x790   : > { %4330 = vmatmul.msk.f32.gmra.mxu1 %vm1261_vm10, %v5180_v50  ;;  %4338 = vmatmul.msk.f32.gmra.mxu3 %vm1261_vm10, %v5148_v39 }
 0x797   : > { %4315 = vmatmul.msk.f32.gmra.mxu0 %vm1261_vm10, %v2232_v44 }
 0x798   : > { %4331 = vmatmul.msk.f32.gmra.mxu1 %vm1261_vm10, %v5177_v49 }
 0x79f   : > { %4316 = vmatmul.msk.f32.gmra.mxu0 %vm1261_vm10, %v2233_v2 }
 0x7a0   : > { %4332 = vmatmul.msk.f32.gmra.mxu1 %vm1261_vm10, %v5174_v48 }
 0x7a7   : > { %4317 = vmatmul.msk.f32.gmra.mxu0 %vm1261_vm10, %v2234_v34 }
 0x7a8   : > { %4333 = vmatmul.msk.f32.gmra.mxu1 %vm1261_vm10, %v5171_v47 }
 0x7af   : > { %4318 = vmatmul.msk.f32.gmra.mxu0 %vm1261_vm10, %v2235_v63 }
 0x7b0   : > { %4334 = vmatmul.msk.f32.gmra.mxu1 %vm1261_vm10, %v5165_v45 }
 0x7d4   : > { %v2313_v9 = vpop.f32.mrf.mxu0 }
 0x7d5   : > { %v2426_v37 = vpop.f32.mrf.mxu1 }
 0x7d6   : > { %v2427_v12 = vadd.f32 %v2426_v37, %v2313_v9 }
 0x7d8   : > { %v2478_v0 = vadd.f32 %v5629_v11, %v2427_v12 }
 0x7da   : > { %v4339_v14 = vmul.f32 -1.442695, %v2478_v0 }
 0x7db   : > { %v5634_v15 = vpop.f32.mrf.mxu3 }
 0x7dc   : > { %4571 = vpow2.f32 %v4339_v14  ;;  %v2316_v18 = vpop.f32.mrf.mxu0 }
 0x7dd   : > { %v2429_v22 = vpop.f32.mrf.mxu1 }
 0x7de   : > { %v2430_v61 = vadd.f32 %v2429_v22, %v2316_v18 }
 0x7e0   : > { %v5637_v1 = vadd.f32 %v5629_v11, %v2430_v61 }
 0x7e2   : > { %v4572_v17 = vpop.eup %4571  ;;  %v4340_v42 = vmul.f32 -1.442695, %v5637_v1 }
 0x7e3   : > { %v2542_v24 = vadd.f32 1.0, %v4572_v17  ;;  %v5640_v23 = vpop.f32.mrf.mxu3 }
 0x7e4   : > { %4573 = vpow2.f32 %v4340_v42  ;;  %v2319_v5 = vpop.f32.mrf.mxu0 }
 0x7e5   : > { %4575 = vrcp.f32 %v2542_v24  ;;  %v2432_v30 = vpop.f32.mrf.mxu1  ;;  %v2569_v7 = vand.u32 2147483648, %v2542_v24  ;;  %v2567_v36 = vand.u32 2147483647, %v2542_v24  ;;  %vm2563_vm8 = vweird.f32 %v2542_v24 }
 0x7e6   : > { %v2433_v31 = vadd.f32 %v2432_v30, %v2319_v5 }
 0x7e7   : > { %v2570_v44 = vor.u32 1.1754944e-38, %v2569_v7  ;;  %vm2568_vm11 = vcmp.eq.f32.partialorder %v2567_v36, 8.507059e+37 }
 0x7e8   : > { %v5643_v16 = vadd.f32 %v5629_v11, %v2433_v31 }
 0x7ea   : > { %v4574_v19 = vpop.eup %4573  ;;  %v4341_v25 = vmul.f32 -1.442695, %v5643_v16 }
 0x7eb   : > { %v4576_v26 = vpop.eup %4575  ;;  %v2543_v27 = vadd.f32 1.0, %v4574_v19  ;;  %v5646_v28 = vpop.f32.mrf.mxu3 }
 0x7ec   : > { %4577 = vpow2.f32 %v4341_v25  ;;  %v2322_v29 = vpop.f32.mrf.mxu0  ;;  %v2559_v32 = vmul.f32 %v4576_v26, %v2542_v24  ;;  %vm2564_vm7 = vweird.f32 %v4576_v26 }
 0x7ed   : > { %4579 = vrcp.f32 %v2543_v27  ;;  %v2435_v35 = vpop.f32.mrf.mxu1  ;;  %vm2565_vm9 = vmor %vm2563_vm8, %vm2564_vm7  ;;  %v2582_v12 = vand.u32 2147483647, %v2543_v27  ;;  %v2584_v13 = vand.u32 2147483648, %v2543_v27  ;;  %vm2578_vm14 = vweird.f32 %v2543_v27 }
 0x7ee   : > { %v2436_v46 = vadd.f32 %v2435_v35, %v2322_v29  ;;  %v2560_v62 = vsub.f32 1.0, %v2559_v32 }
 0x7ef   : > { %vm2583_vm0 = vcmp.eq.f32.partialorder %v2582_v12, 8.507059e+37 }
 0x7f0   : > { %v5649_v21 = vadd.f32 %v5629_v11, %v2436_v46  ;;  %v2561_v6 = vmul.f32 %v4576_v26, %v2560_v62 }
 0x7f2   : > { %v4578_v33 = vpop.eup %4577  ;;  %v4342_v58 = vmul.f32 -1.442695, %v5649_v21  ;;  %v2562_v3 = vadd.f32 %v4576_v26, %v2561_v6 }
 0x7f3   : > { %v4580_v8 = vpop.eup %4579  ;;  %v2544_v10 = vadd.f32 1.0, %v4578_v33  ;;  %v5652_v38 = vpop.f32.mrf.mxu3 }
 0x7f4   : > { %4581 = vpow2.f32 %v4342_v58  ;;  %v2325_v2 = vpop.f32.mrf.mxu0  ;;  %v2566_v34 = vsel %vm2565_vm9, %v4576_v26, %v2562_v3  ;;  %v2574_v63 = vmul.f32 %v4580_v8, %v2543_v27  ;;  %vm2579_vm12 = vweird.f32 %v4580_v8 }
 0x7f5   : > { %4583 = vrcp.f32 %v2544_v10  ;;  %v2438_v4 = vpop.f32.mrf.mxu1  ;;  %v2571_v60 = vsel %vm2568_vm11, %v2570_v44, %v2566_v34  ;;  %vm2580_vm15 = vmor %vm2578_vm14, %vm2579_vm12  ;;  %v2597_v62 = vand.u32 2147483647, %v2544_v10  ;;  %v2599_v7 = vand.u32 2147483648, %v2544_v10 }
 0x7f6   : > { %v2439_v9 = vadd.f32 %v2438_v4, %v2325_v2  ;;  %v2798_v20 = vmul.f32 %v2571_v60, %v2478_v0  ;;  %v2575_v37 = vsub.f32 1.0, %v2574_v63  ;;  %v2585_v0 = vor.u32 1.1754944e-38, %v2584_v13 }
 0x7f7   : > { %vm2593_vm2 = vweird.f32 %v2544_v10  ;;  %vm2598_vm4 = vcmp.eq.f32.partialorder %v2597_v62, 8.507059e+37  ;;  %v2600_v2 = vor.u32 1.1754944e-38, %v2599_v7 }
 0x7f8   : > { %v5655_v14 = vadd.f32 %v5629_v11, %v2439_v9  ;;  %4355 = vmatmul.msk.f32.vlgmr.msra.gmra.mxu2 %vm1261_vm10, %v2798_v20  ;;  %v2576_v18 = vmul.f32 %v4580_v8, %v2575_v37 }
 0x7fa   : > { %v4582_v22 = vpop.eup %4581  ;;  %v4343_v61 = vmul.f32 -1.442695, %v5655_v14  ;;  %v2577_v17 = vadd.f32 %v4580_v8, %v2576_v18 }
 0x7fb   : > { %v4584_v42 = vpop.eup %4583  ;;  %v5659_v24 = vadd.f32 1.0, %v4582_v22  ;;  %v2462_v5 = vpop.f32.mrf.mxu3 }
 0x7fc   : > { %4585 = vpow2.f32 %v4343_v61  ;;  %v2463_v30 = vadd.f32 %v2462_v5, %v5634_v15  ;;  %v2328_v31 = vpop.f32.mrf.mxu0  ;;  %v2581_v19 = vsel %vm2580_vm15, %v4580_v8, %v2577_v17  ;;  %v2589_v25 = vmul.f32 %v4584_v42, %v2544_v10 }
 0x7fd   : > { %4587 = vrcp.f32 %v5659_v24  ;;  %v2441_v26 = vpop.f32.mrf.mxu1  ;;  %v2586_v29 = vsel %vm2583_vm0, %v2585_v0, %v2581_v19  ;;  %vm2594_vm1 = vweird.f32 %v4584_v42  ;;  %v2612_v10 = vand.u32 2147483647, %v5659_v24 }
 0x7fe   : > { %v5664_v32 = vadd.f32 %v5629_v11, %v2463_v30  ;;  %v2442_v27 = vadd.f32 %v2441_v26, %v2328_v31  ;;  %v2799_v35 = vmul.f32 %v2586_v29, %v5637_v1  ;;  %v2590_v46 = vsub.f32 1.0, %v2589_v25  ;;  %vm2595_vm3 = vmor %vm2593_vm2, %vm2594_vm1 }
 0x7ff   : > { %v2614_v22 = vand.u32 2147483648, %v5659_v24  ;;  %vm2608_vm6 = vweird.f32 %v5659_v24  ;;  %vm5693_vm7 = vcmp.eq.f32.partialorder %v2612_v10, 8.507059e+37 }
 0x800   : > { %v4351_v6 = vmul.f32 -1.442695, %v5664_v32  ;;  %v5669_v15 = vadd.f32 %v5629_v11, %v2442_v27  ;;  %4356 = vmatmul.msk.f32.gmra.mxu2 %vm1261_vm10, %v2799_v35  ;;  %v2591_v36 = vmul.f32 %v4584_v42, %v2590_v46 }
 0x801   : > { %v2615_v26 = vor.u32 1.1754944e-38, %v2614_v22 }
 0x802   : > { %v4586_v33 = vpop.eup %4585  ;;  %4589 = vpow2.f32 %v4351_v6  ;;  %v4344_v58 = vmul.f32 -1.442695, %v5669_v15  ;;  %v2592_v3 = vadd.f32 %v4584_v42, %v2591_v36 }
 0x803   : > { %v4588_v8 = vpop.eup %4587  ;;  %v5673_v1 = vadd.f32 1.0, %v4586_v33  ;;  %v2465_v44 = vpop.f32.mrf.mxu3 }
 0x804   : > { %4591 = vpow2.f32 %v4344_v58  ;;  %v2466_v34 = vadd.f32 %v2465_v44, %v5640_v23  ;;  %v2331_v63 = vpop.f32.mrf.mxu0  ;;  %v2596_v4 = vsel %vm2595_vm3, %v4584_v42, %v2592_v3  ;;  %v2604_v60 = vmul.f32 %v4588_v8, %v5659_v24 }
 0x805   : > { %4593 = vrcp.f32 %v5673_v1  ;;  %v2444_v9 = vpop.f32.mrf.mxu1  ;;  %v2601_v20 = vsel %vm2598_vm4, %v2600_v2, %v2596_v4  ;;  %vm2609_vm5 = vweird.f32 %v4588_v8  ;;  %v2627_v29 = vand.u32 2147483647, %v5673_v1 }
 0x806   : > { %v5680_v37 = vadd.f32 %v5629_v11, %v2466_v34  ;;  %v2445_v12 = vadd.f32 %v2444_v9, %v2331_v63  ;;  %v2800_v13 = vmul.f32 %v2601_v20, %v5643_v16  ;;  %v2605_v18 = vsub.f32 1.0, %v2604_v60  ;;  %vm2610_vm8 = vmor %vm2608_vm6, %vm2609_vm5 }
 0x807   : > { %v2629_v24 = vand.u32 2147483648, %v5673_v1  ;;  %vm2623_vm9 = vweird.f32 %v5673_v1  ;;  %vm5717_vm11 = vcmp.eq.f32.partialorder %v2627_v29, 8.507059e+37 }
 0x808   : > { %v4590_v23 = vpop.eup %4589  ;;  %v4352_v61 = vmul.f32 -1.442695, %v5680_v37  ;;  %v5686_v17 = vadd.f32 %v5629_v11, %v2445_v12  ;;  %4357 = vmatmul.msk.f32.gmra.mxu2 %vm1261_vm10, %v2800_v13  ;;  %v2606_v42 = vmul.f32 %v4588_v8, %v2605_v18 }
 0x809   : > { %v5689_v5 = vadd.f32 1.0, %v4590_v23  ;;  %v2630_v60 = vor.u32 1.1754944e-38, %v2629_v24 }
 0x80a   : > { %v4592_v0 = vpop.eup %4591  ;;  %4595 = vpow2.f32 %v4352_v61  ;;  %v4345_v16 = vmul.f32 -1.442695, %v5686_v17  ;;  %v2607_v30 = vadd.f32 %v4588_v8, %v2606_v42 }
 0x80b   : > { %v5697_v19 = vpop.eup %4593  ;;  %4597 = vrcp.f32 %v5689_v5  ;;  %v2468_v25 = vpop.f32.mrf.mxu3  ;;  %v5702_v27 = vadd.f32 1.0, %v4592_v0  ;;  %v2747_v7 = vand.u32 2147483647, %v5689_v5  ;;  %v2749_v6 = vand.u32 2147483648, %v5689_v5 }
 0x80c   : > { %4599 = vpow2.f32 %v4345_v16  ;;  %v2469_v35 = vadd.f32 %v2468_v25, %v5646_v28  ;;  %v2334_v46 = vpop.f32.mrf.mxu0  ;;  %v2611_v62 = vsel %vm2610_vm8, %v4588_v8, %v2607_v30  ;;  %v2619_v58 = vmul.f32 %v5697_v19, %v5673_v1 }
 0x80d   : > { %v2447_v36 = vpop.f32.mrf.mxu1  ;;  %v2616_v33 = vsel %vm5693_vm7, %v2615_v26, %v2611_v62  ;;  %4601 = vrcp.f32 %v5702_v27  ;;  %vm2743_vm12 = vweird.f32 %v5689_v5  ;;  %vm2624_vm14 = vweird.f32 %v5697_v19 }
 0x80e   : > { %v5713_v3 = vadd.f32 %v5629_v11, %v2469_v35  ;;  %v2448_v44 = vadd.f32 %v2447_v36, %v2334_v46  ;;  %v2801_v28 = vmul.f32 %v2616_v33, %v5649_v21  ;;  %v2620_v8 = vsub.f32 1.0, %v2619_v58  ;;  %vm2625_vm0 = vmor %vm2623_vm9, %vm2624_vm14 }
 0x80f   : > { %v2750_v21 = vor.u32 1.1754944e-38, %v2749_v6  ;;  %vm5732_vm15 = vcmp.eq.f32.partialorder %v2747_v7, 8.507059e+37  ;;  %v2642_v23 = vand.u32 2147483647, %v5702_v27  ;;  %v2644_v16 = vand.u32 2147483648, %v5702_v27 }
 0x810   : > { %v4596_v34 = vpop.eup %4595  ;;  %v4353_v63 = vmul.f32 -1.442695, %v5713_v3  ;;  %v5724_v4 = vadd.f32 %v5629_v11, %v2448_v44  ;;  %4358 = vmatmul.msk.f32.gmra.mxu2 %vm1261_vm10, %v2801_v28  ;;  %v2621_v10 = vmul.f32 %v5697_v19, %v2620_v8  ;;  %vm2638_vm1 = vweird.f32 %v5702_v27 }
 0x811   : > { %v4598_v9 = vpop.eup %4597  ;;  %v5727_v20 = vadd.f32 1.0, %v4596_v34  ;;  %vm5758_vm3 = vcmp.eq.f32.partialorder %v2642_v23, 8.507059e+37  ;;  %v2645_v33 = vor.u32 1.1754944e-38, %v2644_v16 }
 0x812   : > { %v4600_v12 = vpop.eup %4599  ;;  %v2739_v13 = vmul.f32 %v4598_v9, %v5689_v5  ;;  %4603 = vpow2.f32 %v4353_v63  ;;  %v4346_v22 = vmul.f32 -1.442695, %v5724_v4  ;;  %v2622_v0 = vadd.f32 %v5697_v19, %v2621_v10 }
 0x813   : > { %4605 = vrcp.f32 %v5727_v20  ;;  %v5739_v61 = vadd.f32 1.0, %v4600_v12  ;;  %v2471_v42 = vpop.f32.mrf.mxu3  ;;  %v4602_v30 = vpop.eup %4601  ;;  %vm2744_vm2 = vweird.f32 %v4598_v9  ;;  %vm2758_vm4 = vweird.f32 %v5727_v20 }
 0x814   : > { %v2740_v31 = vsub.f32 1.0, %v2739_v13  ;;  %4607 = vpow2.f32 %v4346_v22  ;;  %v2472_v25 = vadd.f32 %v2471_v42, %v5652_v38  ;;  %v2337_v26 = vpop.f32.mrf.mxu0  ;;  %v2626_v24 = vsel %vm2625_vm0, %v5697_v19, %v2622_v0  ;;  %vm2745_vm5 = vmor %vm2743_vm12, %vm2744_vm2 }
 0x815   : > { %4609 = vrcp.f32 %v5739_v61  ;;  %v2450_v29 = vpop.f32.mrf.mxu1  ;;  %v2634_v35 = vmul.f32 %v4602_v30, %v5702_v27  ;;  %v2631_v7 = vsel %vm5717_vm11, %v2630_v60, %v2626_v24  ;;  %vm2639_vm6 = vweird.f32 %v4602_v30 }
 0x816   : > { %v2741_v46 = vmul.f32 %v4598_v9, %v2740_v31  ;;  %v5753_v62 = vadd.f32 %v5629_v11, %v2472_v25  ;;  %v2451_v38 = vadd.f32 %v2450_v29, %v2337_v26  ;;  %v2802_v1 = vmul.f32 %v2631_v7, %v5655_v14  ;;  %vm2640_vm7 = vmor %vm2638_vm1, %vm2639_vm6 }
 0x817   : > { %v2635_v6 = vsub.f32 1.0, %v2634_v35  ;;  %v2762_v34 = vand.u32 2147483647, %v5727_v20  ;;  %v2764_v16 = vand.u32 2147483648, %v5727_v20  ;;  %v2657_v27 = vand.u32 2147483647, %v5739_v61 }
 0x818   : > { %v4604_v58 = vpop.eup %4603  ;;  %v2742_v19 = vadd.f32 %v4598_v9, %v2741_v46  ;;  %v4354_v44 = vmul.f32 -1.442695, %v5753_v62  ;;  %v5764_v28 = vadd.f32 %v5629_v11, %v2451_v38  ;;  %4359 = vmatmul.msk.f32.gmra.mxu2 %vm1261_vm10, %v2802_v1  ;;  %vm2653_vm11 = vweird.f32 %v5739_v61 }
 0x819   : > { %v4606_v8 = vpop.eup %4605  ;;  %v5770_v14 = vadd.f32 1.0, %v4604_v58  ;;  %v2636_v2 = vmul.f32 %v4602_v30, %v2635_v6  ;;  %vm5793_vm9 = vcmp.eq.f32.partialorder %v2762_v34, 8.507059e+37  ;;  %v2765_v7 = vor.u32 1.1754944e-38, %v2764_v16 }
 0x81a   : > { %v4608_v63 = vpop.eup %4607  ;;  %v2746_v60 = vsel %vm2745_vm5, %v4598_v9, %v2742_v19  ;;  %4611 = vpow2.f32 %v4354_v44  ;;  %v4347_v10 = vmul.f32 -1.442695, %v5764_v28  ;;  %v2754_v12 = vmul.f32 %v4606_v8, %v5727_v20 }
 0x81b   : > { %v4610_v13 = vpop.eup %4609  ;;  %v2751_v5 = vsel %vm5732_vm15, %v2750_v21, %v2746_v60  ;;  %4613 = vrcp.f32 %v5770_v14  ;;  %v5779_v22 = vadd.f32 1.0, %v4608_v63  ;;  %v2637_v23 = vadd.f32 %v4602_v30, %v2636_v2 }
 0x81c   : > { %v2810_v42 = vmul.f32 %v2751_v5, %v5664_v32  ;;  %4615 = vpow2.f32 %v4347_v10  ;;  %v2340_v0 = vpop.f32.mrf.mxu0  ;;  %v2755_v9 = vsub.f32 1.0, %v2754_v12  ;;  %vm2759_vm8 = vweird.f32 %v4606_v8 }
 0x81d   : > { %4617 = vrcp.f32 %v5779_v22  ;;  %v2453_v18 = vpop.f32.mrf.mxu1  ;;  %v2641_v21 = vsel %vm2640_vm7, %v4602_v30, %v2637_v23  ;;  %v2649_v31 = vmul.f32 %v4610_v13, %v5739_v61  ;;  %v2659_v1 = vand.u32 2147483648, %v5739_v61  ;;  %vm2760_vm12 = vmor %vm2758_vm4, %vm2759_vm8 }
 0x81e   : > { %v2454_v25 = vadd.f32 %v2453_v18, %v2340_v0  ;;  %4367 = vmatmul.msk.f32.vlgmr.msra.gmra.mxu3 %vm1261_vm10, %v2810_v42  ;;  %v2646_v32 = vsel %vm5758_vm3, %v2645_v33, %v2641_v21  ;;  %v2756_v26 = vmul.f32 %v4606_v8, %v2755_v9  ;;  %vm2654_vm14 = vweird.f32 %v4610_v13 }
 0x81f   : > { %v2803_v29 = vmul.f32 %v2646_v32, %v5669_v15  ;;  %v2650_v35 = vsub.f32 1.0, %v2649_v31  ;;  %vm5808_vm15 = vcmp.eq.f32.partialorder %v2657_v27, 8.507059e+37  ;;  %v2777_v34 = vand.u32 2147483647, %v5770_v14  ;;  %vm2655_vm0 = vmor %vm2653_vm11, %vm2654_vm14 }
 0x820   : > { %v4612_v30 = vpop.eup %4611  ;;  %v5799_v46 = vadd.f32 %v5629_v11, %v2454_v25  ;;  %v2757_v38 = vadd.f32 %v4606_v8, %v2756_v26  ;;  %v2779_v9 = vand.u32 2147483648, %v5770_v14  ;;  %vm2773_vm2 = vweird.f32 %v5770_v14 }
 0x821   : > { %v4614_v6 = vpop.eup %4613  ;;  %v5802_v36 = vadd.f32 1.0, %v4612_v30  ;;  %4360 = vmatmul.msk.f32.gmra.mxu2 %vm1261_vm10, %v2803_v29  ;;  %v2651_v15 = vmul.f32 %v4610_v13, %v2650_v35  ;;  %v2672_v25 = vand.u32 2147483647, %v5779_v22  ;;  %vm5836_vm3 = vcmp.eq.f32.partialorder %v2777_v34, 8.507059e+37 }
 0x822   : > { %v4616_v58 = vpop.eup %4615  ;;  %v4348_v19 = vmul.f32 -1.442695, %v5799_v46  ;;  %v2761_v44 = vsel %vm2760_vm12, %v4606_v8, %v2757_v38  ;;  %v2769_v2 = vmul.f32 %v4614_v6, %v5770_v14  ;;  %v2660_v8 = vor.u32 1.1754944e-38, %v2659_v1 }
 0x823   : > { %v4618_v63 = vpop.eup %4617  ;;  %4619 = vrcp.f32 %v5802_v36  ;;  %v5816_v60 = vadd.f32 1.0, %v4616_v58  ;;  %v2766_v20 = vsel %vm5793_vm9, %v2765_v7, %v2761_v44  ;;  %v2652_v10 = vadd.f32 %v4610_v13, %v2651_v15 }
 0x824   : > { %4621 = vpow2.f32 %v4348_v19  ;;  %v2343_v12 = vpop.f32.mrf.mxu0  ;;  %v2811_v5 = vmul.f32 %v2766_v20, %v5680_v37  ;;  %v2770_v23 = vsub.f32 1.0, %v2769_v2  ;;  %v2664_v16 = vmul.f32 %v4618_v63, %v5779_v22 }
 0x825   : > { %4623 = vrcp.f32 %v5816_v60  ;;  %v2456_v42 = vpop.f32.mrf.mxu1  ;;  %v2656_v0 = vsel %vm2655_vm0, %v4610_v13, %v2652_v10  ;;  %vm2774_vm1 = vweird.f32 %v4614_v6  ;;  %v2674_v27 = vand.u32 2147483648, %v5779_v22 }
 0x826   : > { %v2457_v18 = vadd.f32 %v2456_v42, %v2343_v12  ;;  %4368 = vmatmul.msk.f32.gmra.mxu3 %vm1261_vm10, %v2811_v5  ;;  %v2661_v37 = vsel %vm5808_vm15, %v2660_v8, %v2656_v0  ;;  %v2771_v21 = vmul.f32 %v4614_v6, %v2770_v23  ;;  %v2665_v31 = vsub.f32 1.0, %v2664_v16  ;;  %vm2775_vm4 = vmor %vm2773_vm2, %vm2774_vm1 }
 0x827   : > { %v2804_v61 = vmul.f32 %v2661_v37, %v5686_v17  ;;  %v2780_v17 = vor.u32 1.1754944e-38, %v2779_v9  ;;  %vm2668_vm5 = vweird.f32 %v5779_v22  ;;  %vm2669_vm6 = vweird.f32 %v4618_v63 }
 0x828   : > { %v5834_v13 = vadd.f32 %v5629_v11, %v2457_v18  ;;  %v2772_v32 = vadd.f32 %v4614_v6, %v2771_v21  ;;  %v2666_v24 = vmul.f32 %v4618_v63, %v2665_v31  ;;  %vm5844_vm7 = vcmp.eq.f32.partialorder %v2672_v25, 8.507059e+37  ;;  %vm2670_vm8 = vmor %vm2668_vm5, %vm2669_vm6 }
 0x829   : > { %v4620_v29 = vpop.eup %4619  ;;  %4361 = vmatmul.msk.f32.gmra.mxu2 %vm1261_vm10, %v2804_v61  ;;  %v2792_v19 = vand.u32 2147483647, %v5802_v36  ;;  %v2794_v12 = vand.u32 2147483648, %v5802_v36  ;;  %vm2788_vm11 = vweird.f32 %v5802_v36  ;;  %v2687_v37 = vand.u32 2147483647, %v5816_v60 }
 0x82a   : > { %v4622_v14 = vpop.eup %4621  ;;  %v4349_v35 = vmul.f32 -1.442695, %v5834_v13  ;;  %v2776_v30 = vsel %vm2775_vm4, %v4614_v6, %v2772_v32  ;;  %v2784_v7 = vmul.f32 %v4620_v29, %v5802_v36  ;;  %v2667_v58 = vadd.f32 %v4618_v63, %v2666_v24 }
 0x82b   : > { %v4624_v1 = vpop.eup %4623  ;;  %v5849_v15 = vadd.f32 1.0, %v4622_v14  ;;  %v2781_v33 = vsel %vm5836_vm3, %v2780_v17, %v2776_v30  ;;  %v2675_v6 = vor.u32 1.1754944e-38, %v2674_v27  ;;  %vm2789_vm9 = vweird.f32 %v4620_v29 }
 0x82c   : > { %4625 = vpow2.f32 %v4349_v35  ;;  %v2346_v44 = vpop.f32.mrf.mxu0  ;;  %v2812_v2 = vmul.f32 %v2781_v33, %v5713_v3  ;;  %v2785_v34 = vsub.f32 1.0, %v2784_v7  ;;  %v2671_v10 = vsel %vm2670_vm8, %v4618_v63, %v2667_v58  ;;  %vm2790_vm12 = vmor %vm2788_vm11, %vm2789_vm9 }
 0x82d   : > { %4627 = vrcp.f32 %v5849_v15  ;;  %v2459_v20 = vpop.f32.mrf.mxu1  ;;  %v2679_v5 = vmul.f32 %v4624_v1, %v5816_v60  ;;  %v2676_v23 = vsel %vm5844_vm7, %v2675_v6, %v2671_v10  ;;  %v2689_v63 = vand.u32 2147483648, %v5816_v60 }
 0x82e   : > { %v2460_v8 = vadd.f32 %v2459_v20, %v2346_v44  ;;  %4369 = vmatmul.msk.f32.gmra.mxu3 %vm1261_vm10, %v2812_v2  ;;  %v2786_v3 = vmul.f32 %v4620_v29, %v2785_v34  ;;  %v2805_v22 = vmul.f32 %v2676_v23, %v5724_v4  ;;  %v2795_v16 = vor.u32 1.1754944e-38, %v2794_v12 }
 0x82f   : > { %v2680_v42 = vsub.f32 1.0, %v2679_v5  ;;  %vm2684_vm14 = vweird.f32 %v4624_v1  ;;  %vm2793_vm15 = vcmp.eq.f32.partialorder %v2792_v19, 8.507059e+37  ;;  %vm2683_vm0 = vweird.f32 %v5816_v60 }
 0x830   : > { %v5865_v0 = vadd.f32 %v5629_v11, %v2460_v8  ;;  %v2787_v9 = vadd.f32 %v4620_v29, %v2786_v3  ;;  %vm2685_vm1 = vmor %vm2683_vm0, %vm2684_vm14  ;;  %v2690_v26 = vor.u32 1.1754944e-38, %v2689_v63  ;;  %vm2688_vm2 = vcmp.eq.f32.partialorder %v2687_v37, 8.507059e+37 }
 0x831   : > { %4362 = vmatmul.msk.f32.gmra.mxu2 %vm1261_vm10, %v2805_v22  ;;  %v2681_v18 = vmul.f32 %v4624_v1, %v2680_v42  ;;  %v2704_v35 = vand.u32 2147483648, %v5849_v15  ;;  %v2702_v60 = vand.u32 2147483647, %v5849_v15  ;;  %vm2698_vm4 = vweird.f32 %v5849_v15 }
 0x832   : > { %v4626_v21 = vpop.eup %4625  ;;  %v4350_v4 = vmul.f32 -1.442695, %v5865_v0  ;;  %v2791_v61 = vsel %vm2790_vm12, %v4620_v29, %v2787_v9 }
 0x833   : > { %v4628_v11 = vpop.eup %4627  ;;  %v2552_v31 = vadd.f32 1.0, %v4626_v21  ;;  %v2796_v25 = vsel %vm2793_vm15, %v2795_v16, %v2791_v61  ;;  %v2682_v32 = vadd.f32 %v4624_v1, %v2681_v18  ;;  %v2705_v33 = vor.u32 1.1754944e-38, %v2704_v35 }
 0x834   : > { %4629 = vpow2.f32 %v4350_v4  ;;  %v2813_v36 = vmul.f32 %v2796_v25, %v5753_v62  ;;  %v2694_v27 = vmul.f32 %v4628_v11, %v5849_v15  ;;  %vm2699_vm3 = vweird.f32 %v4628_v11 }
 0x835   : > { %4631 = vrcp.f32 %v2552_v31  ;;  %v2686_v17 = vsel %vm2685_vm1, %v4624_v1, %v2682_v32  ;;  %vm2700_vm5 = vmor %vm2698_vm4, %vm2699_vm3  ;;  %vm2703_vm6 = vcmp.eq.f32.partialorder %v2702_v60, 8.507059e+37  ;;  %v2719_v6 = vand.u32 2147483648, %v2552_v31 }
 0x836   : > { %4370 = vmatmul.msk.f32.gmra.mxu3 %vm1261_vm10, %v2813_v36  ;;  %v2691_v29 = vsel %vm2688_vm2, %v2690_v26, %v2686_v17  ;;  %v2695_v24 = vsub.f32 1.0, %v2694_v27  ;;  %v2717_v20 = vand.u32 2147483647, %v2552_v31  ;;  %vm2713_vm8 = vweird.f32 %v2552_v31 }
 0x837   : > { %v2806_v14 = vmul.f32 %v2691_v29, %v5764_v28  ;;  %v2720_v12 = vor.u32 1.1754944e-38, %v2719_v6  ;;  %vm2967_vm1 = vcmask 285696  }
 0x838   : > { %v2696_v30 = vmul.f32 %v4628_v11, %v2695_v24  ;;  %vm2718_vm11 = vcmp.eq.f32.partialorder %v2717_v20, 8.507059e+37 }
 0x839   : > { %4363 = vmatmul.msk.f32.gmra.mxu2 %vm1261_vm10, %v2806_v14 }
 0x83a   : > { %v4630_v62 = vpop.eup %4629  ;;  %v2697_v38 = vadd.f32 %v4628_v11, %v2696_v30 }
 0x83b   : > { %v4632_v7 = vpop.eup %4631  ;;  %v2553_v1 = vadd.f32 1.0, %v4630_v62 }
 0x83c   : > { %v2701_v58 = vsel %vm2700_vm5, %v4628_v11, %v2697_v38  ;;  %v2709_v19 = vmul.f32 %v4632_v7, %v2552_v31  ;;  %vm2714_vm7 = vweird.f32 %v4632_v7 }
 0x83d   : > { %4633 = vrcp.f32 %v2553_v1  ;;  %v2706_v28 = vsel %vm2703_vm6, %v2705_v33, %v2701_v58  ;;  %vm2715_vm9 = vmor %vm2713_vm8, %vm2714_vm7  ;;  %v2734_v22 = vand.u32 2147483648, %v2553_v1  ;;  %v2732_v9 = vand.u32 2147483647, %v2553_v1 }
 0x83e   : > { %v2807_v44 = vmul.f32 %v2706_v28, %v5799_v46  ;;  %v2710_v2 = vsub.f32 1.0, %v2709_v19  ;;  %vm2728_vm14 = vweird.f32 %v2553_v1 }
 0x83f   : > { %v2735_v16 = vor.u32 1.1754944e-38, %v2734_v22  ;;  %vm2733_vm0 = vcmp.eq.f32.partialorder %v2732_v9, 8.507059e+37 }
 0x840   : > { %v2711_v34 = vmul.f32 %v4632_v7, %v2710_v2 }
 0x841   : > { %4364 = vmatmul.msk.f32.gmra.mxu2 %vm1261_vm10, %v2807_v44 }
 0x842   : > { %v2712_v10 = vadd.f32 %v4632_v7, %v2711_v34 }
 0x843   : > { %v4634_v15 = vpop.eup %4633 }
 0x844   : > { %v2716_v5 = vsel %vm2715_vm9, %v4632_v7, %v2712_v10  ;;  %v2724_v8 = vmul.f32 %v4634_v15, %v2553_v1  ;;  %vm2729_vm12 = vweird.f32 %v4634_v15 }
 0x845   : > { %v2721_v23 = vsel %vm2718_vm11, %v2720_v12, %v2716_v5  ;;  %vm2730_vm15 = vmor %vm2728_vm14, %vm2729_vm12 }
 0x846   : > { %v2808_v3 = vmul.f32 %v2721_v23, %v5834_v13  ;;  %v2725_v46 = vsub.f32 1.0, %v2724_v8  ;;  %v5892_v13 = vld [vmem:[%s6860_s30] ss:$0 sm:$0xff]  ;;  %s4738_s30 = smov (!%p4281_p6), 96  }
 0x848   : > { %v2726_v42 = vmul.f32 %v4634_v15, %v2725_v46 }
 0x849   : > { %4365 = vmatmul.msk.f32.gmra.mxu2 %vm1261_vm10, %v2808_v3 }
 0x84a   : > { %v2727_v63 = vadd.f32 %v4634_v15, %v2726_v42 }
 0x84c   : > { %v2731_v18 = vsel %vm2730_vm15, %v4634_v15, %v2727_v63 }
 0x84d   : > { %v2736_v37 = vsel %vm2733_vm0, %v2735_v16, %v2731_v18 }
 0x84e   : > { %v2809_v21 = vmul.f32 %v2736_v37, %v5865_v0 }
 0x851   : > { %4366 = vmatmul.msk.f32.gmra.mxu2 %vm1261_vm10, %v2809_v21 }
 0x87b   : > { %v2887_v4 = vpop.f32.mrf.mxu2 }
 0x87c   : > { %v2888_v61 = vadd.f32 %v5892_v13, %v2887_v4 }
 0x87e   : > { %v5896_v11 = vadd.f32 %v2888_v61, %v5201_v57 }
 0x880   : > { %v2951_v31 = vsel %vm1261_vm10, %v5896_v11, %v5201_v57 }
 0x881   : > { %2968 = vst.msk [vmem:[#allocation2] sm:$0xff] %vm2967_vm1, %v2951_v31 }
 0x883   : > { %v2890_v0 = vpop.f32.mrf.mxu2 }
 0x884   : > { %v2891_v25 = vadd.f32 %v5892_v13, %v2890_v0 }
 0x886   : > { %v5904_v32 = vadd.f32 %v2891_v25, %v5198_v56 }
 0x888   : > { %v2952_v36 = vsel %vm1261_vm10, %v5904_v32, %v5198_v56 }
 0x889   : > { %2969 = vst.msk [vmem:[#allocation2 + $0x8] sm:$0xff] %vm2967_vm1, %v2952_v36 }
 0x88b   : > { %v2893_v26 = vpop.f32.mrf.mxu2 }
 0x88c   : > { %v2894_v27 = vadd.f32 %v5892_v13, %v2893_v26 }
 0x88e   : > { %v5912_v17 = vadd.f32 %v2894_v27, %v5195_v55 }
 0x890   : > { %v2953_v29 = vsel %vm1261_vm10, %v5912_v17, %v5195_v55 }
 0x891   : > { %2970 = vst.msk [vmem:[#allocation2 + $0x10] sm:$0xff] %vm2967_vm1, %v2953_v29 }
 0x893   : > { %v2896_v24 = vpop.f32.mrf.mxu2 }
 0x894   : > { %v2897_v14 = vadd.f32 %v5892_v13, %v2896_v24 }
 0x896   : > { %v5920_v35 = vadd.f32 %v2897_v14, %v5192_v54 }
 0x898   : > { %v2954_v30 = vsel %vm1261_vm10, %v5920_v35, %v5192_v54 }
 0x899   : > { %2971 = vst.msk [vmem:[#allocation2 + $0x18] sm:$0xff] %vm2967_vm1, %v2954_v30 }
 0x89b   : > { %v2899_v60 = vpop.f32.mrf.mxu2 }
 0x89c   : > { %v2900_v62 = vadd.f32 %v5892_v13, %v2899_v60 }
 0x89e   : > { %v5928_v38 = vadd.f32 %v2900_v62, %v5189_v53 }
 0x8a0   : > { %v2955_v7 = vsel %vm1261_vm10, %v5928_v38, %v5189_v53 }
 0x8a1   : > { %v2923_v1 = vpop.f32.mrf.mxu3  ;;  %2972 = vst.msk [vmem:[#allocation2 + $0x20] sm:$0xff] %vm2967_vm1, %v2955_v7 }
 0x8a2   : > { %v2924_v33 = vadd.f32 %v5892_v13, %v2923_v1 }
 0x8a4   : > { %v5936_v58 = vadd.f32 %v2924_v33, %v5159_v43  ;;  %v2902_v19 = vpop.f32.mrf.mxu2 }
 0x8a5   : > { %v2903_v28 = vadd.f32 %v5892_v13, %v2902_v19 }
 0x8a6   : > { %v2963_v44 = vsel %vm1261_vm10, %v5936_v58, %v5159_v43 }
 0x8a7   : > { %2980 = vst.msk [vmem:[#allocation2 + $0x60] sm:$0xff] %vm2967_vm1, %v2963_v44  ;;  %v5944_v2 = vadd.f32 %v2903_v28, %v5186_v52 }
 0x8a9   : > { %v2956_v6 = vsel %vm1261_vm10, %v5944_v2, %v5186_v52  ;;  %v2926_v34 = vpop.f32.mrf.mxu3 }
 0x8aa   : > { %2973 = vst.msk [vmem:[#allocation2 + $0x28] sm:$0xff] %vm2967_vm1, %v2956_v6  ;;  %v2927_v20 = vadd.f32 %v5892_v13, %v2926_v34 }
 0x8ac   : > { %v5952_v10 = vadd.f32 %v2927_v20, %v5153_v41  ;;  %v2905_v15 = vpop.f32.mrf.mxu2 }
 0x8ad   : > { %v2906_v12 = vadd.f32 %v5892_v13, %v2905_v15 }
 0x8ae   : > { %v2964_v5 = vsel %vm1261_vm10, %v5952_v10, %v5153_v41 }
 0x8af   : > { %2981 = vst.msk [vmem:[#allocation2 + $0x68] sm:$0xff] %vm2967_vm1, %v2964_v5  ;;  %v5960_v8 = vadd.f32 %v2906_v12, %v5183_v51 }
 0x8b1   : > { %v2957_v23 = vsel %vm1261_vm10, %v5960_v8, %v5183_v51  ;;  %v2929_v3 = vpop.f32.mrf.mxu3 }
 0x8b2   : > { %2974 = vst.msk [vmem:[#allocation2 + $0x30] sm:$0xff] %vm2967_vm1, %v2957_v23  ;;  %v2930_v46 = vadd.f32 %v5892_v13, %v2929_v3 }
 0x8b4   : > { %v5968_v22 = vadd.f32 %v2930_v46, %v5150_v40  ;;  %v2908_v42 = vpop.f32.mrf.mxu2 }
 0x8b5   : > { %v2909_v9 = vadd.f32 %v5892_v13, %v2908_v42 }
 0x8b6   : > { %v2965_v63 = vsel %vm1261_vm10, %v5968_v22, %v5150_v40 }
 0x8b7   : > { %2982 = vst.msk [vmem:[#allocation2 + $0x70] sm:$0xff] %vm2967_vm1, %v2965_v63  ;;  %v5976_v16 = vadd.f32 %v2909_v9, %v5180_v50 }
 0x8b9   : > { %v2958_v18 = vsel %vm1261_vm10, %v5976_v16, %v5180_v50  ;;  %v2932_v37 = vpop.f32.mrf.mxu3 }
 0x8ba   : > { %2975 = vst.msk [vmem:[#allocation2 + $0x38] sm:$0xff] %vm2967_vm1, %v2958_v18  ;;  %v2933_v21 = vadd.f32 %v5892_v13, %v2932_v37 }
 0x8bc   : > { %v5984_v4 = vadd.f32 %v2933_v21, %v5148_v39  ;;  %v2911_v61 = vpop.f32.mrf.mxu2 }
 0x8bd   : > { %v2912_v31 = vadd.f32 %v5892_v13, %v2911_v61 }
 0x8be   : > { %v2966_v0 = vsel %vm1261_vm10, %v5984_v4, %v5148_v39 }
 0x8bf   : > { %2983 = vst.msk [vmem:[#allocation2 + $0x78] sm:$0xff] %vm2967_vm1, %v2966_v0  ;;  %v5992_v25 = vadd.f32 %v2912_v31, %v5177_v49 }
 0x8c1   : > { %v2959_v36 = vsel %vm1261_vm10, %v5992_v25, %v5177_v49 }
 0x8c2   : > { %2976 = vst.msk [vmem:[#allocation2 + $0x40] sm:$0xff] %vm2967_vm1, %v2959_v36 }
 0x8c4   : > { %v2914_v26 = vpop.f32.mrf.mxu2 }
 0x8c5   : > { %v2915_v27 = vadd.f32 %v5892_v13, %v2914_v26 }
 0x8c7   : > { %v2944_v29 = vadd.f32 %v2915_v27, %v5174_v48 }
 0x8c9   : > { %v2960_v24 = vsel %vm1261_vm10, %v2944_v29, %v5174_v48 }
 0x8ca   : > { %2977 = vst.msk [vmem:[#allocation2 + $0x48] sm:$0xff] %vm2967_vm1, %v2960_v24 }
 0x8cc   : > { %v2917_v14 = vpop.f32.mrf.mxu2 }
 0x8cd   : > { %v2918_v30 = vadd.f32 %v5892_v13, %v2917_v14 }
 0x8cf   : > { %v2945_v60 = vadd.f32 %v2918_v30, %v5171_v47 }
 0x8d1   : > { %v2961_v62 = vsel %vm1261_vm10, %v2945_v60, %v5171_v47 }
 0x8d2   : > { %2978 = vst.msk [vmem:[#allocation2 + $0x50] sm:$0xff] %vm2967_vm1, %v2961_v62 }
 0x8d4   : > { %v2920_v7 = vpop.f32.mrf.mxu2 }
 0x8d5   : > { %v2921_v1 = vadd.f32 %v5892_v13, %v2920_v7 }
 0x8d6   : > { %2986 = sbr.rel (%p4281_p6) target bundleno = 2796 (0xaec), region = 136 }
 0x8d7   : > { %v2946_v33 = vadd.f32 %v2921_v1, %v5165_v45 }
 0x8d9   : > { %v2962_v19 = vsel %vm1261_vm10, %v2946_v33, %v5165_v45 }
 0x8da   : > { %2979 = vst.msk [vmem:[#allocation2 + $0x58] sm:$0xff] %vm2967_vm1, %v2962_v19 }
 0x8db   : > { %v3278_v28 = vld [vmem:[%s6794_s20 + $0x18] sm:$0xff]  ;;  %v3003_v44 = vld [vmem:[%s6861_s21] sm:$0xff]  ;;  %v3277_v13 = vld [vmem:[%s6794_s20 + $0x10] sm:$0xff]  ;;  %v4735_v34 = vmov 0  }
 0x8dc   : > { %3343 = vmatpush.msra.mxu0 %v3278_v28  ;;  %4472 = vmatpush.msra.mxu3 %v3278_v28  ;;  %v3005_v6 = vld [vmem:[%s6861_s21 + $0x10] sm:$0xff]  ;;  %v3276_v20 = vld [vmem:[%s6794_s20 + $0x8] sm:$0xff]  ;;  %v3007_v15 = vld [vmem:[%s6861_s21 + $0x20] sm:$0xff] }
 0x8dd   : > { %4635 = vset.pattern.permute.xlu0 %v4735_v34  ;;  %4636 = vset.pattern.permute.xlu1 %v4735_v34  ;;  %v3275_v12 = vld [vmem:[%s6794_s20] sm:$0xff]  ;;  %v3004_v5 = vld [vmem:[%s6861_s21 + $0x8] sm:$0xff]  ;;  %v3006_v23 = vld [vmem:[%s6861_s21 + $0x18] sm:$0xff] }
 0x8de   : > { %3021 = vperm.xlu0 %4635, %v3003_v44   ;;  %3344 = vmatpush.msra.mxu0 %v3277_v13  ;;  %v3008_v3 = vld [vmem:[%s6861_s21 + $0x28] sm:$0xff]  ;;  %v3010_v46 = vld [vmem:[%s6861_s21 + $0x38] sm:$0xff]  ;;  %v3011_v42 = vld [vmem:[%s6861_s21 + $0x40] sm:$0xff] }
 0x8df   : > { %4473 = vmatpush.msra.mxu3 %v3277_v13  ;;  %3031 = vperm.xlu1 %4636, %v3005_v6   ;;  %v3013_v9 = vld [vmem:[%s6861_s21 + $0x50] sm:$0xff]  ;;  %v3014_v63 = vld [vmem:[%s6861_s21 + $0x58] sm:$0xff]  ;;  %v3016_v18 = vld [vmem:[%s6861_s21 + $0x68] sm:$0xff] }
 0x8e0   : > { %3345 = vmatpush.msra.mxu0 %v3276_v20  ;;  %4637 = vset.pattern.permute.xlu2 %v4735_v34  ;;  %v3017_v37 = vld [vmem:[%s6861_s21 + $0x70] sm:$0xff]  ;;  %v3837_v21 = vld [vmem:[%s6862_s26] sm:$0xff]  ;;  %v3840_v61 = vld [vmem:[%s6862_s26 + $0x18] sm:$0xff] }
 0x8e1   : > { %4474 = vmatpush.msra.mxu3 %v3276_v20  ;;  %3041 = vperm.xlu2 %4637, %v3007_v15   ;;  %v3843_v31 = vld [vmem:[%s6862_s26 + $0x30] sm:$0xff]  ;;  %v3846_v0 = vld [vmem:[%s6862_s26 + $0x48] sm:$0xff]  ;;  %v3849_v26 = vld [vmem:[%s6862_s26 + $0x60] sm:$0xff] }
 0x8e2   : > { %3346 = vmatpush.msra.mxu0 %v3275_v12  ;;  %v3851_v36 = vld [vmem:[%s6862_s26 + $0x70] sm:$0xff]  ;;  %v3850_v27 = vld [vmem:[%s6862_s26 + $0x68] sm:$0xff]  ;;  %v2987_v14 = vld [vmem:[#allocation4] sm:$0xff] }
 0x8e3   : > { %4475 = vmatpush.msra.mxu3 %v3275_v12  ;;  %4372 = vmatmul.msk.f32.vlgmr.msra.gmra.mxu0 %vm1261_vm10, %v5896_v11  ;;  %v3009_v11 = vld [vmem:[%s6861_s21 + $0x30] sm:$0xff]  ;;  %v2988_v19 = vld [vmem:[#allocation4 + $0x8] sm:$0xff]  ;;  %v2990_v28 = vld [vmem:[#allocation4 + $0x18] sm:$0xff] }
 0x8e4   : > { %4381 = vmatmul.msk.f32.vlgmr.msra.gmra.mxu3 %vm1261_vm10, %v2944_v29  ;;  %v2989_v30 = vld [vmem:[#allocation4 + $0x10] sm:$0xff]  ;;  %v3719_v15 = vld [vmem:[%s6863_s2 + $0x18] sm:$0xff]  ;;  %v2992_v12 = vld [vmem:[#allocation4 + $0x28] sm:$0xff] }
 0x8e5   : > { %3784 = vmatpush.msra.mxu1 %v3719_v15  ;;  %4476 = vmatpush.msra.mxu2 %v3719_v15 }
 0x8e6   : > { %3026 = vperm.xlu0 %4635, %v3004_v5   ;;  %v2991_v5 = vld [vmem:[#allocation4 + $0x20] sm:$0xff] }
 0x8e7   : > { %3036 = vperm.xlu1 %4636, %v3006_v23   ;;  %v6166_v23 = vld [vmem:[%s6864_s11] ss:$0 sm:$0xff] }
 0x8e9   : > { %3046 = vperm.xlu2 %4637, %v3008_v3   ;;  %v3718_v3 = vld [vmem:[%s6863_s2 + $0x10] sm:$0xff] }
 0x8ea   : > { %3785 = vmatpush.msra.mxu1 %v3718_v3  ;;  %4477 = vmatpush.msra.mxu2 %v3718_v3 }
 0x8eb   : > { %4373 = vmatmul.msk.f32.gmra.mxu0 %vm1261_vm10, %v5904_v32  ;;  %v3012_v32 = vld [vmem:[%s6861_s21 + $0x48] sm:$0xff] }
 0x8ec   : > { %4382 = vmatmul.msk.f32.gmra.mxu3 %vm1261_vm10, %v2945_v60 }
 0x8ee   : > { %3051 = vperm.xlu0 %4635, %v3009_v11  }
 0x8ef   : > { %3056 = vperm.xlu1 %4636, %v3010_v46   ;;  %v3717_v46 = vld [vmem:[%s6863_s2 + $0x8] sm:$0xff] }
 0x8f0   : > { %3786 = vmatpush.msra.mxu1 %v3717_v46  ;;  %4478 = vmatpush.msra.mxu2 %v3717_v46 }
 0x8f1   : > { %3061 = vperm.xlu2 %4637, %v3011_v42  }
 0x8f3   : > { %4374 = vmatmul.msk.f32.gmra.mxu0 %vm1261_vm10, %v5912_v17  ;;  %v3015_v17 = vld [vmem:[%s6861_s21 + $0x60] sm:$0xff] }
 0x8f4   : > { %4383 = vmatmul.msk.f32.gmra.mxu3 %vm1261_vm10, %v2946_v33 }
 0x8f6   : > { %3066 = vperm.xlu0 %4635, %v3012_v32  }
 0x8f7   : > { %3071 = vperm.xlu1 %4636, %v3013_v9  }
 0x8f9   : > { %3076 = vperm.xlu2 %4637, %v3014_v63  }
 0x8fb   : > { %4375 = vmatmul.msk.f32.gmra.mxu0 %vm1261_vm10, %v5920_v35  ;;  %v3018_v35 = vld [vmem:[%s6861_s21 + $0x78] sm:$0xff] }
 0x8fc   : > { %4384 = vmatmul.msk.f32.gmra.mxu3 %vm1261_vm10, %v5936_v58  ;;  %v3839_v58 = vld [vmem:[%s6862_s26 + $0x10] sm:$0xff] }
 0x8fe   : > { %3081 = vperm.xlu0 %4635, %v3015_v17   ;;  %v3716_v17 = vld [vmem:[%s6863_s2] sm:$0xff] }
 0x8ff   : > { %3086 = vperm.xlu1 %4636, %v3016_v18   ;;  %3787 = vmatpush.msra.mxu1 %v3716_v17 }
 0x900   : > { %4479 = vmatpush.msra.mxu2 %v3716_v17 }
 0x901   : > { %3091 = vperm.xlu2 %4637, %v3017_v37  }
 0x903   : > { %4376 = vmatmul.msk.f32.gmra.mxu0 %vm1261_vm10, %v5928_v38  ;;  %v3838_v38 = vld [vmem:[%s6862_s26 + $0x8] sm:$0xff] }
 0x904   : > { %4385 = vmatmul.msk.f32.gmra.mxu3 %vm1261_vm10, %v5952_v10  ;;  %v3842_v10 = vld [vmem:[%s6862_s26 + $0x28] sm:$0xff] }
 0x906   : > { %3096 = vperm.xlu0 %4635, %v3018_v35   ;;  %v2994_v35 = vld [vmem:[#allocation4 + $0x38] sm:$0xff] }
 0x907   : > { %3860 = vperm.xlu1 %4636, %v3839_v58   ;;  %v2993_v58 = vld [vmem:[#allocation4 + $0x30] sm:$0xff] }
 0x909   : > { %3854 = vperm.xlu2 %4637, %v3837_v21  }
 0x90b   : > { %4377 = vmatmul.msk.f32.gmra.mxu0 %vm1261_vm10, %v5944_v2  ;;  %v3841_v2 = vld [vmem:[%s6862_s26 + $0x20] sm:$0xff] }
 0x90c   : > { %4386 = vmatmul.msk.f32.gmra.mxu3 %vm1261_vm10, %v5968_v22  ;;  %v3845_v22 = vld [vmem:[%s6862_s26 + $0x40] sm:$0xff] }
 0x90e   : > { %3857 = vperm.xlu0 %4635, %v3838_v38  }
 0x90f   : > { %3869 = vperm.xlu1 %4636, %v3842_v10  }
 0x911   : > { %3863 = vperm.xlu2 %4637, %v3840_v61  }
 0x913   : > { %4378 = vmatmul.msk.f32.gmra.mxu0 %vm1261_vm10, %v5960_v8  ;;  %v3844_v8 = vld [vmem:[%s6862_s26 + $0x38] sm:$0xff] }
 0x914   : > { %4387 = vmatmul.msk.f32.gmra.mxu3 %vm1261_vm10, %v5984_v4  ;;  %v3848_v4 = vld [vmem:[%s6862_s26 + $0x58] sm:$0xff] }
 0x916   : > { %3866 = vperm.xlu0 %4635, %v3841_v2  }
 0x917   : > { %3878 = vperm.xlu1 %4636, %v3845_v22  }
 0x919   : > { %3872 = vperm.xlu2 %4637, %v3843_v31  }
 0x91b   : > { %4379 = vmatmul.msk.f32.gmra.mxu0 %vm1261_vm10, %v5976_v16  ;;  %v3847_v16 = vld [vmem:[%s6862_s26 + $0x50] sm:$0xff] }
 0x91e   : > { %3875 = vperm.xlu0 %4635, %v3844_v8  }
 0x91f   : > { %3887 = vperm.xlu1 %4636, %v3848_v4  }
 0x921   : > { %3881 = vperm.xlu2 %4637, %v3846_v0  }
 0x923   : > { %4380 = vmatmul.msk.f32.gmra.mxu0 %vm1261_vm10, %v5992_v25  ;;  %v3852_v25 = vld [vmem:[%s6862_s26 + $0x78] sm:$0xff] }
 0x926   : > { %3884 = vperm.xlu0 %4635, %v3847_v16  }
 0x927   : > { %3896 = vperm.xlu1 %4636, %v3851_v36  }
 0x929   : > { %3890 = vperm.xlu2 %4637, %v3849_v26   ;;  %v2996_v26 = vld [vmem:[#allocation4 + $0x48] sm:$0xff] }
 0x92e   : > { %3893 = vperm.xlu0 %4635, %v3850_v27   ;;  %v2995_v27 = vld [vmem:[#allocation4 + $0x40] sm:$0xff] }
 0x931   : > { %3899 = vperm.xlu2 %4637, %v3852_v25  }
 0x93b   : > { %v3042_v29 = vpop.permute.xlu2 %3041 }
 0x93c   : > { %v3103_v42 = vmul.f32 %v3042_v29, %v2991_v5 }
 0x943   : > { %v3047_v24 = vpop.permute.xlu2 %3046 }
 0x944   : > { %v3104_v11 = vmul.f32 %v3047_v24, %v2992_v12  ;;  %v4737_v12 = vmov 0.0  }
 0x94b   : > { %v6152_v1 = vpop.permute.xlu2 %3061 }
 0x950   : > { %v3022_v60 = vpop.permute.xlu0 %3021 }
 0x951   : > { %v3099_v62 = vmul.f32 %v3022_v60, %v2987_v14  ;;  %v3032_v7 = vpop.permute.xlu1 %3031 }
 0x952   : > { %v3101_v33 = vmul.f32 %v3032_v7, %v2989_v30  ;;  %v3107_v30 = vmul.f32 %v6152_v1, %v2995_v27 }
 0x953   : > { %3131 = vrot.lane.b32.xlu1 %v3099_v62, %s4736_s3  ;;  %v6156_v20 = vpop.permute.xlu2 %3076 }
 0x954   : > { %3135 = vrot.lane.b32.xlu0 %v3101_v33, %s4736_s3 }
 0x958   : > { %v3027_v44 = vpop.permute.xlu0 %3026 }
 0x959   : > { %v3100_v13 = vmul.f32 %v3027_v44, %v2988_v19  ;;  %v3037_v6 = vpop.permute.xlu1 %3036 }
 0x95a   : > { %v3102_v34 = vmul.f32 %v3037_v6, %v2990_v28  ;;  %v2998_v28 = vld [vmem:[#allocation4 + $0x58] sm:$0xff]  ;;  %v2997_v6 = vld [vmem:[#allocation4 + $0x50] sm:$0xff] }
 0x95b   : > { %3133 = vrot.lane.b32.xlu2 %v3100_v13, %s4736_s3  ;;  %v3092_v21 = vpop.permute.xlu2 %3091  ;;  %v3001_v13 = vld [vmem:[#allocation4 + $0x70] sm:$0xff]  ;;  %v3110_v17 = vmul.f32 %v6156_v20, %v2998_v28 }
 0x95c   : > { %3137 = vrot.lane.b32.xlu1 %v3102_v34, %s4736_s3 }
 0x960   : > { %v3052_v32 = vpop.permute.xlu0 %3051  ;;  %v3348_v9 = vpop.f32.mrf.mxu0 }
 0x961   : > { %v6175_v63 = vadd.f32 %v6166_v23, %v3348_v9  ;;  %v3057_v37 = vpop.permute.xlu1 %3056  ;;  %v3105_v61 = vmul.f32 %v3052_v32, %v2993_v58  ;;  %v2999_v32 = vld [vmem:[#allocation4 + $0x60] sm:$0xff] }
 0x962   : > { %v3106_v10 = vmul.f32 %v3057_v37, %v2994_v35 }
 0x963   : > { %v4388_v18 = vmul.f32 -1.442695, %v6175_v63  ;;  %3141 = vrot.lane.b32.xlu2 %v3104_v11, %s4736_s3  ;;  %v3855_v14 = vpop.permute.xlu2 %3854 }
 0x964   : > { %3139 = vrot.lane.b32.xlu1 %v3103_v42, %s4736_s3  ;;  %vm3901_vm2 = vcmp.eq.s32.totalorder %v3855_v14, %v5221_v59 }
 0x965   : > { %4640 = vpow2.f32 %v4388_v18  ;;  %v4420_v5 = vsel %vm3901_vm2, 1.0, %v4737_v12  ;;  %v6219_v18 = vmul.f32 %v3092_v21, %v3001_v13 }
 0x967   : > { %v3375_v38 = vpop.f32.mrf.mxu3 }
 0x968   : > { %v6184_v2 = vadd.f32 %v6166_v23, %v3375_v38  ;;  %v3067_v22 = vpop.permute.xlu0 %3066  ;;  %v3351_v31 = vpop.f32.mrf.mxu0  ;;  %v3000_v38 = vld [vmem:[#allocation4 + $0x68] sm:$0xff] }
 0x969   : > { %v6187_v8 = vadd.f32 %v6166_v23, %v3351_v31  ;;  %v3072_v25 = vpop.permute.xlu1 %3071  ;;  %v3108_v29 = vmul.f32 %v3067_v22, %v2996_v26 }
 0x96a   : > { %v4397_v4 = vmul.f32 -1.442695, %v6184_v2  ;;  %v3109_v37 = vmul.f32 %v3072_v25, %v2997_v6 }
 0x96b   : > { %v4641_v0 = vpop.eup %4640  ;;  %v4389_v16 = vmul.f32 -1.442695, %v6187_v8  ;;  %3145 = vrot.lane.b32.xlu2 %v3106_v10, %s4736_s3 }
 0x96c   : > { %v6192_v36 = vadd.f32 1.0, %v4641_v0  ;;  %4642 = vpow2.f32 %v4397_v4  ;;  %3143 = vrot.lane.b32.xlu1 %v3105_v61, %s4736_s3 }
 0x96d   : > { %4644 = vpow2.f32 %v4389_v16 }
 0x96e   : > { %4646 = vrcp.f32 %v6192_v36  ;;  %v3469_v3 = vand.u32 2147483647, %v6192_v36  ;;  %v3471_v42 = vand.u32 2147483648, %v6192_v36  ;;  %vm3465_vm3 = vweird.f32 %v6192_v36 }
 0x96f   : > { %v3378_v24 = vpop.f32.mrf.mxu3 }
 0x970   : > { %v6198_v60 = vadd.f32 %v6166_v23, %v3378_v24  ;;  %v3082_v62 = vpop.permute.xlu0 %3081  ;;  %v3354_v7 = vpop.f32.mrf.mxu0  ;;  %vm6222_vm4 = vcmp.eq.f32.partialorder %v3469_v3, 8.507059e+37  ;;  %v3472_v4 = vor.u32 1.1754944e-38, %v3471_v42 }
 0x971   : > { %v6202_v33 = vadd.f32 %v6166_v23, %v3354_v7  ;;  %v3087_v58 = vpop.permute.xlu1 %3086  ;;  %v6226_v22 = vmul.f32 %v3082_v62, %v2999_v32 }
 0x972   : > { %v4643_v19 = vpop.eup %4642  ;;  %v4398_v44 = vmul.f32 -1.442695, %v6198_v60  ;;  %v3112_v24 = vmul.f32 %v3087_v58, %v3000_v38 }
 0x973   : > { %v4645_v34 = vpop.eup %4644  ;;  %v6205_v15 = vadd.f32 1.0, %v4643_v19  ;;  %v4390_v1 = vmul.f32 -1.442695, %v6202_v33  ;;  %3149 = vrot.lane.b32.xlu2 %v3108_v29, %s4736_s3 }
 0x974   : > { %v4647_v11 = vpop.eup %4646  ;;  %v6211_v46 = vadd.f32 1.0, %v4645_v34  ;;  %4648 = vpow2.f32 %v4398_v44  ;;  %3147 = vrot.lane.b32.xlu1 %v3107_v30, %s4736_s3  ;;  %v3002_v44 = vld [vmem:[#allocation4 + $0x78] sm:$0xff] }
 0x975   : > { %4650 = vrcp.f32 %v6205_v15  ;;  %v3461_v9 = vmul.f32 %v4647_v11, %v6192_v36  ;;  %v3604_v0 = vand.u32 2147483647, %v6205_v15  ;;  %vm3466_vm5 = vweird.f32 %v4647_v11 }
 0x976   : > { %4652 = vrcp.f32 %v6211_v46  ;;  %3949 = vxpose.xlu0.b32.start [1/16] (narrow) %v4420_v5, 8  ;;  %v3606_v27 = vand.u32 2147483648, %v6205_v15  ;;  %vm3600_vm6 = vweird.f32 %v6205_v15  ;;  %vm3480_vm7 = vweird.f32 %v6211_v46  ;;  %vm3467_vm8 = vmor %vm3465_vm3, %vm3466_vm5 }
 0x977   : > { %4654 = vpow2.f32 %v4390_v1  ;;  %v3381_v35 = vpop.f32.mrf.mxu3  ;;  %v3462_v10 = vsub.f32 1.0, %v3461_v9  ;;  %v3484_v19 = vand.u32 2147483647, %v6211_v46  ;;  %vm6253_vm9 = vcmp.eq.f32.partialorder %v3604_v0, 8.507059e+37 }
 0x978   : > { %v6229_v20 = vadd.f32 %v6166_v23, %v3381_v35  ;;  %v3097_v21 = vpop.permute.xlu0 %3096  ;;  %v3357_v31 = vpop.f32.mrf.mxu0  ;;  %v3486_v34 = vand.u32 2147483648, %v6211_v46  ;;  %v3607_v3 = vor.u32 1.1754944e-38, %v3606_v27 }
 0x979   : > { %v6233_v16 = vadd.f32 %v6166_v23, %v3357_v31  ;;  %v3463_v26 = vmul.f32 %v4647_v11, %v3462_v10  ;;  %vm6269_vm11 = vcmp.eq.f32.partialorder %v3484_v19, 8.507059e+37 }
 0x97a   : > { %v4649_v25 = vpop.eup %4648  ;;  %v4399_v29 = vmul.f32 -1.442695, %v6229_v20 }
 0x97b   : > { %v6239_v14 = vpop.eup %4650  ;;  %v6241_v30 = vadd.f32 1.0, %v4649_v25  ;;  %v4391_v62 = vmul.f32 -1.442695, %v6233_v16  ;;  %v3464_v7 = vadd.f32 %v4647_v11, %v3463_v26  ;;  %3153 = vrot.lane.b32.xlu2 %v3110_v17, %s4736_s3  ;;  %v6266_v17 = vmul.f32 %v3097_v21, %v3002_v44  ;;  %v3861_v21 = vpop.permute.xlu1 %3860 }
 0x97c   : > { %v6246_v28 = vpop.eup %4652  ;;  %4656 = vpow2.f32 %v4399_v29  ;;  %v3596_v13 = vmul.f32 %v6239_v14, %v6205_v15  ;;  %3151 = vrot.lane.b32.xlu1 %v3109_v37, %s4736_s3  ;;  %vm3601_vm12 = vweird.f32 %v6239_v14  ;;  %vm3903_vm0 = vcmp.eq.s32.totalorder %v3861_v21, %v5221_v59 }
 0x97d   : > { %v4655_v1 = vpop.eup %4654  ;;  %4658 = vrcp.f32 %v6241_v30  ;;  %v3468_v5 = vsel %vm3467_vm8, %v4647_v11, %v3464_v7  ;;  %v3476_v36 = vmul.f32 %v6246_v28, %v6211_v46  ;;  %vm3481_vm15 = vweird.f32 %v6246_v28  ;;  %vm3602_vm1 = vmor %vm3600_vm6, %vm3601_vm12 }
 0x97e   : > { %v6262_v42 = vadd.f32 1.0, %v4655_v1  ;;  %4660 = vpow2.f32 %v4391_v62  ;;  %v3473_v32 = vsel %vm6222_vm4, %v3472_v4, %v3468_v5  ;;  %v3597_v9 = vsub.f32 1.0, %v3596_v13  ;;  %vm3482_vm2 = vmor %vm3480_vm7, %vm3481_vm15 }
 0x97f   : > { %v3384_v35 = vpop.f32.mrf.mxu3  ;;  %v3700_v37 = vmul.f32 %v3473_v32, %v6175_v63  ;;  %v3477_v58 = vsub.f32 1.0, %v3476_v36  ;;  %v3487_v44 = vor.u32 1.1754944e-38, %v3486_v34  ;;  %v3621_v36 = vand.u32 2147483648, %v6241_v30 }
 0x980   : > { %4662 = vrcp.f32 %v6262_v42  ;;  %v6275_v11 = vadd.f32 %v6166_v23, %v3384_v35  ;;  %v3858_v10 = vpop.permute.xlu0 %3857  ;;  %v3360_v31 = vpop.f32.mrf.mxu0  ;;  %v3598_v61 = vmul.f32 %v6239_v14, %v3597_v9  ;;  %vm3615_vm3 = vweird.f32 %v6241_v30 }
 0x981   : > { %vm3902_vm14 = vcmp.eq.s32.totalorder %v3858_v10, %v5221_v59  ;;  %v6281_v63 = vadd.f32 %v6166_v23, %v3360_v31  ;;  %4404 = vmatmul.msk.f32.vlgmr.msra.gmra.mxu1 %vm1261_vm10, %v3700_v37  ;;  %v3478_v4 = vmul.f32 %v6246_v28, %v3477_v58  ;;  %v3619_v58 = vand.u32 2147483647, %v6241_v30 }
 0x982   : > { %v4657_v0 = vpop.eup %4656  ;;  %v4400_v26 = vmul.f32 -1.442695, %v6275_v11  ;;  %v4421_v27 = vsel %vm3902_vm14, 1.0, %v4737_v12  ;;  %v3599_v25 = vadd.f32 %v6239_v14, %v3598_v61  ;;  %vm3495_vm5 = vweird.f32 %v6262_v42  ;;  %v3864_v61 = vpop.permute.xlu2 %3863 }
 0x983   : > { %v4659_v29 = vpop.eup %4658  ;;  %v6290_v62 = vadd.f32 1.0, %v4657_v0  ;;  %v4392_v7 = vmul.f32 -1.442695, %v6281_v63  ;;  %3950 = vxpose.xlu0.b32.cont [2/16] (narrow) %v4421_v27, 8  ;;  %v3479_v19 = vadd.f32 %v6246_v28, %v3478_v4  ;;  %3157 = vrot.lane.b32.xlu2 %v3112_v24, %s4736_s3  ;;  %v3501_v0 = vand.u32 2147483648, %v6262_v42 }
 0x984   : > { %v4661_v13 = vpop.eup %4660  ;;  %4664 = vpow2.f32 %v4400_v26  ;;  %v3603_v1 = vsel %vm3602_vm1, %v6239_v14, %v3599_v25  ;;  %v3611_v5 = vmul.f32 %v4659_v29, %v6241_v30  ;;  %3155 = vrot.lane.b32.xlu1 %v6226_v22, %s4736_s3  ;;  %v4422_v22 = vsel %vm3903_vm0, 1.0, %v4737_v12 }
 0x985   : > { %4666 = vrcp.f32 %v6290_v62  ;;  %v6309_v15 = vadd.f32 1.0, %v4661_v13  ;;  %v3608_v24 = vsel %vm6253_vm9, %v3607_v3, %v3603_v1  ;;  %v3483_v14 = vsel %vm3482_vm2, %v6246_v28, %v3479_v19 }
 0x986   : > { %v4663_v34 = vpop.eup %4662  ;;  %4668 = vpow2.f32 %v4392_v7  ;;  %v3709_v46 = vmul.f32 %v3608_v24, %v6184_v2  ;;  %v3488_v32 = vsel %vm6269_vm11, %v3487_v44, %v3483_v14  ;;  %v3612_v9 = vsub.f32 1.0, %v3611_v5 }
 0x987   : > { %v3387_v35 = vpop.f32.mrf.mxu3  ;;  %v3701_v37 = vmul.f32 %v3488_v32, %v6187_v8  ;;  %v3491_v6 = vmul.f32 %v4663_v34, %v6262_v42  ;;  %vm3616_vm4 = vweird.f32 %v4659_v29  ;;  %v3622_v8 = vor.u32 1.1754944e-38, %v3621_v36 }
 0x988   : > { %v6324_v28 = vadd.f32 %v6166_v23, %v3387_v35  ;;  %4413 = vmatmul.msk.f32.vlgmr.msra.gmra.mxu2 %vm1261_vm10, %v3709_v46  ;;  %v3363_v2 = vpop.f32.mrf.mxu0  ;;  %v3613_v3 = vmul.f32 %v4659_v29, %v3612_v9  ;;  %4670 = vrcp.f32 %v6309_v15  ;;  %vm3617_vm6 = vmor %vm3615_vm3, %vm3616_vm4  ;;  %vm3496_vm7 = vweird.f32 %v4663_v34 }
 0x989   : > { %v6329_v38 = vadd.f32 %v6166_v23, %v3363_v2  ;;  %4405 = vmatmul.msk.f32.gmra.mxu1 %vm1261_vm10, %v3701_v37  ;;  %v3492_v10 = vsub.f32 1.0, %v3491_v6  ;;  %v3499_v7 = vand.u32 2147483647, %v6262_v42  ;;  %vm3620_vm8 = vcmp.eq.f32.partialorder %v3619_v58, 8.507059e+37  ;;  %vm3497_vm11 = vmor %vm3495_vm5, %vm3496_vm7  ;;  %v3867_v2 = vpop.permute.xlu0 %3866 }
 0x98a   : > { %v4665_v31 = vpop.eup %4664  ;;  %v4401_v21 = vmul.f32 -1.442695, %v6324_v28  ;;  %v3614_v4 = vadd.f32 %v4659_v29, %v3613_v3  ;;  %vm3904_vm9 = vcmp.eq.s32.totalorder %v3864_v61, %v5221_v59  ;;  %v3502_v36 = vor.u32 1.1754944e-38, %v3501_v0 }
 0x98b   : > { %v6336_v26 = vpop.eup %4666  ;;  %v6338_v27 = vadd.f32 1.0, %v4665_v31  ;;  %3951 = vxpose.xlu0.b32.cont [3/16] (narrow) %v4422_v22, 8  ;;  %v3493_v25 = vmul.f32 %v4663_v34, %v3492_v10  ;;  %3161 = vrot.lane.b32.xlu2 %v6266_v17, %s4736_s3  ;;  %v4393_v44 = vmul.f32 -1.442695, %v6329_v38  ;;  %vm3500_vm12 = vcmp.eq.f32.partialorder %v3499_v7, 8.507059e+37  ;;  %v6381_v10 = vpop.permute.xlu2 %3872 }
 0x98c   : > { %v4669_v19 = vpop.eup %4668  ;;  %4672 = vpow2.f32 %v4401_v21  ;;  %v3618_v13 = vsel %vm3617_vm6, %v4659_v29, %v3614_v4  ;;  %3159 = vrot.lane.b32.xlu1 %v6219_v18, %s4736_s3  ;;  %v3626_v17 = vmul.f32 %v6336_v26, %v6290_v62  ;;  %v3634_v22 = vand.u32 2147483647, %v6290_v62 }
 0x98d   : > { %v3623_v1 = vsel %vm3620_vm8, %v3622_v8, %v3618_v13  ;;  %v3494_v5 = vadd.f32 %v4663_v34, %v3493_v25  ;;  %4674 = vrcp.f32 %v6338_v27  ;;  %v6356_v29 = vadd.f32 1.0, %v4669_v19 }
 0x98e   : > { %v3710_v30 = vmul.f32 %v3623_v1, %v6198_v60  ;;  %v6358_v18 = vpop.eup %4670  ;;  %4676 = vpow2.f32 %v4393_v44  ;;  %v3627_v32 = vsub.f32 1.0, %v3626_v17  ;;  %v4423_v6 = vsel %vm3904_vm9, 1.0, %v4737_v12  ;;  %v3870_v44 = vpop.permute.xlu1 %3869 }
 0x98f   : > { %v3390_v24 = vpop.f32.mrf.mxu3  ;;  %v3498_v14 = vsel %vm3497_vm11, %v4663_v34, %v3494_v5  ;;  %v3636_v34 = vand.u32 2147483648, %v6290_v62  ;;  %vm3631_vm14 = vweird.f32 %v6336_v26  ;;  %4678 = vrcp.f32 %v6356_v29 }
 0x990   : > { %v6361_v46 = vadd.f32 %v6166_v23, %v3390_v24  ;;  %4414 = vmatmul.msk.f32.gmra.mxu2 %vm1261_vm10, %v3710_v30  ;;  %v3366_v60 = vpop.f32.mrf.mxu0  ;;  %v3503_v42 = vsel %vm3500_vm12, %v3502_v36, %v3498_v14  ;;  %v3628_v58 = vmul.f32 %v6336_v26, %v3627_v32  ;;  %v3506_v8 = vmul.f32 %v6358_v18, %v6309_v15 }
 0x991   : > { %v6365_v9 = vadd.f32 %v6166_v23, %v3366_v60  ;;  %v3702_v35 = vmul.f32 %v3503_v42, %v6202_v33  ;;  %vm3905_vm15 = vcmp.eq.s32.totalorder %v3867_v2, %v5221_v59  ;;  %vm3630_vm0 = vweird.f32 %v6290_v62  ;;  %v3876_v2 = vpop.permute.xlu0 %3875 }
 0x992   : > { %v4673_v37 = vpop.eup %4672  ;;  %v4402_v3 = vmul.f32 -1.442695, %v6361_v46  ;;  %v3629_v31 = vadd.f32 %v6336_v26, %v3628_v58  ;;  %vm3632_vm1 = vmor %vm3630_vm0, %vm3631_vm14  ;;  %vm3635_vm2 = vcmp.eq.f32.partialorder %v3634_v22, 8.507059e+37  ;;  %v3637_v4 = vor.u32 1.1754944e-38, %v3636_v34 }
 0x993   : > { %v4394_v33 = vmul.f32 -1.442695, %v6365_v9  ;;  %4406 = vmatmul.msk.f32.gmra.mxu1 %vm1261_vm10, %v3702_v35  ;;  %3952 = vxpose.xlu0.b32.cont [4/16] (narrow) %v4423_v6, 8  ;;  %v6386_v61 = vpop.eup %4674  ;;  %v6388_v21 = vadd.f32 1.0, %v4673_v37  ;;  %v3507_v0 = vsub.f32 1.0, %v3506_v8  ;;  %vm3510_vm3 = vweird.f32 %v6309_v15 }
 0x994   : > { %4680 = vpow2.f32 %v4402_v3  ;;  %v4677_v25 = vpop.eup %4676  ;;  %v3633_v7 = vsel %vm3632_vm1, %v6336_v26, %v3629_v31  ;;  %vm3511_vm4 = vweird.f32 %v6358_v18  ;;  %v3516_v19 = vand.u32 2147483648, %v6309_v15 }
 0x995   : > { %4682 = vpow2.f32 %v4394_v33  ;;  %v3638_v13 = vsel %vm3635_vm2, %v3637_v4, %v3633_v7  ;;  %v3508_v1 = vmul.f32 %v6358_v18, %v3507_v0  ;;  %v3514_v5 = vand.u32 2147483647, %v6309_v15  ;;  %v6401_v17 = vpop.eup %4678  ;;  %vm3512_vm6 = vmor %vm3510_vm3, %vm3511_vm4  ;;  %v6431_v4 = vpop.permute.xlu2 %3881 }
 0x996   : > { %vm3906_vm5 = vcmp.eq.s32.totalorder %v3870_v44, %v5221_v59  ;;  %v3711_v26 = vmul.f32 %v3638_v13, %v6229_v20  ;;  %v6403_v24 = vadd.f32 1.0, %v4677_v25  ;;  %v4424_v14 = vsel %vm3905_vm15, 1.0, %v4737_v12 }
 0x997   : > { %v3393_v62 = vpop.f32.mrf.mxu3  ;;  %v3509_v42 = vadd.f32 %v6358_v18, %v3508_v1  ;;  %4684 = vrcp.f32 %v6388_v21  ;;  %v3517_v20 = vor.u32 1.1754944e-38, %v3516_v19  ;;  %v3641_v22 = vmul.f32 %v6386_v61, %v6338_v27 }
 0x998   : > { %v6398_v30 = vadd.f32 %v6166_v23, %v3393_v62  ;;  %v3369_v36 = vpop.f32.mrf.mxu0  ;;  %4415 = vmatmul.msk.f32.gmra.mxu2 %vm1261_vm10, %v3711_v26  ;;  %vm3515_vm7 = vcmp.eq.f32.partialorder %v3514_v5, 8.507059e+37  ;;  %v3649_v33 = vand.u32 2147483647, %v6338_v27  ;;  %vm3907_vm8 = vcmp.eq.s32.totalorder %v6381_v10, %v5221_v59 }
 0x999   : > { %v6409_v60 = vadd.f32 %v6166_v23, %v3369_v36  ;;  %v3513_v6 = vsel %vm3512_vm6, %v6358_v18, %v3509_v42  ;;  %v3642_v58 = vsub.f32 1.0, %v3641_v22  ;;  %v3651_v31 = vand.u32 2147483648, %v6338_v27 }
 0x99a   : > { %v4681_v32 = vpop.eup %4680  ;;  %v4403_v35 = vmul.f32 -1.442695, %v6398_v30  ;;  %v3518_v3 = vsel %vm3515_vm7, %v3517_v20, %v3513_v6  ;;  %vm3646_vm9 = vweird.f32 %v6386_v61  ;;  %v3521_v0 = vmul.f32 %v6401_v17, %v6356_v29 }
 0x99b   : > { %v6421_v34 = vadd.f32 1.0, %v4681_v32  ;;  %v4395_v37 = vmul.f32 -1.442695, %v6409_v60  ;;  %3953 = vxpose.xlu0.b32.cont [5/16] (narrow) %v4424_v14, 8  ;;  %v4683_v15 = vpop.eup %4682  ;;  %v3703_v8 = vmul.f32 %v3518_v3, %v6233_v16  ;;  %v3643_v18 = vmul.f32 %v6386_v61, %v3642_v58 }
 0x99c   : > { %4686 = vpow2.f32 %v4403_v35  ;;  %v4425_v25 = vsel %vm3906_vm5, 1.0, %v4737_v12  ;;  %vm3908_vm11 = vcmp.eq.s32.totalorder %v3876_v2, %v5221_v59  ;;  %vm3645_vm12 = vweird.f32 %v6338_v27 }
 0x99d   : > { %4688 = vrcp.f32 %v6403_v24  ;;  %4407 = vmatmul.msk.f32.gmra.mxu1 %vm1261_vm10, %v3703_v8  ;;  %v6444_v16 = vpop.eup %4684  ;;  %v6446_v7 = vadd.f32 1.0, %v4683_v15  ;;  %v3644_v19 = vadd.f32 %v6386_v61, %v3643_v18  ;;  %vm6449_vm14 = vcmp.eq.f32.partialorder %v3649_v33, 8.507059e+37  ;;  %vm3647_vm15 = vmor %vm3645_vm12, %vm3646_vm9 }
 0x99e   : > { %4690 = vpow2.f32 %v4395_v37  ;;  %v3522_v1 = vsub.f32 1.0, %v3521_v0  ;;  %v3652_v44 = vor.u32 1.1754944e-38, %v3651_v31  ;;  %vm3525_vm0 = vweird.f32 %v6356_v29 }
 0x99f   : > { %4692 = vrcp.f32 %v6421_v34  ;;  %v3531_v27 = vand.u32 2147483648, %v6356_v29  ;;  %v3648_v36 = vsel %vm3647_vm15, %v6386_v61, %v3644_v19  ;;  %vm3526_vm1 = vweird.f32 %v6401_v17 }
 0x9a0   : > { %v3372_v13 = vpop.f32.mrf.mxu0  ;;  %v3523_v14 = vmul.f32 %v6401_v17, %v3522_v1  ;;  %v3529_v42 = vand.u32 2147483647, %v6356_v29  ;;  %v3653_v20 = vsel %vm6449_vm14, %v3652_v44, %v3648_v36  ;;  %4694 = vrcp.f32 %v6446_v7  ;;  %vm3527_vm2 = vmor %vm3525_vm0, %vm3526_vm1  ;;  %v6498_v29 = vpop.permute.xlu2 %3890 }
 0x9a1   : > { %v6454_v5 = vadd.f32 %v6166_v23, %v3372_v13  ;;  %v4426_v23 = vsel %vm3907_vm8, 1.0, %v4737_v12  ;;  %v6477_v37 = vsel %vm3908_vm11, 1.0, %v4737_v12  ;;  %v3712_v6 = vmul.f32 %v3653_v20, %v6275_v11 }
 0x9a2   : > { %v4687_v26 = vpop.eup %4686  ;;  %v3524_v10 = vadd.f32 %v6401_v17, %v3523_v14  ;;  %v3532_v33 = vor.u32 1.1754944e-38, %v3531_v27  ;;  %v3656_v2 = vmul.f32 %v6444_v16, %v6388_v21  ;;  %vm3530_vm3 = vcmp.eq.f32.partialorder %v3529_v42, 8.507059e+37 }
 0x9a3   : > { %v6462_v32 = vpop.eup %4688  ;;  %v6468_v35 = vadd.f32 1.0, %v4687_v26  ;;  %v4396_v61 = vmul.f32 -1.442695, %v6454_v5  ;;  %3954 = vxpose.xlu0.b32.cont [6/16] (narrow) %v4425_v25, 8  ;;  %4416 = vmatmul.msk.f32.gmra.mxu2 %vm1261_vm10, %v3712_v6  ;;  %v3664_v15 = vand.u32 2147483647, %v6388_v21  ;;  %vm3660_vm4 = vweird.f32 %v6388_v21  ;;  %v6504_v25 = vpop.permute.xlu1 %3878 }
 0x9a4   : > { %v4691_v22 = vpop.eup %4690  ;;  %v3528_v11 = vsel %vm3527_vm2, %v6401_v17, %v3524_v10  ;;  %v3657_v31 = vsub.f32 1.0, %v3656_v2  ;;  %v3666_v18 = vand.u32 2147483648, %v6388_v21  ;;  %vm3661_vm5 = vweird.f32 %v6444_v16 }
 0x9a5   : > { %v6481_v3 = vpop.eup %4692  ;;  %4696 = vrcp.f32 %v6468_v35  ;;  %v6484_v58 = vadd.f32 1.0, %v4691_v22  ;;  %v3533_v8 = vsel %vm3530_vm3, %v3532_v33, %v3528_v11  ;;  %v3536_v17 = vmul.f32 %v6462_v32, %v6403_v24  ;;  %vm3662_vm12 = vmor %vm3660_vm4, %vm3661_vm5 }
 0x9a6   : > { %4698 = vpow2.f32 %v4396_v61  ;;  %v3704_v0 = vmul.f32 %v3533_v8, %v6281_v63  ;;  %v3658_v19 = vmul.f32 %v6444_v16, %v3657_v31  ;;  %vm6507_vm6 = vcmp.eq.f32.partialorder %v3664_v15, 8.507059e+37  ;;  %v6513_v1 = vpop.eup %4694 }
 0x9a7   : > { %4700 = vrcp.f32 %v6484_v58  ;;  %vm3540_vm7 = vweird.f32 %v6403_v24  ;;  %v3544_v13 = vand.u32 2147483647, %v6403_v24  ;;  %v3667_v63 = vor.u32 1.1754944e-38, %v3666_v18 }
 0x9a8   : > { %4408 = vmatmul.msk.f32.gmra.mxu1 %vm1261_vm10, %v3704_v0  ;;  %v3537_v44 = vsub.f32 1.0, %v3536_v17  ;;  %v3546_v27 = vand.u32 2147483648, %v6403_v24  ;;  %v3671_v26 = vmul.f32 %v6481_v3, %v6421_v34  ;;  %v3659_v14 = vadd.f32 %v6444_v16, %v3658_v19 }
 0x9a9   : > { %vm3541_vm8 = vweird.f32 %v6462_v32  ;;  %vm6523_vm9 = vcmp.eq.f32.partialorder %v3544_v13, 8.507059e+37  ;;  %vm3675_vm11 = vweird.f32 %v6421_v34  ;;  %vm3676_vm14 = vweird.f32 %v6481_v3  ;;  %v6570_v13 = vpop.permute.xlu2 %3899 }
 0x9aa   : > { %v3538_v61 = vmul.f32 %v6462_v32, %v3537_v44  ;;  %v3547_v22 = vor.u32 1.1754944e-38, %v3546_v27  ;;  %v3672_v6 = vsub.f32 1.0, %v3671_v26  ;;  %v3663_v33 = vsel %vm3662_vm12, %v6444_v16, %v3659_v14  ;;  %vm3542_vm15 = vmor %vm3540_vm7, %vm3541_vm8 }
 0x9ab   : > { %v6519_v36 = vpop.eup %4696  ;;  %3955 = vxpose.xlu0.b32.cont [7/16] (narrow) %v4426_v23, 8  ;;  %v3679_v23 = vand.u32 2147483647, %v6421_v34  ;;  %v3681_v2 = vand.u32 2147483648, %v6421_v34  ;;  %v3668_v21 = vsel %vm6507_vm6, %v3667_v63, %v3663_v33  ;;  %v3551_v31 = vmul.f32 %v6513_v1, %v6446_v7  ;;  %vm3677_vm2 = vmor %vm3675_vm11, %vm3676_vm14  ;;  %v6577_v14 = vpop.permute.xlu1 %3887 }
 0x9ac   : > { %v4699_v20 = vpop.eup %4698  ;;  %v3539_v15 = vadd.f32 %v6462_v32, %v3538_v61  ;;  %v3673_v8 = vmul.f32 %v6481_v3, %v3672_v6  ;;  %v3713_v16 = vmul.f32 %v3668_v21, %v6324_v28  ;;  %vm3555_vm1 = vweird.f32 %v6446_v7 }
 0x9ad   : > { %v6534_v10 = vadd.f32 1.0, %v4699_v20  ;;  %v6539_v11 = vpop.eup %4700  ;;  %vm6553_vm0 = vcmp.eq.f32.partialorder %v3679_v23, 8.507059e+37  ;;  %v3682_v0 = vor.u32 1.1754944e-38, %v3681_v2  ;;  %v3552_v62 = vsub.f32 1.0, %v3551_v31 }
 0x9ae   : > { %v3543_v17 = vsel %vm3542_vm15, %v6462_v32, %v3539_v15  ;;  %v3674_v19 = vadd.f32 %v6481_v3, %v3673_v8  ;;  %4417 = vmatmul.msk.f32.gmra.mxu2 %vm1261_vm10, %v3713_v16  ;;  %vm3556_vm3 = vweird.f32 %v6513_v1  ;;  %v3559_v24 = vand.u32 2147483647, %v6446_v7 }
 0x9af   : > { %4702 = vrcp.f32 %v6534_v10  ;;  %v3548_v28 = vsel %vm6523_vm9, %v3547_v22, %v3543_v17  ;;  %v3561_v32 = vand.u32 2147483648, %v6446_v7  ;;  %v3553_v27 = vmul.f32 %v6513_v1, %v3552_v62  ;;  %vm3557_vm6 = vmor %vm3555_vm1, %vm3556_vm3 }
 0x9b0   : > { %v3705_v63 = vmul.f32 %v3548_v28, %v6329_v38  ;;  %v3678_v44 = vsel %vm3677_vm2, %v6481_v3, %v3674_v19  ;;  %v3686_v26 = vmul.f32 %v6519_v36, %v6468_v35  ;;  %vm3909_vm4 = vcmp.eq.s32.totalorder %v6504_v25, %v5221_v59 }
 0x9b1   : > { %v3683_v34 = vsel %vm6553_vm0, %v3682_v0, %v3678_v44  ;;  %v3554_v38 = vadd.f32 %v6513_v1, %v3553_v27  ;;  %vm3560_vm5 = vcmp.eq.f32.partialorder %v3559_v24, 8.507059e+37  ;;  %v3562_v61 = vor.u32 1.1754944e-38, %v3561_v32 }
 0x9b2   : > { %4409 = vmatmul.msk.f32.gmra.mxu1 %vm1261_vm10, %v3705_v63  ;;  %v3687_v3 = vsub.f32 1.0, %v3686_v26  ;;  %v3714_v20 = vmul.f32 %v3683_v34, %v6361_v46  ;;  %v3566_v22 = vmul.f32 %v6539_v11, %v6484_v58  ;;  %vm3691_vm7 = vweird.f32 %v6519_v36  ;;  %v3885_v46 = vpop.permute.xlu0 %3884 }
 0x9b3   : > { %3956 = vxpose.xlu0.b32.cont [8/16] (narrow) %v6477_v37, 8  ;;  %v3696_v37 = vand.u32 2147483648, %v6468_v35  ;;  %v3558_v6 = vsel %vm3557_vm6, %v6513_v1, %v3554_v38  ;;  %v3694_v23 = vand.u32 2147483647, %v6468_v35  ;;  %vm3690_vm8 = vweird.f32 %v6468_v35  ;;  %v6623_v24 = vpop.permute.xlu1 %3896 }
 0x9b4   : > { %v3688_v33 = vmul.f32 %v6519_v36, %v3687_v3  ;;  %v3563_v2 = vsel %vm3560_vm5, %v3562_v61, %v3558_v6  ;;  %v3567_v7 = vsub.f32 1.0, %v3566_v22  ;;  %vm3570_vm9 = vweird.f32 %v6484_v58  ;;  %vm3692_vm12 = vmor %vm3690_vm8, %vm3691_vm7 }
 0x9b5   : > { %v6586_v42 = vpop.eup %4702  ;;  %v3706_v21 = vmul.f32 %v3563_v2, %v6365_v9  ;;  %vm3571_vm11 = vweird.f32 %v6539_v11  ;;  %v3576_v1 = vand.u32 2147483648, %v6484_v58  ;;  %v3697_v8 = vor.u32 1.1754944e-38, %v3696_v37  ;;  %v3134_v0 = vpop.permute.xlu2 %3133 }
 0x9b6   : > { %v3689_v15 = vadd.f32 %v6519_v36, %v3688_v33  ;;  %4418 = vmatmul.msk.f32.gmra.mxu2 %vm1261_vm10, %v3714_v20  ;;  %v3568_v31 = vmul.f32 %v6539_v11, %v3567_v7  ;;  %v3574_v16 = vand.u32 2147483647, %v6484_v58  ;;  %v3581_v35 = vmul.f32 %v6586_v42, %v6534_v10  ;;  %vm3572_vm15 = vmor %vm3570_vm9, %vm3571_vm11 }
 0x9b7   : > { %v4428_v9 = vsel %vm3909_vm4, 1.0, %v4737_v12  ;;  %vm3695_vm14 = vcmp.eq.f32.partialorder %v3694_v23, 8.507059e+37  ;;  %v3180_v28 = vadd.f32 %v3134_v0, %v5198_v56  ;;  %v3577_v25 = vor.u32 1.1754944e-38, %v3576_v1 }
 0x9b8   : > { %v3693_v18 = vsel %vm3692_vm12, %v6519_v36, %v3689_v15  ;;  %v3569_v19 = vadd.f32 %v6539_v11, %v3568_v31  ;;  %v3582_v62 = vsub.f32 1.0, %v3581_v35  ;;  %vm3575_vm0 = vcmp.eq.f32.partialorder %v3574_v16, 8.507059e+37 }
 0x9b9   : > { %v3698_v17 = vsel %vm3695_vm14, %v3697_v8, %v3693_v18  ;;  %3213 = vrot.lane.b32.xlu2 %v3180_v28, %s4738_s30  ;;  %vm3585_vm1 = vweird.f32 %v6534_v10  ;;  %vm3586_vm2 = vweird.f32 %v6586_v42  ;;  %vm3910_vm3 = vcmp.eq.s32.totalorder %v6431_v4, %v5221_v59 }
 0x9ba   : > { %4410 = vmatmul.msk.f32.gmra.mxu1 %vm1261_vm10, %v3706_v21  ;;  %v3715_v36 = vmul.f32 %v3698_v17, %v6398_v30  ;;  %v3573_v32 = vsel %vm3572_vm15, %v6539_v11, %v3569_v19  ;;  %v3583_v63 = vmul.f32 %v6586_v42, %v3582_v62  ;;  %v3591_v30 = vand.u32 2147483648, %v6534_v10  ;;  %v3894_v27 = vpop.permute.xlu0 %3893  ;;  %vm3587_vm4 = vmor %vm3585_vm1, %vm3586_vm2 }
 0x9bb   : > { %3957 = vxpose.xlu0.b32.cont [9/16] (narrow) %v4428_v9, 8  ;;  %v3578_v56 = vsel %vm3575_vm0, %v3577_v25, %v3573_v32  ;;  %v3589_v44 = vand.u32 2147483647, %v6534_v10  ;;  %v4429_v26 = vsel %vm3910_vm3, 1.0, %v4737_v12  ;;  %vm3911_vm6 = vcmp.eq.s32.totalorder %v3885_v46, %v5221_v59 }
 0x9bc   : > { %v3584_v58 = vadd.f32 %v6586_v42, %v3583_v63  ;;  %v3707_v11 = vmul.f32 %v3578_v56, %v6409_v60  ;;  %v3592_v38 = vor.u32 1.1754944e-38, %v3591_v30  ;;  %v4430_v61 = vsel %vm3911_vm6, 1.0, %v4737_v12  ;;  %v4639_v30 = vld [vmem:[#allocation5] ss:$0 sm:$0xff] }
 0x9bd   : > { %vm3590_vm5 = vcmp.eq.f32.partialorder %v3589_v44, 8.507059e+37  ;;  %v3142_v37 = vpop.permute.xlu2 %3141  ;;  %vm3912_vm7 = vcmp.eq.s32.totalorder %v6577_v14, %v5221_v59  ;;  %vm3914_vm8 = vcmp.eq.s32.totalorder %v3894_v27, %v5221_v59  ;;  %vm3915_vm9 = vcmp.eq.s32.totalorder %v6623_v24, %v5221_v59 }
 0x9be   : > { %4419 = vmatmul.msk.f32.gmra.mxu2 %vm1261_vm10, %v3715_v36  ;;  %v3588_v34 = vsel %vm3587_vm4, %v6586_v42, %v3584_v58  ;;  %v3184_v33 = vadd.f32 %v3142_v37, %v5186_v52  ;;  %vm3916_vm11 = vcmp.eq.s32.totalorder %v6570_v13, %v5221_v59  ;;  %vm4003_vm12 = vcmask 7168  }
 0x9bf   : > { %v3593_v4 = vsel %vm3590_vm5, %v3592_v38, %v3588_v34 }
 0x9c0   : > { %v3708_v60 = vmul.f32 %v3593_v4, %v6454_v5  ;;  %v4431_v5 = vsel %vm3912_vm7, 1.0, %v4737_v12 }
 0x9c2   : > { %4411 = vmatmul.msk.f32.gmra.mxu1 %vm1261_vm10, %v3707_v11 }
 0x9c3   : > { %3958 = vxpose.xlu0.b32.cont [10/16] (narrow) %v4429_v26, 8 }
 0x9c5   : > { %v3132_v3 = vpop.permute.xlu1 %3131  ;;  %v3146_v6 = vpop.permute.xlu2 %3145 }
 0x9c6   : > { %v3179_v20 = vadd.f32 %v3132_v3, %v5201_v57  ;;  %v3136_v10 = vpop.permute.xlu0 %3135  ;;  %v3186_v14 = vadd.f32 %v3146_v6, %v5180_v50 }
 0x9c7   : > { %v3181_v42 = vadd.f32 %v3136_v10, %v5195_v55 }
 0x9c8   : > { %3211 = vrot.lane.b32.xlu1 %v3179_v20, %s4738_s30 }
 0x9ca   : > { %4412 = vmatmul.msk.f32.gmra.mxu1 %vm1261_vm10, %v3708_v60  ;;  %vm3913_vm10 = vcmp.eq.s32.totalorder %v6498_v29, %v5221_v59 }
 0x9cb   : > { %3959 = vxpose.xlu0.b32.cont [11/16] (narrow) %v4430_v61, 8 }
 0x9cd   : > { %v3150_v46 = vpop.permute.xlu2 %3149 }
 0x9ce   : > { %v3138_v22 = vpop.permute.xlu1 %3137  ;;  %v3188_v29 = vadd.f32 %v3150_v46, %v5174_v48 }
 0x9cf   : > { %v3182_v57 = vadd.f32 %v3138_v22, %v5192_v54  ;;  %v4432_v54 = vsel %vm3913_vm10, 1.0, %v4737_v12 }
 0x9d0   : > { %3215 = vrot.lane.b32.xlu1 %v3181_v42, %s4738_s30 }
 0x9d1   : > { %3217 = vrot.lane.b32.xlu2 %v3182_v57, %s4738_s30 }
 0x9d3   : > { %3960 = vxpose.xlu0.b32.cont [12/16] (narrow) %v4431_v5, 8 }
 0x9d5   : > { %v3154_v21 = vpop.permute.xlu2 %3153 }
 0x9d6   : > { %v3140_v23 = vpop.permute.xlu1 %3139  ;;  %v3190_v48 = vadd.f32 %v3154_v21, %v5165_v45 }
 0x9d7   : > { %v3183_v55 = vadd.f32 %v3140_v23, %v5189_v53  ;;  %v4433_v53 = vsel %vm3914_vm8, 1.0, %v4737_v12 }
 0x9d9   : > { %3221 = vrot.lane.b32.xlu2 %v3184_v33, %s4738_s30  ;;  %3219 = vrot.lane.b32.xlu1 %v3183_v55, %s4738_s30 }
 0x9db   : > { %3961 = vxpose.xlu0.b32.cont [13/16] (narrow) %v4432_v54, 8 }
 0x9dd   : > { %v3158_v8 = vpop.permute.xlu2 %3157 }
 0x9de   : > { %v3144_v2 = vpop.permute.xlu1 %3143  ;;  %v3192_v16 = vadd.f32 %v3158_v8, %v5153_v41 }
 0x9df   : > { %v3185_v52 = vadd.f32 %v3144_v2, %v5183_v51  ;;  %v4434_v51 = vsel %vm3915_vm9, 1.0, %v4737_v12 }
 0x9e1   : > { %3225 = vrot.lane.b32.xlu2 %v3186_v14, %s4738_s30  ;;  %3223 = vrot.lane.b32.xlu1 %v3185_v52, %s4738_s30 }
 0x9e3   : > { %3962 = vxpose.xlu0.b32.cont [14/16] (narrow) %v4433_v53, 8 }
 0x9e5   : > { %v3162_v45 = vpop.permute.xlu2 %3161 }
 0x9e6   : > { %v3148_v7 = vpop.permute.xlu1 %3147 }
 0x9e7   : > { %v3187_v50 = vadd.f32 %v3148_v7, %v5177_v49  ;;  %v4435_v49 = vsel %vm3916_vm11, 1.0, %v4737_v12 }
 0x9e9   : > { %3229 = vrot.lane.b32.xlu2 %v3188_v29, %s4738_s30  ;;  %3227 = vrot.lane.b32.xlu1 %v3187_v50, %s4738_s30 }
 0x9eb   : > { %3963 = vxpose.xlu0.b32.cont [15/16] (narrow) %v4434_v51, 8 }
 0x9ee   : > { %v3152_v15 = vpop.permute.xlu1 %3151 }
 0x9ef   : > { %v3189_v1 = vadd.f32 %v3152_v15, %v5171_v47  ;;  %v3194_v47 = vadd.f32 %v3162_v45, %v5148_v39 }
 0x9f1   : > { %3233 = vrot.lane.b32.xlu2 %v3190_v48, %s4738_s30  ;;  %3231 = vrot.lane.b32.xlu1 %v3189_v1, %s4738_s30 }
 0x9f3   : > { %3964 = vxpose.xlu0.b32.end [16/16] (narrow) %v4435_v49, 8 }
 0x9f6   : > { %v3156_v31 = vpop.permute.xlu1 %3155 }
 0x9f7   : > { %v3191_v35 = vadd.f32 %v3156_v31, %v5159_v43 }
 0x9f9   : > { %3237 = vrot.lane.b32.xlu2 %v3192_v16, %s4738_s30  ;;  %3235 = vrot.lane.b32.xlu1 %v3191_v35, %s4738_s30 }
 0x9fe   : > { %v3160_v59 = vpop.permute.xlu1 %3159  ;;  %v6687_v9 = vpop.f32.mrf.mxu1 }
 0x9ff   : > { %v3193_v13 = vadd.f32 %v3160_v59, %v5150_v40  ;;  %v3790_v52 = vadd.f32 %v4639_v30, %v6687_v9 }
 0xa01   : > { %3241 = vrot.lane.b32.xlu2 %v3194_v47, %s4738_s30  ;;  %3239 = vrot.lane.b32.xlu1 %v3193_v13, %s4738_s30 }
 0xa06   : > { %v6691_v12 = vpop.f32.mrf.mxu1 }
 0xa07   : > { %v3793_v2 = vadd.f32 %v4639_v30, %v6691_v12 }
 0xa0b   : > { %v3816_v41 = vpop.f32.mrf.mxu2 }
 0xa0c   : > { %v3817_v37 = vadd.f32 %v4639_v30, %v3816_v41 }
 0xa10   : > { %v6693_v43 = vpop.f32.mrf.mxu1 }
 0xa11   : > { %v3796_v46 = vadd.f32 %v4639_v30, %v6693_v43 }
 0xa13   : > { %v3819_v18 = vpop.f32.mrf.mxu2  ;;  %v3214_v0 = vpop.permute.xlu2 %3213 }
 0xa14   : > { %3260 = vst.msk [vmem:[%s6879_s25 + $0x8] sm:$0xff] %vm1278_vm13, %v3214_v0  ;;  %v3820_v10 = vadd.f32 %v4639_v30, %v3819_v18 }
 0xa1a   : > { %v3798_v39 = vpop.f32.mrf.mxu1 }
 0xa1b   : > { %v3822_v40 = vpop.f32.mrf.mxu2  ;;  %v3799_v14 = vadd.f32 %v4639_v30, %v3798_v39 }
 0xa1c   : > { %v3823_v60 = vadd.f32 %v4639_v30, %v3822_v40 }
 0xa1f   : > { %v3965_v53 = vpop.trf.xlu0 }
 0xa25   : > { %v3801_v17 = vpop.f32.mrf.mxu1 }
 0xa26   : > { %v3825_v19 = vpop.f32.mrf.mxu2  ;;  %v3802_v23 = vadd.f32 %v4639_v30, %v3801_v17 }
 0xa27   : > { %v3826_v4 = vadd.f32 %v4639_v30, %v3825_v19 }
 0xa2b   : > { %v3218_v62 = vpop.permute.xlu2 %3217 }
 0xa2c   : > { %3262 = vst.msk [vmem:[%s6879_s25 + $0x18] sm:$0xff] %vm1278_vm13, %v3218_v62 }
 0xa2f   : > { %v3804_v28 = vpop.f32.mrf.mxu1 }
 0xa30   : > { %v3805_v33 = vadd.f32 %v4639_v30, %v3804_v28 }
 0xa31   : > { %v3828_v24 = vpop.f32.mrf.mxu2 }
 0xa32   : > { %v3829_v38 = vadd.f32 %v4639_v30, %v3828_v24 }
 0xa33   : > { %v3222_v25 = vpop.permute.xlu2 %3221 }
 0xa34   : > { %3264 = vst.msk [vmem:[%s6879_s25 + $0x28] sm:$0xff] %vm1278_vm13, %v3222_v25 }
 0xa37   : > { %v3807_v63 = vpop.f32.mrf.mxu1 }
 0xa38   : > { %v3808_v6 = vadd.f32 %v4639_v30, %v3807_v63 }
 0xa39   : > { %v3831_v56 = vpop.f32.mrf.mxu2 }
 0xa3a   : > { %v3212_v36 = vpop.permute.xlu1 %3211  ;;  %v3832_v34 = vadd.f32 %v4639_v30, %v3831_v56 }
 0xa3b   : > { %v3226_v32 = vpop.permute.xlu2 %3225  ;;  %3259 = vst.msk [vmem:[%s6879_s25] sm:$0xff] %vm1278_vm13, %v3212_v36 }
 0xa3c   : > { %3266 = vst.msk [vmem:[%s6879_s25 + $0x38] sm:$0xff] %vm1278_vm13, %v3226_v32 }
 0xa3f   : > { %v3810_v26 = vpop.f32.mrf.mxu1 }
 0xa40   : > { %v3811_v5 = vadd.f32 %v4639_v30, %v3810_v26 }
 0xa41   : > { %v3834_v44 = vpop.f32.mrf.mxu2 }
 0xa42   : > { %v3216_v58 = vpop.permute.xlu1 %3215  ;;  %v3835_v27 = vadd.f32 %v4639_v30, %v3834_v44 }
 0xa43   : > { %v3230_v11 = vpop.permute.xlu2 %3229  ;;  %3261 = vst.msk [vmem:[%s6879_s25 + $0x10] sm:$0xff] %vm1278_vm13, %v3216_v58 }
 0xa44   : > { %3268 = vst.msk [vmem:[%s6879_s25 + $0x48] sm:$0xff] %vm1278_vm13, %v3230_v11  ;;  %3981 = vmatpush.msrb.mxu2 %v3835_v27 }
 0xa46   : > { %3982 = vmatpush.msrb.mxu2 %v3832_v34 }
 0xa47   : > { %v3813_v61 = vpop.f32.mrf.mxu1 }
 0xa48   : > { %3983 = vmatpush.msrb.mxu2 %v3829_v38  ;;  %v3814_v42 = vadd.f32 %v4639_v30, %v3813_v61 }
 0xa4a   : > { %3984 = vmatpush.msrb.mxu2 %v3826_v4 }
 0xa4b   : > { %v3234_v3 = vpop.permute.xlu2 %3233  ;;  %v3220_v20 = vpop.permute.xlu1 %3219 }
 0xa4c   : > { %3270 = vst.msk [vmem:[%s6879_s25 + $0x58] sm:$0xff] %vm1278_vm13, %v3234_v3  ;;  %3985 = vmatpush.msrb.mxu2 %v3823_v60 }
 0xa4d   : > { %3263 = vst.msk [vmem:[%s6879_s25 + $0x20] sm:$0xff] %vm1278_vm13, %v3220_v20 }
 0xa4e   : > { %3986 = vmatpush.msrb.mxu2 %v3820_v10 }
 0xa50   : > { %3987 = vmatpush.msrb.mxu2 %v3817_v37 }
 0xa52   : > { %3988 = vmatpush.msrb.mxu2 %v3814_v42 }
 0xa53   : > { %v3238_v22 = vpop.permute.xlu2 %3237  ;;  %v3224_v57 = vpop.permute.xlu1 %3223 }
 0xa54   : > { %3272 = vst.msk [vmem:[%s6879_s25 + $0x68] sm:$0xff] %vm1278_vm13, %v3238_v22  ;;  %3989 = vmatpush.msrb.mxu2 %v3811_v5 }
 0xa55   : > { %3265 = vst.msk [vmem:[%s6879_s25 + $0x30] sm:$0xff] %vm1278_vm13, %v3224_v57 }
 0xa56   : > { %3990 = vmatpush.msrb.mxu2 %v3808_v6 }
 0xa58   : > { %3991 = vmatpush.msrb.mxu2 %v3805_v33 }
 0xa5a   : > { %3992 = vmatpush.msrb.mxu2 %v3802_v23 }
 0xa5b   : > { %v3242_v55 = vpop.permute.xlu2 %3241  ;;  %v3228_v54 = vpop.permute.xlu1 %3227 }
 0xa5c   : > { %3274 = vst.msk [vmem:[%s6879_s25 + $0x78] sm:$0xff] %vm1278_vm13, %v3242_v55  ;;  %3993 = vmatpush.msrb.mxu2 %v3799_v14 }
 0xa5d   : > { %3267 = vst.msk [vmem:[%s6879_s25 + $0x40] sm:$0xff] %vm1278_vm13, %v3228_v54 }
 0xa5e   : > { %3994 = vmatpush.msrb.mxu2 %v3796_v46 }
 0xa60   : > { %3995 = vmatpush.msrb.mxu2 %v3793_v2 }
 0xa62   : > { %3996 = vmatpush.msrb.mxu2 %v3790_v52 }
 0xa63   : > { %v3232_v29 = vpop.permute.xlu1 %3231  ;;  %3997 = vmatmul.f32.vlgmr.msrb.gmra.mxu2 %v3965_v53 }
 0xa64   : > { %3269 = vst.msk [vmem:[%s6879_s25 + $0x50] sm:$0xff] %vm1278_vm13, %v3232_v29 }
 0xa6b   : > { %v3236_v7 = vpop.permute.xlu1 %3235 }
 0xa6c   : > { %3271 = vst.msk [vmem:[%s6879_s25 + $0x60] sm:$0xff] %vm1278_vm13, %v3236_v7 }
 0xa73   : > { %v3240_v50 = vpop.permute.xlu1 %3239 }
 0xa74   : > { %3273 = vst.msk [vmem:[%s6879_s25 + $0x70] sm:$0xff] %vm1278_vm13, %v3240_v50 }
 0xae6   : > { %v3998_v21 = vpop.f32.mrf.mxu2 }
 0xae7   : > { %v4001_v51 = vmul.f32 2.0, %v3998_v21 }
 0xae9   : > { %v4002_v15 = vadd.f32 0.5, %v4001_v51 }
 0xaeb   : > { %4004 = vst.msk [vmem:[%s6880_s9] sm:$0xff] %vm4003_vm12, %v4002_v15 }
 0xaec PF: > { %s6881_s30 = sld [smem:[#allocation7_spill]] }
 0xaed   : > { %s6882_s6 = sld [smem:[#allocation6_spill]] }
 0xaf2   : > { %s38_s7 = sadd.s32 1, %s6881_s30   ;;  %s6883_s30 = sld [smem:[#allocation8_spill]] }
 0xaf3   : > { %p35_p7 = scmp.ge.s32.totalorder %s38_s7, 5  }
 0xaf5   :  { %37 = sbr.rel (!%p35_p7) target bundleno = 16 (0x10), region = 209 }

</bundles_post_ra>
